<compile_context>
chip_gen: v7x
topology: tpu7x:2x2x1
jax: 0.10.0
libtpu: 0.0.40
codegen_flags: <defaults>
</compile_context>

<pallas_src>
import functools
import math

import jax
import jax.numpy as jnp
from jax import lax
from jax.experimental import pallas as pl
from jax.experimental.pallas import tpu as pltpu


def _layer_norm(x, gamma, beta, eps=1e-5):
    # Two-pass variance (mean, then mean of centered squares) like PyTorch.
    mu = jnp.mean(x, axis=-1, keepdims=True)
    xc = x - mu
    var = jnp.mean(xc * xc, axis=-1, keepdims=True)
    return xc * lax.rsqrt(var + eps) * gamma + beta


def encoder_layer_kernel(
    src_q_ref, qk_ref, v_ref,
    wq_ref, bq_ref, wk_ref, bk_ref, wv_ref, bv_ref,
    wo_ref, bo_ref, g1_ref, be1_ref,
    w1_ref, b1_ref, w2_ref, b2_ref, g2_ref, be2_ref,
    o_ref, k_scr, v_scr, *, kv_tile,
):
    f32, bf16 = jnp.float32, jnp.bfloat16
    H, D, Dh = wq_ref.shape
    n_f = w1_ref.shape[0]
    S = qk_ref.shape[1]
    n_kv = S // kv_tile
    qt = pl.program_id(1)

    # ---- per-batch K/V projections: computed once (first query tile of this
    # batch) into VMEM scratch, reused by all remaining query tiles ----
    @pl.when(qt == 0)
    def _():
        kin = qk_ref[0]                     # (S, D) bf16 (src + PE)
        vin = v_ref[0]                      # (S, D) bf16 (src)
        for h in range(H):
            k_scr[h] = (jnp.dot(kin, wk_ref[h], preferred_element_type=f32)
                        + bk_ref[h]).astype(bf16)
            v_scr[h] = (jnp.dot(vin, wv_ref[h], preferred_element_type=f32)
                        + bv_ref[h]).astype(bf16)

    src_q = src_q_ref[0]                    # (TQ, D) f32 residual stream
    TQ = src_q.shape[0]
    q_start = pl.multiple_of(qt * TQ, TQ)
    q_in = qk_ref[0, pl.ds(q_start, TQ), :]  # (TQ, D) bf16 query rows (src + PE)

    scale = 1.0 / math.sqrt(Dh)

    # ---- multi-head attention: online (flash) softmax over KV chunks ----
    attn = jnp.zeros((TQ, D), f32)
    for h in range(H):
        qh = ((jnp.dot(q_in, wq_ref[h], preferred_element_type=f32)
               + bq_ref[h]) * scale).astype(bf16)       # (TQ, Dh)

        def kv_step(i, carry, h=h, qh=qh):
            m_i, l_i, acc = carry
            k0 = pl.multiple_of(i * kv_tile, kv_tile)
            kc = k_scr[h, pl.ds(k0, kv_tile), :]        # (KC, Dh) bf16
            vc = v_scr[h, pl.ds(k0, kv_tile), :]        # (KC, Dh) bf16
            # Contract the trailing Dh dims directly (no materialized kc.T).
            s = lax.dot_general(qh, kc, (((1,), (1,)), ((), ())),
                                preferred_element_type=f32)   # (TQ, KC) f32
            m_new = jnp.maximum(m_i, jnp.max(s, axis=-1, keepdims=True))
            alpha = jnp.exp(m_i - m_new)
            p = jnp.exp(s - m_new)
            l_new = alpha * l_i + jnp.sum(p, axis=-1, keepdims=True)
            acc_new = alpha * acc + jnp.dot(p.astype(bf16), vc,
                                            preferred_element_type=f32)
            return m_new, l_new, acc_new

        init = (jnp.full((TQ, 1), -jnp.inf, f32),
                jnp.zeros((TQ, 1), f32),
                jnp.zeros((TQ, Dh), f32))
        if n_kv <= 4:      # short trip count: keep unrolled for the scheduler
            carry = init
            for i in range(n_kv):
                carry = kv_step(i, carry)
            m_i, l_i, acc = carry
        else:              # long trip count: bound live ranges
            m_i, l_i, acc = lax.fori_loop(0, n_kv, kv_step, init)

        oh = (acc * (1.0 / l_i)).astype(bf16)           # (TQ, Dh)
        # Fold the head merge into the output projection (accumulate over heads).
        attn = attn + jnp.dot(oh, wo_ref[h], preferred_element_type=f32)
    attn = attn + bo_ref[...]

    # residual + dropout1 (identity, eval) + norm1  (post-norm)
    x = _layer_norm(src_q + attn, g1_ref[...], be1_ref[...])

    # ---- feed-forward, chunked over F with an f32 accumulator ----
    x_b = x.astype(bf16)

    def f_step(j, y):
        h1 = jnp.dot(x_b, w1_ref[j], preferred_element_type=f32) + b1_ref[j]
        h1 = jnp.maximum(h1, 0.0).astype(bf16)          # relu
        return y + jnp.dot(h1, w2_ref[j], preferred_element_type=f32)

    y = jnp.zeros((TQ, D), f32)
    if n_f <= 4:
        for j in range(n_f):
            y = f_step(j, y)
    else:
        y = lax.fori_loop(0, n_f, f_step, y)
    y = y + b2_ref[...]

    # residual + dropout2 (identity) + norm2
    out = _layer_norm(x + y, g2_ref[...], be2_ref[...])
    o_ref[0] = out.astype(o_ref.dtype)


def sinusoidal_positional_embedding(seq_len, d_model):
    # TODO(synk): confirm interleaved sin/cos vs concatenated halves matches the
    # reference helper exactly.
    pos = jnp.arange(seq_len, dtype=jnp.float32)[:, None]           # (S, 1)
    i = jnp.arange(d_model // 2, dtype=jnp.float32)[None, :]        # (1, D/2)
    div = jnp.exp(-math.log(10000.0) * (2.0 * i) / d_model)
    ang = pos * div                                                  # (S, D/2)
    pe = jnp.stack([jnp.sin(ang), jnp.cos(ang)], axis=-1)            # (S, D/2, 2)
    return pe.reshape(seq_len, d_model)


def _pick_tile(total, candidates):
    for c in candidates:
        if total >= c and total % c == 0:
            return c
    return total   # fallback: single block (correct; no pipelining on that axis)


def _split_heads_in(w, b, nhead):
    d_in, d_out = w.shape
    dh = d_out // nhead
    w3 = w.reshape(d_in, nhead, dh).transpose(1, 0, 2)   # (H, D_in, Dh)
    b3 = b.reshape(1, nhead, dh).transpose(1, 0, 2)      # (H, 1, Dh)
    return w3, b3


def _tpu_generation():
    try:
        kind = jax.devices()[0].device_kind.lower()
    except Exception:
        return 0
    for g in (7, 6, 5):
        if f"v{g}" in kind:
            return g
    return 0


def transformer_encoder_layer(src, params, *, nhead):
    B, S, D = src.shape
    H = nhead
    Dh = D // H
    F = params["w1"].shape[1]
    bf16 = jnp.bfloat16

    # Per-generation tile / VMEM budgets: v7x has 64 MiB VMEM per TC, v5e/v6e 128 MiB.
    gen = _tpu_generation()
    if gen == 7:
        q_cands, kv_cands = (256, 128), (512, 256, 128)
        vmem_limit = 40 * 1024 * 1024
    else:
        q_cands, kv_cands = (512, 256, 128), (1024, 512, 256, 128)
        vmem_limit = 64 * 1024 * 1024
    q_tile = _pick_tile(S, q_cands)
    kv_tile = _pick_tile(S, kv_cands)
    f_tile = _pick_tile(F, (1024, 512, 256, 128))
    n_f = F // f_tile

    pe = sinusoidal_positional_embedding(S, D)

    # K/V-path sequence data precomputed once as bf16; only the query-tile
    # residual stream stays f32 inside the kernel.
    qk_full = (src + pe[None]).astype(bf16)   # (B, S, D) = src + PE  (Q and K input)
    v_full = src.astype(bf16)                 # (B, S, D)             (V input)

    # Pre-split attention weights per head (PyTorch in_proj rows, transposed to x@W).
    wq3, bq3 = _split_heads_in(params["wq"], params["bq"], H)
    wk3, bk3 = _split_heads_in(params["wk"], params["bk"], H)
    wv3, bv3 = _split_heads_in(params["wv"], params["bv"], H)
    wo3 = params["wo"].reshape(H, Dh, D)

    # FFN weights pre-chunked over F so the kernel only indexes leading axes.
    w1r = params["w1"].reshape(D, n_f, f_tile).transpose(1, 0, 2)    # (n_f, D, f_tile)
    b1r = params["b1"].reshape(1, n_f, f_tile).transpose(1, 0, 2)    # (n_f, 1, f_tile)
    w2r = params["w2"].reshape(n_f, f_tile, D)                       # (n_f, f_tile, D)

    weight_args = (
        wq3.astype(bf16), bq3,
        wk3.astype(bf16), bk3,
        wv3.astype(bf16), bv3,
        wo3.astype(bf16), params["bo"],
        params["g1"], params["be1"],
        w1r.astype(bf16), b1r,
        w2r.astype(bf16), params["b2"],
        params["g2"], params["be2"],
    )

    kernel = functools.partial(encoder_layer_kernel, kv_tile=kv_tile)

    def run(single_buffer_consts):
        def const_spec(arr):
            imap = (lambda b, qt: (0, 0)) if arr.ndim == 2 else (lambda b, qt: (0, 0, 0))
            if single_buffer_consts:
                return pl.BlockSpec(arr.shape, imap, pipeline_mode=pl.Buffered(1))
            return pl.BlockSpec(arr.shape, imap)

        def seq_spec():
            if single_buffer_consts:
                return pl.BlockSpec((1, S, D), lambda b, qt: (b, 0, 0),
                                    pipeline_mode=pl.Buffered(1))
            return pl.BlockSpec((1, S, D), lambda b, qt: (b, 0, 0))

        in_specs = [
            pl.BlockSpec((1, q_tile, D), lambda b, qt: (b, qt, 0)),   # f32 residual tile
            seq_spec(),                                               # bf16 src + PE (Q/K)
            seq_spec(),                                               # bf16 src (V)
        ] + [const_spec(w) for w in weight_args]

        return pl.pallas_call(
            kernel,
            out_shape=jax.ShapeDtypeStruct((B, S, D), src.dtype),
            grid_spec=pltpu.PrefetchScalarGridSpec(
                num_scalar_prefetch=0,
                grid=(B, S // q_tile),
                in_specs=in_specs,
                out_specs=pl.BlockSpec((1, q_tile, D), lambda b, qt: (b, qt, 0)),
                scratch_shapes=[pltpu.VMEM((H, S, Dh), bf16),   # cached K per batch
                                pltpu.VMEM((H, S, Dh), bf16)],  # cached V per batch
            ),
            compiler_params=pltpu.CompilerParams(
                # batch axis parallel (megacore split on v7x); query-tile axis is
                # 'arbitrary' because K/V scratch filled at qt==0 carries state
                # across the remaining query tiles of that batch.
                dimension_semantics=("parallel", "arbitrary"),
                vmem_limit_bytes=vmem_limit,
            ),
        )(src, qk_full, v_full, *weight_args)

    try:
        return run(True)
    except Exception:
        # pl.Buffered(1) not supported on this jax/libtpu combo -> fall back to
        # default double-buffered constant blocks (same results, more VMEM).
        return run(False)


def init_params(key, d_model, nhead, dim_feedforward):
    ks = jax.random.split(key, 8)
    s = 0.05
    return {
        # attention in-projection, stored as (D_in, D_out) for x @ W
        "wq": s * jax.random.normal(ks[0], (d_model, d_model), jnp.float32),
        "wk": s * jax.random.normal(ks[1], (d_model, d_model), jnp.float32),
        "wv": s * jax.random.normal(ks[2], (d_model, d_model), jnp.float32),
        "bq": jnp.zeros((1, d_model), jnp.float32),
        "bk": jnp.zeros((1, d_model), jnp.float32),
        "bv": jnp.zeros((1, d_model), jnp.float32),
        # attention out-projection
        "wo": s * jax.random.normal(ks[3], (d_model, d_model), jnp.float32),
        "bo": jnp.zeros((1, d_model), jnp.float32),
        # norm1
        "g1": jnp.ones((1, d_model), jnp.float32),
        "be1": jnp.zeros((1, d_model), jnp.float32),
        # FFN
        "w1": s * jax.random.normal(ks[4], (d_model, dim_feedforward), jnp.float32),
        "b1": jnp.zeros((1, dim_feedforward), jnp.float32),
        "w2": s * jax.random.normal(ks[5], (dim_feedforward, d_model), jnp.float32),
        "b2": jnp.zeros((1, d_model), jnp.float32),
        # norm2
        "g2": jnp.ones((1, d_model), jnp.float32),
        "be2": jnp.zeros((1, d_model), jnp.float32),
    }


if __name__ == "__main__":
    # Small, deterministic test shapes; d_model / head_dim / FFN width are
    # 128-aligned so all MXU contractions and output stores are full-lane.
    B, S, D, H, F = 2, 8, 256, 2, 256
    key = jax.random.PRNGKey(0)
    k_src, k_par = jax.random.split(key)
    src = jax.random.normal(k_src, (B, S, D), jnp.float32)
    params = init_params(k_par, D, H, F)

    out = transformer_encoder_layer(src, params, nhead=H)
    jax.block_until_ready(out)
    assert out.shape == (B, S, D)
    print("KERNEL_OK")
</pallas_src>

<mosaic_0001>
module attributes {stable_mosaic.version = 11 : i64} {
  func.func @encoder_layer_kernel(%arg0: i32, %arg1: i32, %arg2: memref<1x8x256xf32, #tpu.memory_space<vmem>>, %arg3: memref<1x8x256xbf16, #tpu.memory_space<vmem>>, %arg4: memref<1x8x256xbf16, #tpu.memory_space<vmem>>, %arg5: memref<2x256x128xbf16, #tpu.memory_space<vmem>>, %arg6: memref<2x1x128xf32, #tpu.memory_space<vmem>>, %arg7: memref<2x256x128xbf16, #tpu.memory_space<vmem>>, %arg8: memref<2x1x128xf32, #tpu.memory_space<vmem>>, %arg9: memref<2x256x128xbf16, #tpu.memory_space<vmem>>, %arg10: memref<2x1x128xf32, #tpu.memory_space<vmem>>, %arg11: memref<2x128x256xbf16, #tpu.memory_space<vmem>>, %arg12: memref<1x256xf32, #tpu.memory_space<vmem>>, %arg13: memref<1x256xf32, #tpu.memory_space<vmem>>, %arg14: memref<1x256xf32, #tpu.memory_space<vmem>>, %arg15: memref<1x256x256xbf16, #tpu.memory_space<vmem>>, %arg16: memref<1x1x256xf32, #tpu.memory_space<vmem>>, %arg17: memref<1x256x256xbf16, #tpu.memory_space<vmem>>, %arg18: memref<1x256xf32, #tpu.memory_space<vmem>>, %arg19: memref<1x256xf32, #tpu.memory_space<vmem>>, %arg20: memref<1x256xf32, #tpu.memory_space<vmem>>, %arg21: memref<1x8x256xf32, #tpu.memory_space<vmem>>, %arg22: memref<2x8x128xbf16, #tpu.memory_space<vmem>>, %arg23: memref<2x8x128xbf16, #tpu.memory_space<vmem>>) attributes {dimension_semantics = [#tpu.dimension_semantics<parallel>, #tpu.dimension_semantics<arbitrary>], iteration_bounds = array<i64: 2, 1>, scalar_prefetch = 0 : i64, scratch_operands = 2 : i64, tpu.core_type = #tpu.core_type<tc>, window_params = [{transform_indices = @transform_0, window_bounds = array<i64: 1, 8, 256>}, {pipeline_mode = #tpu.pipeline_mode<synchronous>, transform_indices = @transform_1, window_bounds = array<i64: 1, 8, 256>}, {pipeline_mode = #tpu.pipeline_mode<synchronous>, transform_indices = @transform_2, window_bounds = array<i64: 1, 8, 256>}, {pipeline_mode = #tpu.pipeline_mode<synchronous>, transform_indices = @transform_3, window_bounds = array<i64: 2, 256, 128>}, {pipeline_mode = #tpu.pipeline_mode<synchronous>, transform_indices = @transform_4, window_bounds = array<i64: 2, 1, 128>}, {pipeline_mode = #tpu.pipeline_mode<synchronous>, transform_indices = @transform_5, window_bounds = array<i64: 2, 256, 128>}, {pipeline_mode = #tpu.pipeline_mode<synchronous>, transform_indices = @transform_6, window_bounds = array<i64: 2, 1, 128>}, {pipeline_mode = #tpu.pipeline_mode<synchronous>, transform_indices = @transform_7, window_bounds = array<i64: 2, 256, 128>}, {pipeline_mode = #tpu.pipeline_mode<synchronous>, transform_indices = @transform_8, window_bounds = array<i64: 2, 1, 128>}, {pipeline_mode = #tpu.pipeline_mode<synchronous>, transform_indices = @transform_9, window_bounds = array<i64: 2, 128, 256>}, {pipeline_mode = #tpu.pipeline_mode<synchronous>, transform_indices = @transform_10, window_bounds = array<i64: 1, 256>}, {pipeline_mode = #tpu.pipeline_mode<synchronous>, transform_indices = @transform_11, window_bounds = array<i64: 1, 256>}, {pipeline_mode = #tpu.pipeline_mode<synchronous>, transform_indices = @transform_12, window_bounds = array<i64: 1, 256>}, {pipeline_mode = #tpu.pipeline_mode<synchronous>, transform_indices = @transform_13, window_bounds = array<i64: 1, 256, 256>}, {pipeline_mode = #tpu.pipeline_mode<synchronous>, transform_indices = @transform_14, window_bounds = array<i64: 1, 1, 256>}, {pipeline_mode = #tpu.pipeline_mode<synchronous>, transform_indices = @transform_15, window_bounds = array<i64: 1, 256, 256>}, {pipeline_mode = #tpu.pipeline_mode<synchronous>, transform_indices = @transform_16, window_bounds = array<i64: 1, 256>}, {pipeline_mode = #tpu.pipeline_mode<synchronous>, transform_indices = @transform_17, window_bounds = array<i64: 1, 256>}, {pipeline_mode = #tpu.pipeline_mode<synchronous>, transform_indices = @transform_18, window_bounds = array<i64: 1, 256>}, {transform_indices = @transform_19, window_bounds = array<i64: 1, 8, 256>}]} {
    %c0_i32 = arith.constant 0 : i32
    %0 = arith.cmpi eq, %arg1, %c0_i32 : i32
    %1 = arith.extui %0 : i1 to i32
    %c0_i32_0 = arith.constant 0 : i32
    %2 = arith.cmpi ne, %1, %c0_i32_0 : i32
    scf.if %2 {
      %c0_92 = arith.constant 0 : index
      %c0_93 = arith.constant 0 : index
      %c0_94 = arith.constant 0 : index
      %176 = vector.load %arg3[%c0_92, %c0_93, %c0_94] : memref<1x8x256xbf16, #tpu.memory_space<vmem>>, vector<1x8x256xbf16>
      %177 = vector.shape_cast %176 : vector<1x8x256xbf16> to vector<8x256xbf16>
      %c0_95 = arith.constant 0 : index
      %c0_96 = arith.constant 0 : index
      %c0_97 = arith.constant 0 : index
      %178 = vector.load %arg4[%c0_95, %c0_96, %c0_97] : memref<1x8x256xbf16, #tpu.memory_space<vmem>>, vector<1x8x256xbf16>
      %179 = vector.shape_cast %178 : vector<1x8x256xbf16> to vector<8x256xbf16>
      %c0_98 = arith.constant 0 : index
      %c0_99 = arith.constant 0 : index
      %c0_100 = arith.constant 0 : index
      %180 = vector.load %arg7[%c0_98, %c0_99, %c0_100] : memref<2x256x128xbf16, #tpu.memory_space<vmem>>, vector<1x256x128xbf16>
      %181 = vector.shape_cast %180 : vector<1x256x128xbf16> to vector<256x128xbf16>
      %cst_101 = arith.constant dense<0.000000e+00> : vector<8x128xf32>
      %182 = tpu.matmul %177, %181, %cst_101 {dimension_numbers = #tpu.dot_dimension_numbers<[1], [0], [0], [1], [0, 0, 1, 1], [], []>} : vector<8x256xbf16>, vector<256x128xbf16>, vector<8x128xf32> -> vector<8x128xf32>
      %c0_102 = arith.constant 0 : index
      %c0_103 = arith.constant 0 : index
      %c0_104 = arith.constant 0 : index
      %183 = vector.load %arg8[%c0_102, %c0_103, %c0_104] : memref<2x1x128xf32, #tpu.memory_space<vmem>>, vector<1x1x128xf32>
      %184 = vector.shape_cast %183 : vector<1x1x128xf32> to vector<1x128xf32>
      %185 = vector.broadcast %184 : vector<1x128xf32> to vector<8x128xf32>
      %186 = arith.addf %182, %185 : vector<8x128xf32>
      %187 = arith.truncf %186 : vector<8x128xf32> to vector<8x128xbf16>
      %c0_105 = arith.constant 0 : index
      %c0_106 = arith.constant 0 : index
      %c0_107 = arith.constant 0 : index
      %188 = vector.load %arg22[%c0_105, %c0_106, %c0_107] : memref<2x8x128xbf16, #tpu.memory_space<vmem>>, vector<1x8x128xbf16>
      %189 = vector.shape_cast %188 : vector<1x8x128xbf16> to vector<8x128xbf16>
      %190 = vector.shape_cast %187 : vector<8x128xbf16> to vector<1x8x128xbf16>
      tpu.vector_store %arg22[%c0_105, %c0_106, %c0_107], %190 {strides = array<i32>} : memref<2x8x128xbf16, #tpu.memory_space<vmem>>, vector<1x8x128xbf16>,
      %c0_108 = arith.constant 0 : index
      %c0_109 = arith.constant 0 : index
      %c0_110 = arith.constant 0 : index
      %191 = vector.load %arg9[%c0_108, %c0_109, %c0_110] : memref<2x256x128xbf16, #tpu.memory_space<vmem>>, vector<1x256x128xbf16>
      %192 = vector.shape_cast %191 : vector<1x256x128xbf16> to vector<256x128xbf16>
      %cst_111 = arith.constant dense<0.000000e+00> : vector<8x128xf32>
      %193 = tpu.matmul %179, %192, %cst_111 {dimension_numbers = #tpu.dot_dimension_numbers<[1], [0], [0], [1], [0, 0, 1, 1], [], []>} : vector<8x256xbf16>, vector<256x128xbf16>, vector<8x128xf32> -> vector<8x128xf32>
      %c0_112 = arith.constant 0 : index
      %c0_113 = arith.constant 0 : index
      %c0_114 = arith.constant 0 : index
      %194 = vector.load %arg10[%c0_112, %c0_113, %c0_114] : memref<2x1x128xf32, #tpu.memory_space<vmem>>, vector<1x1x128xf32>
      %195 = vector.shape_cast %194 : vector<1x1x128xf32> to vector<1x128xf32>
      %196 = vector.broadcast %195 : vector<1x128xf32> to vector<8x128xf32>
      %197 = arith.addf %193, %196 : vector<8x128xf32>
      %198 = arith.truncf %197 : vector<8x128xf32> to vector<8x128xbf16>
      %c0_115 = arith.constant 0 : index
      %c0_116 = arith.constant 0 : index
      %c0_117 = arith.constant 0 : index
      %199 = vector.load %arg23[%c0_115, %c0_116, %c0_117] : memref<2x8x128xbf16, #tpu.memory_space<vmem>>, vector<1x8x128xbf16>
      %200 = vector.shape_cast %199 : vector<1x8x128xbf16> to vector<8x128xbf16>
      %201 = vector.shape_cast %198 : vector<8x128xbf16> to vector<1x8x128xbf16>
      tpu.vector_store %arg23[%c0_115, %c0_116, %c0_117], %201 {strides = array<i32>} : memref<2x8x128xbf16, #tpu.memory_space<vmem>>, vector<1x8x128xbf16>,
      %c1_118 = arith.constant 1 : index
      %c0_119 = arith.constant 0 : index
      %c0_120 = arith.constant 0 : index
      %202 = vector.load %arg7[%c1_118, %c0_119, %c0_120] : memref<2x256x128xbf16, #tpu.memory_space<vmem>>, vector<1x256x128xbf16>
      %203 = vector.shape_cast %202 : vector<1x256x128xbf16> to vector<256x128xbf16>
      %cst_121 = arith.constant dense<0.000000e+00> : vector<8x128xf32>
      %204 = tpu.matmul %177, %203, %cst_121 {dimension_numbers = #tpu.dot_dimension_numbers<[1], [0], [0], [1], [0, 0, 1, 1], [], []>} : vector<8x256xbf16>, vector<256x128xbf16>, vector<8x128xf32> -> vector<8x128xf32>
      %c1_122 = arith.constant 1 : index
      %c0_123 = arith.constant 0 : index
      %c0_124 = arith.constant 0 : index
      %205 = vector.load %arg8[%c1_122, %c0_123, %c0_124] : memref<2x1x128xf32, #tpu.memory_space<vmem>>, vector<1x1x128xf32>
      %206 = vector.shape_cast %205 : vector<1x1x128xf32> to vector<1x128xf32>
      %207 = vector.broadcast %206 : vector<1x128xf32> to vector<8x128xf32>
      %208 = arith.addf %204, %207 : vector<8x128xf32>
      %209 = arith.truncf %208 : vector<8x128xf32> to vector<8x128xbf16>
      %c1_125 = arith.constant 1 : index
      %c0_126 = arith.constant 0 : index
      %c0_127 = arith.constant 0 : index
      %210 = vector.load %arg22[%c1_125, %c0_126, %c0_127] : memref<2x8x128xbf16, #tpu.memory_space<vmem>>, vector<1x8x128xbf16>
      %211 = vector.shape_cast %210 : vector<1x8x128xbf16> to vector<8x128xbf16>
      %212 = vector.shape_cast %209 : vector<8x128xbf16> to vector<1x8x128xbf16>
      tpu.vector_store %arg22[%c1_125, %c0_126, %c0_127], %212 {strides = array<i32>} : memref<2x8x128xbf16, #tpu.memory_space<vmem>>, vector<1x8x128xbf16>,
      %c1_128 = arith.constant 1 : index
      %c0_129 = arith.constant 0 : index
      %c0_130 = arith.constant 0 : index
      %213 = vector.load %arg9[%c1_128, %c0_129, %c0_130] : memref<2x256x128xbf16, #tpu.memory_space<vmem>>, vector<1x256x128xbf16>
      %214 = vector.shape_cast %213 : vector<1x256x128xbf16> to vector<256x128xbf16>
      %cst_131 = arith.constant dense<0.000000e+00> : vector<8x128xf32>
      %215 = tpu.matmul %179, %214, %cst_131 {dimension_numbers = #tpu.dot_dimension_numbers<[1], [0], [0], [1], [0, 0, 1, 1], [], []>} : vector<8x256xbf16>, vector<256x128xbf16>, vector<8x128xf32> -> vector<8x128xf32>
      %c1_132 = arith.constant 1 : index
      %c0_133 = arith.constant 0 : index
      %c0_134 = arith.constant 0 : index
      %216 = vector.load %arg10[%c1_132, %c0_133, %c0_134] : memref<2x1x128xf32, #tpu.memory_space<vmem>>, vector<1x1x128xf32>
      %217 = vector.shape_cast %216 : vector<1x1x128xf32> to vector<1x128xf32>
      %218 = vector.broadcast %217 : vector<1x128xf32> to vector<8x128xf32>
      %219 = arith.addf %215, %218 : vector<8x128xf32>
      %220 = arith.truncf %219 : vector<8x128xf32> to vector<8x128xbf16>
      %c1_135 = arith.constant 1 : index
      %c0_136 = arith.constant 0 : index
      %c0_137 = arith.constant 0 : index
      %221 = vector.load %arg23[%c1_135, %c0_136, %c0_137] : memref<2x8x128xbf16, #tpu.memory_space<vmem>>, vector<1x8x128xbf16>
      %222 = vector.shape_cast %221 : vector<1x8x128xbf16> to vector<8x128xbf16>
      %223 = vector.shape_cast %220 : vector<8x128xbf16> to vector<1x8x128xbf16>
      tpu.vector_store %arg23[%c1_135, %c0_136, %c0_137], %223 {strides = array<i32>} : memref<2x8x128xbf16, #tpu.memory_space<vmem>>, vector<1x8x128xbf16>,
    } else {
    }
    %c0 = arith.constant 0 : index
    %c0_1 = arith.constant 0 : index
    %c0_2 = arith.constant 0 : index
    %3 = vector.load %arg2[%c0, %c0_1, %c0_2] : memref<1x8x256xf32, #tpu.memory_space<vmem>>, vector<1x8x256xf32>
    %4 = vector.shape_cast %3 : vector<1x8x256xf32> to vector<8x256xf32>
    %c8_i32 = arith.constant 8 : i32
    %5 = arith.muli %arg1, %c8_i32 : i32
    %6 = tpu.assume_multiple %5, 8 : i32
    %c0_3 = arith.constant 0 : index
    %7 = arith.index_cast %6 : i32 to index
    %c0_4 = arith.constant 0 : index
    %8 = vector.load %arg3[%c0_3, %7, %c0_4] : memref<1x8x256xbf16, #tpu.memory_space<vmem>>, vector<1x8x256xbf16>
    %9 = vector.shape_cast %8 : vector<1x8x256xbf16> to vector<8x256xbf16>
    %cst = arith.constant 0.000000e+00 : f32
    %10 = vector.broadcast %cst : f32 to vector<8x256xf32>
    %c0_5 = arith.constant 0 : index
    %c0_6 = arith.constant 0 : index
    %c0_7 = arith.constant 0 : index
    %11 = vector.load %arg5[%c0_5, %c0_6, %c0_7] : memref<2x256x128xbf16, #tpu.memory_space<vmem>>, vector<1x256x128xbf16>
    %12 = vector.shape_cast %11 : vector<1x256x128xbf16> to vector<256x128xbf16>
    %cst_8 = arith.constant dense<0.000000e+00> : vector<8x128xf32>
    %13 = tpu.matmul %9, %12, %cst_8 {dimension_numbers = #tpu.dot_dimension_numbers<[1], [0], [0], [1], [0, 0, 1, 1], [], []>} : vector<8x256xbf16>, vector<256x128xbf16>, vector<8x128xf32> -> vector<8x128xf32>
    %c0_9 = arith.constant 0 : index
    %c0_10 = arith.constant 0 : index
    %c0_11 = arith.constant 0 : index
    %14 = vector.load %arg6[%c0_9, %c0_10, %c0_11] : memref<2x1x128xf32, #tpu.memory_space<vmem>>, vector<1x1x128xf32>
    %15 = vector.shape_cast %14 : vector<1x1x128xf32> to vector<1x128xf32>
    %16 = vector.broadcast %15 : vector<1x128xf32> to vector<8x128xf32>
    %17 = arith.addf %13, %16 : vector<8x128xf32>
    %cst_12 = arith.constant 0.0883883461 : f32
    %18 = vector.broadcast %cst_12 : f32 to vector<8x128xf32>
    %19 = arith.mulf %17, %18 : vector<8x128xf32>
    %20 = arith.truncf %19 : vector<8x128xf32> to vector<8x128xbf16>
    %cst_13 = arith.constant 0xFF800000 : f32
    %21 = vector.broadcast %cst_13 : f32 to vector<8x1xf32>
    %cst_14 = arith.constant 0.000000e+00 : f32
    %22 = vector.broadcast %cst_14 : f32 to vector<8x1xf32>
    %cst_15 = arith.constant 0.000000e+00 : f32
    %23 = vector.broadcast %cst_15 : f32 to vector<8x128xf32>
    %c0_i32_16 = arith.constant 0 : i32
    %24 = tpu.assume_multiple %c0_i32_16, 8 : i32
    %c0_17 = arith.constant 0 : index
    %25 = arith.index_cast %24 : i32 to index
    %c0_18 = arith.constant 0 : index
    %26 = vector.load %arg22[%c0_17, %25, %c0_18] : memref<2x8x128xbf16, #tpu.memory_space<vmem>>, vector<1x8x128xbf16>
    %27 = vector.shape_cast %26 : vector<1x8x128xbf16> to vector<8x128xbf16>
    %c0_19 = arith.constant 0 : index
    %28 = arith.index_cast %24 : i32 to index
    %c0_20 = arith.constant 0 : index
    %29 = vector.load %arg23[%c0_19, %28, %c0_20] : memref<2x8x128xbf16, #tpu.memory_space<vmem>>, vector<1x8x128xbf16>
    %30 = vector.shape_cast %29 : vector<1x8x128xbf16> to vector<8x128xbf16>
    %cst_21 = arith.constant dense<0.000000e+00> : vector<8x8xf32>
    %31 = tpu.matmul %20, %27, %cst_21 {dimension_numbers = #tpu.dot_dimension_numbers<[1], [1], [0], [0], [0, 0, 1, 0], [], []>} : vector<8x128xbf16>, vector<8x128xbf16>, vector<8x8xf32> -> vector<8x8xf32>
    %cst_22 = arith.constant dense<0xFF800000> : vector<8xf32>
    %32 = vector.multi_reduction <maximumf>, %31, %cst_22 [1] : vector<8x8xf32> to vector<8xf32>
    %33 = vector.shape_cast %32 : vector<8xf32> to vector<8x1xf32>
    %34 = arith.maximumf %21, %33 : vector<8x1xf32>
    %35 = arith.subf %21, %34 : vector<8x1xf32>
    %36 = math.exp %35 : vector<8x1xf32>
    %37 = vector.broadcast %34 : vector<8x1xf32> to vector<8x8xf32>
    %38 = arith.subf %31, %37 : vector<8x8xf32>
    %39 = math.exp %38 : vector<8x8xf32>
    %40 = arith.mulf %36, %22 : vector<8x1xf32>
    %cst_23 = arith.constant dense<0.000000e+00> : vector<8xf32>
    %41 = vector.multi_reduction <add>, %39, %cst_23 [1] : vector<8x8xf32> to vector<8xf32>
    %42 = vector.shape_cast %41 : vector<8xf32> to vector<8x1xf32>
    %43 = arith.addf %40, %42 : vector<8x1xf32>
    %44 = vector.broadcast %36 : vector<8x1xf32> to vector<8x128xf32>
    %45 = arith.mulf %44, %23 : vector<8x128xf32>
    %46 = arith.truncf %39 : vector<8x8xf32> to vector<8x8xbf16>
    %cst_24 = arith.constant dense<0.000000e+00> : vector<8x128xf32>
    %47 = tpu.matmul %46, %30, %cst_24 {dimension_numbers = #tpu.dot_dimension_numbers<[1], [0], [0], [1], [0, 0, 1, 1], [], []>} : vector<8x8xbf16>, vector<8x128xbf16>, vector<8x128xf32> -> vector<8x128xf32>
    %48 = arith.addf %45, %47 : vector<8x128xf32>
    %cst_25 = arith.constant 1.000000e+00 : f32
    %49 = vector.broadcast %cst_25 : f32 to vector<8x1xf32>
    %50 = arith.divf %49, %43 : vector<8x1xf32>
    %51 = vector.broadcast %50 : vector<8x1xf32> to vector<8x128xf32>
    %52 = arith.mulf %48, %51 : vector<8x128xf32>
    %53 = arith.truncf %52 : vector<8x128xf32> to vector<8x128xbf16>
    %c0_26 = arith.constant 0 : index
    %c0_27 = arith.constant 0 : index
    %c0_28 = arith.constant 0 : index
    %54 = vector.load %arg11[%c0_26, %c0_27, %c0_28] : memref<2x128x256xbf16, #tpu.memory_space<vmem>>, vector<1x128x256xbf16>
    %55 = vector.shape_cast %54 : vector<1x128x256xbf16> to vector<128x256xbf16>
    %cst_29 = arith.constant dense<0.000000e+00> : vector<8x256xf32>
    %56 = tpu.matmul %53, %55, %cst_29 {dimension_numbers = #tpu.dot_dimension_numbers<[1], [0], [0], [1], [0, 0, 1, 1], [], []>} : vector<8x128xbf16>, vector<128x256xbf16>, vector<8x256xf32> -> vector<8x256xf32>
    %57 = arith.addf %10, %56 : vector<8x256xf32>
    %c1 = arith.constant 1 : index
    %c0_30 = arith.constant 0 : index
    %c0_31 = arith.constant 0 : index
    %58 = vector.load %arg5[%c1, %c0_30, %c0_31] : memref<2x256x128xbf16, #tpu.memory_space<vmem>>, vector<1x256x128xbf16>
    %59 = vector.shape_cast %58 : vector<1x256x128xbf16> to vector<256x128xbf16>
    %cst_32 = arith.constant dense<0.000000e+00> : vector<8x128xf32>
    %60 = tpu.matmul %9, %59, %cst_32 {dimension_numbers = #tpu.dot_dimension_numbers<[1], [0], [0], [1], [0, 0, 1, 1], [], []>} : vector<8x256xbf16>, vector<256x128xbf16>, vector<8x128xf32> -> vector<8x128xf32>
    %c1_33 = arith.constant 1 : index
    %c0_34 = arith.constant 0 : index
    %c0_35 = arith.constant 0 : index
    %61 = vector.load %arg6[%c1_33, %c0_34, %c0_35] : memref<2x1x128xf32, #tpu.memory_space<vmem>>, vector<1x1x128xf32>
    %62 = vector.shape_cast %61 : vector<1x1x128xf32> to vector<1x128xf32>
    %63 = vector.broadcast %62 : vector<1x128xf32> to vector<8x128xf32>
    %64 = arith.addf %60, %63 : vector<8x128xf32>
    %cst_36 = arith.constant 0.0883883461 : f32
    %65 = vector.broadcast %cst_36 : f32 to vector<8x128xf32>
    %66 = arith.mulf %64, %65 : vector<8x128xf32>
    %67 = arith.truncf %66 : vector<8x128xf32> to vector<8x128xbf16>
    %cst_37 = arith.constant 0xFF800000 : f32
    %68 = vector.broadcast %cst_37 : f32 to vector<8x1xf32>
    %cst_38 = arith.constant 0.000000e+00 : f32
    %69 = vector.broadcast %cst_38 : f32 to vector<8x1xf32>
    %cst_39 = arith.constant 0.000000e+00 : f32
    %70 = vector.broadcast %cst_39 : f32 to vector<8x128xf32>
    %c0_i32_40 = arith.constant 0 : i32
    %71 = tpu.assume_multiple %c0_i32_40, 8 : i32
    %c1_41 = arith.constant 1 : index
    %72 = arith.index_cast %71 : i32 to index
    %c0_42 = arith.constant 0 : index
    %73 = vector.load %arg22[%c1_41, %72, %c0_42] : memref<2x8x128xbf16, #tpu.memory_space<vmem>>, vector<1x8x128xbf16>
    %74 = vector.shape_cast %73 : vector<1x8x128xbf16> to vector<8x128xbf16>
    %c1_43 = arith.constant 1 : index
    %75 = arith.index_cast %71 : i32 to index
    %c0_44 = arith.constant 0 : index
    %76 = vector.load %arg23[%c1_43, %75, %c0_44] : memref<2x8x128xbf16, #tpu.memory_space<vmem>>, vector<1x8x128xbf16>
    %77 = vector.shape_cast %76 : vector<1x8x128xbf16> to vector<8x128xbf16>
    %cst_45 = arith.constant dense<0.000000e+00> : vector<8x8xf32>
    %78 = tpu.matmul %67, %74, %cst_45 {dimension_numbers = #tpu.dot_dimension_numbers<[1], [1], [0], [0], [0, 0, 1, 0], [], []>} : vector<8x128xbf16>, vector<8x128xbf16>, vector<8x8xf32> -> vector<8x8xf32>
    %cst_46 = arith.constant dense<0xFF800000> : vector<8xf32>
    %79 = vector.multi_reduction <maximumf>, %78, %cst_46 [1] : vector<8x8xf32> to vector<8xf32>
    %80 = vector.shape_cast %79 : vector<8xf32> to vector<8x1xf32>
    %81 = arith.maximumf %68, %80 : vector<8x1xf32>
    %82 = arith.subf %68, %81 : vector<8x1xf32>
    %83 = math.exp %82 : vector<8x1xf32>
    %84 = vector.broadcast %81 : vector<8x1xf32> to vector<8x8xf32>
    %85 = arith.subf %78, %84 : vector<8x8xf32>
    %86 = math.exp %85 : vector<8x8xf32>
    %87 = arith.mulf %83, %69 : vector<8x1xf32>
    %cst_47 = arith.constant dense<0.000000e+00> : vector<8xf32>
    %88 = vector.multi_reduction <add>, %86, %cst_47 [1] : vector<8x8xf32> to vector<8xf32>
    %89 = vector.shape_cast %88 : vector<8xf32> to vector<8x1xf32>
    %90 = arith.addf %87, %89 : vector<8x1xf32>
    %91 = vector.broadcast %83 : vector<8x1xf32> to vector<8x128xf32>
    %92 = arith.mulf %91, %70 : vector<8x128xf32>
    %93 = arith.truncf %86 : vector<8x8xf32> to vector<8x8xbf16>
    %cst_48 = arith.constant dense<0.000000e+00> : vector<8x128xf32>
    %94 = tpu.matmul %93, %77, %cst_48 {dimension_numbers = #tpu.dot_dimension_numbers<[1], [0], [0], [1], [0, 0, 1, 1], [], []>} : vector<8x8xbf16>, vector<8x128xbf16>, vector<8x128xf32> -> vector<8x128xf32>
    %95 = arith.addf %92, %94 : vector<8x128xf32>
    %cst_49 = arith.constant 1.000000e+00 : f32
    %96 = vector.broadcast %cst_49 : f32 to vector<8x1xf32>
    %97 = arith.divf %96, %90 : vector<8x1xf32>
    %98 = vector.broadcast %97 : vector<8x1xf32> to vector<8x128xf32>
    %99 = arith.mulf %95, %98 : vector<8x128xf32>
    %100 = arith.truncf %99 : vector<8x128xf32> to vector<8x128xbf16>
    %c1_50 = arith.constant 1 : index
    %c0_51 = arith.constant 0 : index
    %c0_52 = arith.constant 0 : index
    %101 = vector.load %arg11[%c1_50, %c0_51, %c0_52] : memref<2x128x256xbf16, #tpu.memory_space<vmem>>, vector<1x128x256xbf16>
    %102 = vector.shape_cast %101 : vector<1x128x256xbf16> to vector<128x256xbf16>
    %cst_53 = arith.constant dense<0.000000e+00> : vector<8x256xf32>
    %103 = tpu.matmul %100, %102, %cst_53 {dimension_numbers = #tpu.dot_dimension_numbers<[1], [0], [0], [1], [0, 0, 1, 1], [], []>} : vector<8x128xbf16>, vector<128x256xbf16>, vector<8x256xf32> -> vector<8x256xf32>
    %104 = arith.addf %57, %103 : vector<8x256xf32>
    %c0_54 = arith.constant 0 : index
    %c0_55 = arith.constant 0 : index
    %105 = vector.load %arg12[%c0_54, %c0_55] : memref<1x256xf32, #tpu.memory_space<vmem>>, vector<1x256xf32>
    %106 = vector.broadcast %105 : vector<1x256xf32> to vector<8x256xf32>
    %107 = arith.addf %104, %106 : vector<8x256xf32>
    %108 = arith.addf %4, %107 : vector<8x256xf32>
    %c0_56 = arith.constant 0 : index
    %c0_57 = arith.constant 0 : index
    %109 = vector.load %arg13[%c0_56, %c0_57] : memref<1x256xf32, #tpu.memory_space<vmem>>, vector<1x256xf32>
    %c0_58 = arith.constant 0 : index
    %c0_59 = arith.constant 0 : index
    %110 = vector.load %arg14[%c0_58, %c0_59] : memref<1x256xf32, #tpu.memory_space<vmem>>, vector<1x256xf32>
    %cst_60 = arith.constant dense<0.000000e+00> : vector<8xf32>
    %111 = vector.multi_reduction <add>, %108, %cst_60 [1] : vector<8x256xf32> to vector<8xf32>
    %112 = vector.shape_cast %111 : vector<8xf32> to vector<8x1xf32>
    %cst_61 = arith.constant 2.560000e+02 : f32
    %113 = vector.broadcast %cst_61 : f32 to vector<8x1xf32>
    %114 = arith.divf %112, %113 : vector<8x1xf32>
    %115 = vector.broadcast %114 : vector<8x1xf32> to vector<8x256xf32>
    %116 = arith.subf %108, %115 : vector<8x256xf32>
    %117 = arith.mulf %116, %116 : vector<8x256xf32>
    %cst_62 = arith.constant dense<0.000000e+00> : vector<8xf32>
    %118 = vector.multi_reduction <add>, %117, %cst_62 [1] : vector<8x256xf32> to vector<8xf32>
    %119 = vector.shape_cast %118 : vector<8xf32> to vector<8x1xf32>
    %cst_63 = arith.constant 2.560000e+02 : f32
    %120 = vector.broadcast %cst_63 : f32 to vector<8x1xf32>
    %121 = arith.divf %119, %120 : vector<8x1xf32>
    %cst_64 = arith.constant 9.99999974E-6 : f32
    %122 = vector.broadcast %cst_64 : f32 to vector<8x1xf32>
    %123 = arith.addf %121, %122 : vector<8x1xf32>
    %124 = math.rsqrt %123 : vector<8x1xf32>
    %125 = vector.broadcast %124 : vector<8x1xf32> to vector<8x256xf32>
    %126 = arith.mulf %116, %125 : vector<8x256xf32>
    %127 = vector.broadcast %109 : vector<1x256xf32> to vector<8x256xf32>
    %128 = arith.mulf %126, %127 : vector<8x256xf32>
    %129 = vector.broadcast %110 : vector<1x256xf32> to vector<8x256xf32>
    %130 = arith.addf %128, %129 : vector<8x256xf32>
    %131 = arith.truncf %130 : vector<8x256xf32> to vector<8x256xbf16>
    %cst_65 = arith.constant 0.000000e+00 : f32
    %132 = vector.broadcast %cst_65 : f32 to vector<8x256xf32>
    %c0_66 = arith.constant 0 : index
    %c0_67 = arith.constant 0 : index
    %c0_68 = arith.constant 0 : index
    %133 = vector.load %arg15[%c0_66, %c0_67, %c0_68] : memref<1x256x256xbf16, #tpu.memory_space<vmem>>, vector<1x256x256xbf16>
    %134 = vector.shape_cast %133 : vector<1x256x256xbf16> to vector<256x256xbf16>
    %cst_69 = arith.constant dense<0.000000e+00> : vector<8x256xf32>
    %135 = tpu.matmul %131, %134, %cst_69 {dimension_numbers = #tpu.dot_dimension_numbers<[1], [0], [0], [1], [0, 0, 1, 1], [], []>} : vector<8x256xbf16>, vector<256x256xbf16>, vector<8x256xf32> -> vector<8x256xf32>
    %c0_70 = arith.constant 0 : index
    %c0_71 = arith.constant 0 : index
    %c0_72 = arith.constant 0 : index
    %136 = vector.load %arg16[%c0_70, %c0_71, %c0_72] : memref<1x1x256xf32, #tpu.memory_space<vmem>>, vector<1x1x256xf32>
    %137 = vector.shape_cast %136 : vector<1x1x256xf32> to vector<1x256xf32>
    %138 = vector.broadcast %137 : vector<1x256xf32> to vector<8x256xf32>
    %139 = arith.addf %135, %138 : vector<8x256xf32>
    %cst_73 = arith.constant 0.000000e+00 : f32
    %140 = vector.broadcast %cst_73 : f32 to vector<8x256xf32>
    %141 = arith.maximumf %139, %140 : vector<8x256xf32>
    %142 = arith.truncf %141 : vector<8x256xf32> to vector<8x256xbf16>
    %c0_74 = arith.constant 0 : index
    %c0_75 = arith.constant 0 : index
    %c0_76 = arith.constant 0 : index
    %143 = vector.load %arg17[%c0_74, %c0_75, %c0_76] : memref<1x256x256xbf16, #tpu.memory_space<vmem>>, vector<1x256x256xbf16>
    %144 = vector.shape_cast %143 : vector<1x256x256xbf16> to vector<256x256xbf16>
    %cst_77 = arith.constant dense<0.000000e+00> : vector<8x256xf32>
    %145 = tpu.matmul %142, %144, %cst_77 {dimension_numbers = #tpu.dot_dimension_numbers<[1], [0], [0], [1], [0, 0, 1, 1], [], []>} : vector<8x256xbf16>, vector<256x256xbf16>, vector<8x256xf32> -> vector<8x256xf32>
    %146 = arith.addf %132, %145 : vector<8x256xf32>
    %c0_78 = arith.constant 0 : index
    %c0_79 = arith.constant 0 : index
    %147 = vector.load %arg18[%c0_78, %c0_79] : memref<1x256xf32, #tpu.memory_space<vmem>>, vector<1x256xf32>
    %148 = vector.broadcast %147 : vector<1x256xf32> to vector<8x256xf32>
    %149 = arith.addf %146, %148 : vector<8x256xf32>
    %150 = arith.addf %130, %149 : vector<8x256xf32>
    %c0_80 = arith.constant 0 : index
    %c0_81 = arith.constant 0 : index
    %151 = vector.load %arg19[%c0_80, %c0_81] : memref<1x256xf32, #tpu.memory_space<vmem>>, vector<1x256xf32>
    %c0_82 = arith.constant 0 : index
    %c0_83 = arith.constant 0 : index
    %152 = vector.load %arg20[%c0_82, %c0_83] : memref<1x256xf32, #tpu.memory_space<vmem>>, vector<1x256xf32>
    %cst_84 = arith.constant dense<0.000000e+00> : vector<8xf32>
    %153 = vector.multi_reduction <add>, %150, %cst_84 [1] : vector<8x256xf32> to vector<8xf32>
    %154 = vector.shape_cast %153 : vector<8xf32> to vector<8x1xf32>
    %cst_85 = arith.constant 2.560000e+02 : f32
    %155 = vector.broadcast %cst_85 : f32 to vector<8x1xf32>
    %156 = arith.divf %154, %155 : vector<8x1xf32>
    %157 = vector.broadcast %156 : vector<8x1xf32> to vector<8x256xf32>
    %158 = arith.subf %150, %157 : vector<8x256xf32>
    %159 = arith.mulf %158, %158 : vector<8x256xf32>
    %cst_86 = arith.constant dense<0.000000e+00> : vector<8xf32>
    %160 = vector.multi_reduction <add>, %159, %cst_86 [1] : vector<8x256xf32> to vector<8xf32>
    %161 = vector.shape_cast %160 : vector<8xf32> to vector<8x1xf32>
    %cst_87 = arith.constant 2.560000e+02 : f32
    %162 = vector.broadcast %cst_87 : f32 to vector<8x1xf32>
    %163 = arith.divf %161, %162 : vector<8x1xf32>
    %cst_88 = arith.constant 9.99999974E-6 : f32
    %164 = vector.broadcast %cst_88 : f32 to vector<8x1xf32>
    %165 = arith.addf %163, %164 : vector<8x1xf32>
    %166 = math.rsqrt %165 : vector<8x1xf32>
    %167 = vector.broadcast %166 : vector<8x1xf32> to vector<8x256xf32>
    %168 = arith.mulf %158, %167 : vector<8x256xf32>
    %169 = vector.broadcast %151 : vector<1x256xf32> to vector<8x256xf32>
    %170 = arith.mulf %168, %169 : vector<8x256xf32>
    %171 = vector.broadcast %152 : vector<1x256xf32> to vector<8x256xf32>
    %172 = arith.addf %170, %171 : vector<8x256xf32>
    %c0_89 = arith.constant 0 : index
    %c0_90 = arith.constant 0 : index
    %c0_91 = arith.constant 0 : index
    %173 = vector.load %arg21[%c0_89, %c0_90, %c0_91] : memref<1x8x256xf32, #tpu.memory_space<vmem>>, vector<1x8x256xf32>
    %174 = vector.shape_cast %173 : vector<1x8x256xf32> to vector<8x256xf32>
    %175 = vector.shape_cast %172 : vector<8x256xf32> to vector<1x8x256xf32>
    tpu.vector_store %arg21[%c0_89, %c0_90, %c0_91], %175 {strides = array<i32>} : memref<1x8x256xf32, #tpu.memory_space<vmem>>, vector<1x8x256xf32>,
    return
  }
  func.func @transform_0(%arg0: i32, %arg1: i32) -> (i32, i32, i32) {
    %c0_i32 = arith.constant 0 : i32
    %c0_i32_0 = arith.constant 0 : i32
    return %arg0, %arg1, %c0_i32 : i32, i32, i32
  }
  func.func @transform_1(%arg0: i32, %arg1: i32) -> (i32, i32, i32) {
    %c0_i32 = arith.constant 0 : i32
    %c0_i32_0 = arith.constant 0 : i32
    %c0_i32_1 = arith.constant 0 : i32
    return %arg0, %c0_i32, %c0_i32_0 : i32, i32, i32
  }
  func.func @transform_2(%arg0: i32, %arg1: i32) -> (i32, i32, i32) {
    %c0_i32 = arith.constant 0 : i32
    %c0_i32_0 = arith.constant 0 : i32
    %c0_i32_1 = arith.constant 0 : i32
    return %arg0, %c0_i32, %c0_i32_0 : i32, i32, i32
  }
  func.func @transform_3(%arg0: i32, %arg1: i32) -> (i32, i32, i32) {
    %c0_i32 = arith.constant 0 : i32
    %c0_i32_0 = arith.constant 0 : i32
    %c0_i32_1 = arith.constant 0 : i32
    %c0_i32_2 = arith.constant 0 : i32
    return %c0_i32, %c0_i32_0, %c0_i32_1 : i32, i32, i32
  }
  func.func @transform_4(%arg0: i32, %arg1: i32) -> (i32, i32, i32) {
    %c0_i32 = arith.constant 0 : i32
    %c0_i32_0 = arith.constant 0 : i32
    %c0_i32_1 = arith.constant 0 : i32
    %c0_i32_2 = arith.constant 0 : i32
    return %c0_i32, %c0_i32_0, %c0_i32_1 : i32, i32, i32
  }
  func.func @transform_5(%arg0: i32, %arg1: i32) -> (i32, i32, i32) {
    %c0_i32 = arith.constant 0 : i32
    %c0_i32_0 = arith.constant 0 : i32
    %c0_i32_1 = arith.constant 0 : i32
    %c0_i32_2 = arith.constant 0 : i32
    return %c0_i32, %c0_i32_0, %c0_i32_1 : i32, i32, i32
  }
  func.func @transform_6(%arg0: i32, %arg1: i32) -> (i32, i32, i32) {
    %c0_i32 = arith.constant 0 : i32
    %c0_i32_0 = arith.constant 0 : i32
    %c0_i32_1 = arith.constant 0 : i32
    %c0_i32_2 = arith.constant 0 : i32
    return %c0_i32, %c0_i32_0, %c0_i32_1 : i32, i32, i32
  }
  func.func @transform_7(%arg0: i32, %arg1: i32) -> (i32, i32, i32) {
    %c0_i32 = arith.constant 0 : i32
    %c0_i32_0 = arith.constant 0 : i32
    %c0_i32_1 = arith.constant 0 : i32
    %c0_i32_2 = arith.constant 0 : i32
    return %c0_i32, %c0_i32_0, %c0_i32_1 : i32, i32, i32
  }
  func.func @transform_8(%arg0: i32, %arg1: i32) -> (i32, i32, i32) {
    %c0_i32 = arith.constant 0 : i32
    %c0_i32_0 = arith.constant 0 : i32
    %c0_i32_1 = arith.constant 0 : i32
    %c0_i32_2 = arith.constant 0 : i32
    return %c0_i32, %c0_i32_0, %c0_i32_1 : i32, i32, i32
  }
  func.func @transform_9(%arg0: i32, %arg1: i32) -> (i32, i32, i32) {
    %c0_i32 = arith.constant 0 : i32
    %c0_i32_0 = arith.constant 0 : i32
    %c0_i32_1 = arith.constant 0 : i32
    %c0_i32_2 = arith.constant 0 : i32
    return %c0_i32, %c0_i32_0, %c0_i32_1 : i32, i32, i32
  }
  func.func @transform_10(%arg0: i32, %arg1: i32) -> (i32, i32) {
    %c0_i32 = arith.constant 0 : i32
    %c0_i32_0 = arith.constant 0 : i32
    %c0_i32_1 = arith.constant 0 : i32
    return %c0_i32, %c0_i32_0 : i32, i32
  }
  func.func @transform_11(%arg0: i32, %arg1: i32) -> (i32, i32) {
    %c0_i32 = arith.constant 0 : i32
    %c0_i32_0 = arith.constant 0 : i32
    %c0_i32_1 = arith.constant 0 : i32
    return %c0_i32, %c0_i32_0 : i32, i32
  }
  func.func @transform_12(%arg0: i32, %arg1: i32) -> (i32, i32) {
    %c0_i32 = arith.constant 0 : i32
    %c0_i32_0 = arith.constant 0 : i32
    %c0_i32_1 = arith.constant 0 : i32
    return %c0_i32, %c0_i32_0 : i32, i32
  }
  func.func @transform_13(%arg0: i32, %arg1: i32) -> (i32, i32, i32) {
    %c0_i32 = arith.constant 0 : i32
    %c0_i32_0 = arith.constant 0 : i32
    %c0_i32_1 = arith.constant 0 : i32
    %c0_i32_2 = arith.constant 0 : i32
    return %c0_i32, %c0_i32_0, %c0_i32_1 : i32, i32, i32
  }
  func.func @transform_14(%arg0: i32, %arg1: i32) -> (i32, i32, i32) {
    %c0_i32 = arith.constant 0 : i32
    %c0_i32_0 = arith.constant 0 : i32
    %c0_i32_1 = arith.constant 0 : i32
    %c0_i32_2 = arith.constant 0 : i32
    return %c0_i32, %c0_i32_0, %c0_i32_1 : i32, i32, i32
  }
  func.func @transform_15(%arg0: i32, %arg1: i32) -> (i32, i32, i32) {
    %c0_i32 = arith.constant 0 : i32
    %c0_i32_0 = arith.constant 0 : i32
    %c0_i32_1 = arith.constant 0 : i32
    %c0_i32_2 = arith.constant 0 : i32
    return %c0_i32, %c0_i32_0, %c0_i32_1 : i32, i32, i32
  }
  func.func @transform_16(%arg0: i32, %arg1: i32) -> (i32, i32) {
    %c0_i32 = arith.constant 0 : i32
    %c0_i32_0 = arith.constant 0 : i32
    %c0_i32_1 = arith.constant 0 : i32
    return %c0_i32, %c0_i32_0 : i32, i32
  }
  func.func @transform_17(%arg0: i32, %arg1: i32) -> (i32, i32) {
    %c0_i32 = arith.constant 0 : i32
    %c0_i32_0 = arith.constant 0 : i32
    %c0_i32_1 = arith.constant 0 : i32
    return %c0_i32, %c0_i32_0 : i32, i32
  }
  func.func @transform_18(%arg0: i32, %arg1: i32) -> (i32, i32) {
    %c0_i32 = arith.constant 0 : i32
    %c0_i32_0 = arith.constant 0 : i32
    %c0_i32_1 = arith.constant 0 : i32
    return %c0_i32, %c0_i32_0 : i32, i32
  }
  func.func @transform_19(%arg0: i32, %arg1: i32) -> (i32, i32, i32) {
    %c0_i32 = arith.constant 0 : i32
    %c0_i32_0 = arith.constant 0 : i32
    return %arg0, %arg1, %c0_i32 : i32, i32, i32
  }
}

module attributes {stable_mosaic.version = 11 : i64} {
  func.func @encoder_layer_kernel(%arg0: i32, %arg1: i32, %arg2: memref<1x8x256xf32, #tpu.memory_space<vmem>>, %arg3: memref<1x8x256xbf16, #tpu.memory_space<vmem>>, %arg4: memref<1x8x256xbf16, #tpu.memory_space<vmem>>, %arg5: memref<2x256x128xbf16, #tpu.memory_space<vmem>>, %arg6: memref<2x1x128xf32, #tpu.memory_space<vmem>>, %arg7: memref<2x256x128xbf16, #tpu.memory_space<vmem>>, %arg8: memref<2x1x128xf32, #tpu.memory_space<vmem>>, %arg9: memref<2x256x128xbf16, #tpu.memory_space<vmem>>, %arg10: memref<2x1x128xf32, #tpu.memory_space<vmem>>, %arg11: memref<2x128x256xbf16, #tpu.memory_space<vmem>>, %arg12: memref<1x256xf32, #tpu.memory_space<vmem>>, %arg13: memref<1x256xf32, #tpu.memory_space<vmem>>, %arg14: memref<1x256xf32, #tpu.memory_space<vmem>>, %arg15: memref<1x256x256xbf16, #tpu.memory_space<vmem>>, %arg16: memref<1x1x256xf32, #tpu.memory_space<vmem>>, %arg17: memref<1x256x256xbf16, #tpu.memory_space<vmem>>, %arg18: memref<1x256xf32, #tpu.memory_space<vmem>>, %arg19: memref<1x256xf32, #tpu.memory_space<vmem>>, %arg20: memref<1x256xf32, #tpu.memory_space<vmem>>, %arg21: memref<1x8x256xf32, #tpu.memory_space<vmem>>, %arg22: memref<2x8x128xbf16, #tpu.memory_space<vmem>>, %arg23: memref<2x8x128xbf16, #tpu.memory_space<vmem>>) attributes {dimension_semantics = [#tpu.dimension_semantics<parallel>, #tpu.dimension_semantics<arbitrary>], iteration_bounds = array<i64: 2, 1>, scalar_prefetch = 0 : i64, scratch_operands = 2 : i64, tpu.core_type = #tpu.core_type<tc>, window_params = [{transform_indices = @transform_0, window_bounds = array<i64: 1, 8, 256>}, {transform_indices = @transform_1, window_bounds = array<i64: 1, 8, 256>}, {transform_indices = @transform_2, window_bounds = array<i64: 1, 8, 256>}, {pipeline_mode = #tpu.pipeline_mode<synchronous>, transform_indices = @transform_3, window_bounds = array<i64: 2, 256, 128>}, {pipeline_mode = #tpu.pipeline_mode<synchronous>, transform_indices = @transform_4, window_bounds = array<i64: 2, 1, 128>}, {pipeline_mode = #tpu.pipeline_mode<synchronous>, transform_indices = @transform_5, window_bounds = array<i64: 2, 256, 128>}, {pipeline_mode = #tpu.pipeline_mode<synchronous>, transform_indices = @transform_6, window_bounds = array<i64: 2, 1, 128>}, {pipeline_mode = #tpu.pipeline_mode<synchronous>, transform_indices = @transform_7, window_bounds = array<i64: 2, 256, 128>}, {pipeline_mode = #tpu.pipeline_mode<synchronous>, transform_indices = @transform_8, window_bounds = array<i64: 2, 1, 128>}, {pipeline_mode = #tpu.pipeline_mode<synchronous>, transform_indices = @transform_9, window_bounds = array<i64: 2, 128, 256>}, {pipeline_mode = #tpu.pipeline_mode<synchronous>, transform_indices = @transform_10, window_bounds = array<i64: 1, 256>}, {pipeline_mode = #tpu.pipeline_mode<synchronous>, transform_indices = @transform_11, window_bounds = array<i64: 1, 256>}, {pipeline_mode = #tpu.pipeline_mode<synchronous>, transform_indices = @transform_12, window_bounds = array<i64: 1, 256>}, {pipeline_mode = #tpu.pipeline_mode<synchronous>, transform_indices = @transform_13, window_bounds = array<i64: 1, 256, 256>}, {pipeline_mode = #tpu.pipeline_mode<synchronous>, transform_indices = @transform_14, window_bounds = array<i64: 1, 1, 256>}, {pipeline_mode = #tpu.pipeline_mode<synchronous>, transform_indices = @transform_15, window_bounds = array<i64: 1, 256, 256>}, {pipeline_mode = #tpu.pipeline_mode<synchronous>, transform_indices = @transform_16, window_bounds = array<i64: 1, 256>}, {pipeline_mode = #tpu.pipeline_mode<synchronous>, transform_indices = @transform_17, window_bounds = array<i64: 1, 256>}, {pipeline_mode = #tpu.pipeline_mode<synchronous>, transform_indices = @transform_18, window_bounds = array<i64: 1, 256>}, {transform_indices = @transform_19, window_bounds = array<i64: 1, 8, 256>}]} {
    %c0_i32 = arith.constant 0 : i32
    %0 = arith.cmpi eq, %arg1, %c0_i32 : i32
    %1 = arith.extui %0 : i1 to i32
    %c0_i32_0 = arith.constant 0 : i32
    %2 = arith.cmpi ne, %1, %c0_i32_0 : i32
    scf.if %2 {
      %c0_92 = arith.constant 0 : index
      %c0_93 = arith.constant 0 : index
      %c0_94 = arith.constant 0 : index
      %176 = vector.load %arg3[%c0_92, %c0_93, %c0_94] : memref<1x8x256xbf16, #tpu.memory_space<vmem>>, vector<1x8x256xbf16>
      %177 = vector.shape_cast %176 : vector<1x8x256xbf16> to vector<8x256xbf16>
      %c0_95 = arith.constant 0 : index
      %c0_96 = arith.constant 0 : index
      %c0_97 = arith.constant 0 : index
      %178 = vector.load %arg4[%c0_95, %c0_96, %c0_97] : memref<1x8x256xbf16, #tpu.memory_space<vmem>>, vector<1x8x256xbf16>
      %179 = vector.shape_cast %178 : vector<1x8x256xbf16> to vector<8x256xbf16>
      %c0_98 = arith.constant 0 : index
      %c0_99 = arith.constant 0 : index
      %c0_100 = arith.constant 0 : index
      %180 = vector.load %arg7[%c0_98, %c0_99, %c0_100] : memref<2x256x128xbf16, #tpu.memory_space<vmem>>, vector<1x256x128xbf16>
      %181 = vector.shape_cast %180 : vector<1x256x128xbf16> to vector<256x128xbf16>
      %cst_101 = arith.constant dense<0.000000e+00> : vector<8x128xf32>
      %182 = tpu.matmul %177, %181, %cst_101 {dimension_numbers = #tpu.dot_dimension_numbers<[1], [0], [0], [1], [0, 0, 1, 1], [], []>} : vector<8x256xbf16>, vector<256x128xbf16>, vector<8x128xf32> -> vector<8x128xf32>
      %c0_102 = arith.constant 0 : index
      %c0_103 = arith.constant 0 : index
      %c0_104 = arith.constant 0 : index
      %183 = vector.load %arg8[%c0_102, %c0_103, %c0_104] : memref<2x1x128xf32, #tpu.memory_space<vmem>>, vector<1x1x128xf32>
      %184 = vector.shape_cast %183 : vector<1x1x128xf32> to vector<1x128xf32>
      %185 = vector.broadcast %184 : vector<1x128xf32> to vector<8x128xf32>
      %186 = arith.addf %182, %185 : vector<8x128xf32>
      %187 = arith.truncf %186 : vector<8x128xf32> to vector<8x128xbf16>
      %c0_105 = arith.constant 0 : index
      %c0_106 = arith.constant 0 : index
      %c0_107 = arith.constant 0 : index
      %188 = vector.load %arg22[%c0_105, %c0_106, %c0_107] : memref<2x8x128xbf16, #tpu.memory_space<vmem>>, vector<1x8x128xbf16>
      %189 = vector.shape_cast %188 : vector<1x8x128xbf16> to vector<8x128xbf16>
      %190 = vector.shape_cast %187 : vector<8x128xbf16> to vector<1x8x128xbf16>
      tpu.vector_store %arg22[%c0_105, %c0_106, %c0_107], %190 {strides = array<i32>} : memref<2x8x128xbf16, #tpu.memory_space<vmem>>, vector<1x8x128xbf16>,
      %c0_108 = arith.constant 0 : index
      %c0_109 = arith.constant 0 : index
      %c0_110 = arith.constant 0 : index
      %191 = vector.load %arg9[%c0_108, %c0_109, %c0_110] : memref<2x256x128xbf16, #tpu.memory_space<vmem>>, vector<1x256x128xbf16>
      %192 = vector.shape_cast %191 : vector<1x256x128xbf16> to vector<256x128xbf16>
      %cst_111 = arith.constant dense<0.000000e+00> : vector<8x128xf32>
      %193 = tpu.matmul %179, %192, %cst_111 {dimension_numbers = #tpu.dot_dimension_numbers<[1], [0], [0], [1], [0, 0, 1, 1], [], []>} : vector<8x256xbf16>, vector<256x128xbf16>, vector<8x128xf32> -> vector<8x128xf32>
      %c0_112 = arith.constant 0 : index
      %c0_113 = arith.constant 0 : index
      %c0_114 = arith.constant 0 : index
      %194 = vector.load %arg10[%c0_112, %c0_113, %c0_114] : memref<2x1x128xf32, #tpu.memory_space<vmem>>, vector<1x1x128xf32>
      %195 = vector.shape_cast %194 : vector<1x1x128xf32> to vector<1x128xf32>
      %196 = vector.broadcast %195 : vector<1x128xf32> to vector<8x128xf32>
      %197 = arith.addf %193, %196 : vector<8x128xf32>
      %198 = arith.truncf %197 : vector<8x128xf32> to vector<8x128xbf16>
      %c0_115 = arith.constant 0 : index
      %c0_116 = arith.constant 0 : index
      %c0_117 = arith.constant 0 : index
      %199 = vector.load %arg23[%c0_115, %c0_116, %c0_117] : memref<2x8x128xbf16, #tpu.memory_space<vmem>>, vector<1x8x128xbf16>
      %200 = vector.shape_cast %199 : vector<1x8x128xbf16> to vector<8x128xbf16>
      %201 = vector.shape_cast %198 : vector<8x128xbf16> to vector<1x8x128xbf16>
      tpu.vector_store %arg23[%c0_115, %c0_116, %c0_117], %201 {strides = array<i32>} : memref<2x8x128xbf16, #tpu.memory_space<vmem>>, vector<1x8x128xbf16>,
      %c1_118 = arith.constant 1 : index
      %c0_119 = arith.constant 0 : index
      %c0_120 = arith.constant 0 : index
      %202 = vector.load %arg7[%c1_118, %c0_119, %c0_120] : memref<2x256x128xbf16, #tpu.memory_space<vmem>>, vector<1x256x128xbf16>
      %203 = vector.shape_cast %202 : vector<1x256x128xbf16> to vector<256x128xbf16>
      %cst_121 = arith.constant dense<0.000000e+00> : vector<8x128xf32>
      %204 = tpu.matmul %177, %203, %cst_121 {dimension_numbers = #tpu.dot_dimension_numbers<[1], [0], [0], [1], [0, 0, 1, 1], [], []>} : vector<8x256xbf16>, vector<256x128xbf16>, vector<8x128xf32> -> vector<8x128xf32>
      %c1_122 = arith.constant 1 : index
      %c0_123 = arith.constant 0 : index
      %c0_124 = arith.constant 0 : index
      %205 = vector.load %arg8[%c1_122, %c0_123, %c0_124] : memref<2x1x128xf32, #tpu.memory_space<vmem>>, vector<1x1x128xf32>
      %206 = vector.shape_cast %205 : vector<1x1x128xf32> to vector<1x128xf32>
      %207 = vector.broadcast %206 : vector<1x128xf32> to vector<8x128xf32>
      %208 = arith.addf %204, %207 : vector<8x128xf32>
      %209 = arith.truncf %208 : vector<8x128xf32> to vector<8x128xbf16>
      %c1_125 = arith.constant 1 : index
      %c0_126 = arith.constant 0 : index
      %c0_127 = arith.constant 0 : index
      %210 = vector.load %arg22[%c1_125, %c0_126, %c0_127] : memref<2x8x128xbf16, #tpu.memory_space<vmem>>, vector<1x8x128xbf16>
      %211 = vector.shape_cast %210 : vector<1x8x128xbf16> to vector<8x128xbf16>
      %212 = vector.shape_cast %209 : vector<8x128xbf16> to vector<1x8x128xbf16>
      tpu.vector_store %arg22[%c1_125, %c0_126, %c0_127], %212 {strides = array<i32>} : memref<2x8x128xbf16, #tpu.memory_space<vmem>>, vector<1x8x128xbf16>,
      %c1_128 = arith.constant 1 : index
      %c0_129 = arith.constant 0 : index
      %c0_130 = arith.constant 0 : index
      %213 = vector.load %arg9[%c1_128, %c0_129, %c0_130] : memref<2x256x128xbf16, #tpu.memory_space<vmem>>, vector<1x256x128xbf16>
      %214 = vector.shape_cast %213 : vector<1x256x128xbf16> to vector<256x128xbf16>
      %cst_131 = arith.constant dense<0.000000e+00> : vector<8x128xf32>
      %215 = tpu.matmul %179, %214, %cst_131 {dimension_numbers = #tpu.dot_dimension_numbers<[1], [0], [0], [1], [0, 0, 1, 1], [], []>} : vector<8x256xbf16>, vector<256x128xbf16>, vector<8x128xf32> -> vector<8x128xf32>
      %c1_132 = arith.constant 1 : index
      %c0_133 = arith.constant 0 : index
      %c0_134 = arith.constant 0 : index
      %216 = vector.load %arg10[%c1_132, %c0_133, %c0_134] : memref<2x1x128xf32, #tpu.memory_space<vmem>>, vector<1x1x128xf32>
      %217 = vector.shape_cast %216 : vector<1x1x128xf32> to vector<1x128xf32>
      %218 = vector.broadcast %217 : vector<1x128xf32> to vector<8x128xf32>
      %219 = arith.addf %215, %218 : vector<8x128xf32>
      %220 = arith.truncf %219 : vector<8x128xf32> to vector<8x128xbf16>
      %c1_135 = arith.constant 1 : index
      %c0_136 = arith.constant 0 : index
      %c0_137 = arith.constant 0 : index
      %221 = vector.load %arg23[%c1_135, %c0_136, %c0_137] : memref<2x8x128xbf16, #tpu.memory_space<vmem>>, vector<1x8x128xbf16>
      %222 = vector.shape_cast %221 : vector<1x8x128xbf16> to vector<8x128xbf16>
      %223 = vector.shape_cast %220 : vector<8x128xbf16> to vector<1x8x128xbf16>
      tpu.vector_store %arg23[%c1_135, %c0_136, %c0_137], %223 {strides = array<i32>} : memref<2x8x128xbf16, #tpu.memory_space<vmem>>, vector<1x8x128xbf16>,
    } else {
    }
    %c0 = arith.constant 0 : index
    %c0_1 = arith.constant 0 : index
    %c0_2 = arith.constant 0 : index
    %3 = vector.load %arg2[%c0, %c0_1, %c0_2] : memref<1x8x256xf32, #tpu.memory_space<vmem>>, vector<1x8x256xf32>
    %4 = vector.shape_cast %3 : vector<1x8x256xf32> to vector<8x256xf32>
    %c8_i32 = arith.constant 8 : i32
    %5 = arith.muli %arg1, %c8_i32 : i32
    %6 = tpu.assume_multiple %5, 8 : i32
    %c0_3 = arith.constant 0 : index
    %7 = arith.index_cast %6 : i32 to index
    %c0_4 = arith.constant 0 : index
    %8 = vector.load %arg3[%c0_3, %7, %c0_4] : memref<1x8x256xbf16, #tpu.memory_space<vmem>>, vector<1x8x256xbf16>
    %9 = vector.shape_cast %8 : vector<1x8x256xbf16> to vector<8x256xbf16>
    %cst = arith.constant 0.000000e+00 : f32
    %10 = vector.broadcast %cst : f32 to vector<8x256xf32>
    %c0_5 = arith.constant 0 : index
    %c0_6 = arith.constant 0 : index
    %c0_7 = arith.constant 0 : index
    %11 = vector.load %arg5[%c0_5, %c0_6, %c0_7] : memref<2x256x128xbf16, #tpu.memory_space<vmem>>, vector<1x256x128xbf16>
    %12 = vector.shape_cast %11 : vector<1x256x128xbf16> to vector<256x128xbf16>
    %cst_8 = arith.constant dense<0.000000e+00> : vector<8x128xf32>
    %13 = tpu.matmul %9, %12, %cst_8 {dimension_numbers = #tpu.dot_dimension_numbers<[1], [0], [0], [1], [0, 0, 1, 1], [], []>} : vector<8x256xbf16>, vector<256x128xbf16>, vector<8x128xf32> -> vector<8x128xf32>
    %c0_9 = arith.constant 0 : index
    %c0_10 = arith.constant 0 : index
    %c0_11 = arith.constant 0 : index
    %14 = vector.load %arg6[%c0_9, %c0_10, %c0_11] : memref<2x1x128xf32, #tpu.memory_space<vmem>>, vector<1x1x128xf32>
    %15 = vector.shape_cast %14 : vector<1x1x128xf32> to vector<1x128xf32>
    %16 = vector.broadcast %15 : vector<1x128xf32> to vector<8x128xf32>
    %17 = arith.addf %13, %16 : vector<8x128xf32>
    %cst_12 = arith.constant 0.0883883461 : f32
    %18 = vector.broadcast %cst_12 : f32 to vector<8x128xf32>
    %19 = arith.mulf %17, %18 : vector<8x128xf32>
    %20 = arith.truncf %19 : vector<8x128xf32> to vector<8x128xbf16>
    %cst_13 = arith.constant 0xFF800000 : f32
    %21 = vector.broadcast %cst_13 : f32 to vector<8x1xf32>
    %cst_14 = arith.constant 0.000000e+00 : f32
    %22 = vector.broadcast %cst_14 : f32 to vector<8x1xf32>
    %cst_15 = arith.constant 0.000000e+00 : f32
    %23 = vector.broadcast %cst_15 : f32 to vector<8x128xf32>
    %c0_i32_16 = arith.constant 0 : i32
    %24 = tpu.assume_multiple %c0_i32_16, 8 : i32
    %c0_17 = arith.constant 0 : index
    %25 = arith.index_cast %24 : i32 to index
    %c0_18 = arith.constant 0 : index
    %26 = vector.load %arg22[%c0_17, %25, %c0_18] : memref<2x8x128xbf16, #tpu.memory_space<vmem>>, vector<1x8x128xbf16>
    %27 = vector.shape_cast %26 : vector<1x8x128xbf16> to vector<8x128xbf16>
    %c0_19 = arith.constant 0 : index
    %28 = arith.index_cast %24 : i32 to index
    %c0_20 = arith.constant 0 : index
    %29 = vector.load %arg23[%c0_19, %28, %c0_20] : memref<2x8x128xbf16, #tpu.memory_space<vmem>>, vector<1x8x128xbf16>
    %30 = vector.shape_cast %29 : vector<1x8x128xbf16> to vector<8x128xbf16>
    %cst_21 = arith.constant dense<0.000000e+00> : vector<8x8xf32>
    %31 = tpu.matmul %20, %27, %cst_21 {dimension_numbers = #tpu.dot_dimension_numbers<[1], [1], [0], [0], [0, 0, 1, 0], [], []>} : vector<8x128xbf16>, vector<8x128xbf16>, vector<8x8xf32> -> vector<8x8xf32>
    %cst_22 = arith.constant dense<0xFF800000> : vector<8xf32>
    %32 = vector.multi_reduction <maximumf>, %31, %cst_22 [1] : vector<8x8xf32> to vector<8xf32>
    %33 = vector.shape_cast %32 : vector<8xf32> to vector<8x1xf32>
    %34 = arith.maximumf %21, %33 : vector<8x1xf32>
    %35 = arith.subf %21, %34 : vector<8x1xf32>
    %36 = math.exp %35 : vector<8x1xf32>
    %37 = vector.broadcast %34 : vector<8x1xf32> to vector<8x8xf32>
    %38 = arith.subf %31, %37 : vector<8x8xf32>
    %39 = math.exp %38 : vector<8x8xf32>
    %40 = arith.mulf %36, %22 : vector<8x1xf32>
    %cst_23 = arith.constant dense<0.000000e+00> : vector<8xf32>
    %41 = vector.multi_reduction <add>, %39, %cst_23 [1] : vector<8x8xf32> to vector<8xf32>
    %42 = vector.shape_cast %41 : vector<8xf32> to vector<8x1xf32>
    %43 = arith.addf %40, %42 : vector<8x1xf32>
    %44 = vector.broadcast %36 : vector<8x1xf32> to vector<8x128xf32>
    %45 = arith.mulf %44, %23 : vector<8x128xf32>
    %46 = arith.truncf %39 : vector<8x8xf32> to vector<8x8xbf16>
    %cst_24 = arith.constant dense<0.000000e+00> : vector<8x128xf32>
    %47 = tpu.matmul %46, %30, %cst_24 {dimension_numbers = #tpu.dot_dimension_numbers<[1], [0], [0], [1], [0, 0, 1, 1], [], []>} : vector<8x8xbf16>, vector<8x128xbf16>, vector<8x128xf32> -> vector<8x128xf32>
    %48 = arith.addf %45, %47 : vector<8x128xf32>
    %cst_25 = arith.constant 1.000000e+00 : f32
    %49 = vector.broadcast %cst_25 : f32 to vector<8x1xf32>
    %50 = arith.divf %49, %43 : vector<8x1xf32>
    %51 = vector.broadcast %50 : vector<8x1xf32> to vector<8x128xf32>
    %52 = arith.mulf %48, %51 : vector<8x128xf32>
    %53 = arith.truncf %52 : vector<8x128xf32> to vector<8x128xbf16>
    %c0_26 = arith.constant 0 : index
    %c0_27 = arith.constant 0 : index
    %c0_28 = arith.constant 0 : index
    %54 = vector.load %arg11[%c0_26, %c0_27, %c0_28] : memref<2x128x256xbf16, #tpu.memory_space<vmem>>, vector<1x128x256xbf16>
    %55 = vector.shape_cast %54 : vector<1x128x256xbf16> to vector<128x256xbf16>
    %cst_29 = arith.constant dense<0.000000e+00> : vector<8x256xf32>
    %56 = tpu.matmul %53, %55, %cst_29 {dimension_numbers = #tpu.dot_dimension_numbers<[1], [0], [0], [1], [0, 0, 1, 1], [], []>} : vector<8x128xbf16>, vector<128x256xbf16>, vector<8x256xf32> -> vector<8x256xf32>
    %57 = arith.addf %10, %56 : vector<8x256xf32>
    %c1 = arith.constant 1 : index
    %c0_30 = arith.constant 0 : index
    %c0_31 = arith.constant 0 : index
    %58 = vector.load %arg5[%c1, %c0_30, %c0_31] : memref<2x256x128xbf16, #tpu.memory_space<vmem>>, vector<1x256x128xbf16>
    %59 = vector.shape_cast %58 : vector<1x256x128xbf16> to vector<256x128xbf16>
    %cst_32 = arith.constant dense<0.000000e+00> : vector<8x128xf32>
    %60 = tpu.matmul %9, %59, %cst_32 {dimension_numbers = #tpu.dot_dimension_numbers<[1], [0], [0], [1], [0, 0, 1, 1], [], []>} : vector<8x256xbf16>, vector<256x128xbf16>, vector<8x128xf32> -> vector<8x128xf32>
    %c1_33 = arith.constant 1 : index
    %c0_34 = arith.constant 0 : index
    %c0_35 = arith.constant 0 : index
    %61 = vector.load %arg6[%c1_33, %c0_34, %c0_35] : memref<2x1x128xf32, #tpu.memory_space<vmem>>, vector<1x1x128xf32>
    %62 = vector.shape_cast %61 : vector<1x1x128xf32> to vector<1x128xf32>
    %63 = vector.broadcast %62 : vector<1x128xf32> to vector<8x128xf32>
    %64 = arith.addf %60, %63 : vector<8x128xf32>
    %cst_36 = arith.constant 0.0883883461 : f32
    %65 = vector.broadcast %cst_36 : f32 to vector<8x128xf32>
    %66 = arith.mulf %64, %65 : vector<8x128xf32>
    %67 = arith.truncf %66 : vector<8x128xf32> to vector<8x128xbf16>
    %cst_37 = arith.constant 0xFF800000 : f32
    %68 = vector.broadcast %cst_37 : f32 to vector<8x1xf32>
    %cst_38 = arith.constant 0.000000e+00 : f32
    %69 = vector.broadcast %cst_38 : f32 to vector<8x1xf32>
    %cst_39 = arith.constant 0.000000e+00 : f32
    %70 = vector.broadcast %cst_39 : f32 to vector<8x128xf32>
    %c0_i32_40 = arith.constant 0 : i32
    %71 = tpu.assume_multiple %c0_i32_40, 8 : i32
    %c1_41 = arith.constant 1 : index
    %72 = arith.index_cast %71 : i32 to index
    %c0_42 = arith.constant 0 : index
    %73 = vector.load %arg22[%c1_41, %72, %c0_42] : memref<2x8x128xbf16, #tpu.memory_space<vmem>>, vector<1x8x128xbf16>
    %74 = vector.shape_cast %73 : vector<1x8x128xbf16> to vector<8x128xbf16>
    %c1_43 = arith.constant 1 : index
    %75 = arith.index_cast %71 : i32 to index
    %c0_44 = arith.constant 0 : index
    %76 = vector.load %arg23[%c1_43, %75, %c0_44] : memref<2x8x128xbf16, #tpu.memory_space<vmem>>, vector<1x8x128xbf16>
    %77 = vector.shape_cast %76 : vector<1x8x128xbf16> to vector<8x128xbf16>
    %cst_45 = arith.constant dense<0.000000e+00> : vector<8x8xf32>
    %78 = tpu.matmul %67, %74, %cst_45 {dimension_numbers = #tpu.dot_dimension_numbers<[1], [1], [0], [0], [0, 0, 1, 0], [], []>} : vector<8x128xbf16>, vector<8x128xbf16>, vector<8x8xf32> -> vector<8x8xf32>
    %cst_46 = arith.constant dense<0xFF800000> : vector<8xf32>
    %79 = vector.multi_reduction <maximumf>, %78, %cst_46 [1] : vector<8x8xf32> to vector<8xf32>
    %80 = vector.shape_cast %79 : vector<8xf32> to vector<8x1xf32>
    %81 = arith.maximumf %68, %80 : vector<8x1xf32>
    %82 = arith.subf %68, %81 : vector<8x1xf32>
    %83 = math.exp %82 : vector<8x1xf32>
    %84 = vector.broadcast %81 : vector<8x1xf32> to vector<8x8xf32>
    %85 = arith.subf %78, %84 : vector<8x8xf32>
    %86 = math.exp %85 : vector<8x8xf32>
    %87 = arith.mulf %83, %69 : vector<8x1xf32>
    %cst_47 = arith.constant dense<0.000000e+00> : vector<8xf32>
    %88 = vector.multi_reduction <add>, %86, %cst_47 [1] : vector<8x8xf32> to vector<8xf32>
    %89 = vector.shape_cast %88 : vector<8xf32> to vector<8x1xf32>
    %90 = arith.addf %87, %89 : vector<8x1xf32>
    %91 = vector.broadcast %83 : vector<8x1xf32> to vector<8x128xf32>
    %92 = arith.mulf %91, %70 : vector<8x128xf32>
    %93 = arith.truncf %86 : vector<8x8xf32> to vector<8x8xbf16>
    %cst_48 = arith.constant dense<0.000000e+00> : vector<8x128xf32>
    %94 = tpu.matmul %93, %77, %cst_48 {dimension_numbers = #tpu.dot_dimension_numbers<[1], [0], [0], [1], [0, 0, 1, 1], [], []>} : vector<8x8xbf16>, vector<8x128xbf16>, vector<8x128xf32> -> vector<8x128xf32>
    %95 = arith.addf %92, %94 : vector<8x128xf32>
    %cst_49 = arith.constant 1.000000e+00 : f32
    %96 = vector.broadcast %cst_49 : f32 to vector<8x1xf32>
    %97 = arith.divf %96, %90 : vector<8x1xf32>
    %98 = vector.broadcast %97 : vector<8x1xf32> to vector<8x128xf32>
    %99 = arith.mulf %95, %98 : vector<8x128xf32>
    %100 = arith.truncf %99 : vector<8x128xf32> to vector<8x128xbf16>
    %c1_50 = arith.constant 1 : index
    %c0_51 = arith.constant 0 : index
    %c0_52 = arith.constant 0 : index
    %101 = vector.load %arg11[%c1_50, %c0_51, %c0_52] : memref<2x128x256xbf16, #tpu.memory_space<vmem>>, vector<1x128x256xbf16>
    %102 = vector.shape_cast %101 : vector<1x128x256xbf16> to vector<128x256xbf16>
    %cst_53 = arith.constant dense<0.000000e+00> : vector<8x256xf32>
    %103 = tpu.matmul %100, %102, %cst_53 {dimension_numbers = #tpu.dot_dimension_numbers<[1], [0], [0], [1], [0, 0, 1, 1], [], []>} : vector<8x128xbf16>, vector<128x256xbf16>, vector<8x256xf32> -> vector<8x256xf32>
    %104 = arith.addf %57, %103 : vector<8x256xf32>
    %c0_54 = arith.constant 0 : index
    %c0_55 = arith.constant 0 : index
    %105 = vector.load %arg12[%c0_54, %c0_55] : memref<1x256xf32, #tpu.memory_space<vmem>>, vector<1x256xf32>
    %106 = vector.broadcast %105 : vector<1x256xf32> to vector<8x256xf32>
    %107 = arith.addf %104, %106 : vector<8x256xf32>
    %108 = arith.addf %4, %107 : vector<8x256xf32>
    %c0_56 = arith.constant 0 : index
    %c0_57 = arith.constant 0 : index
    %109 = vector.load %arg13[%c0_56, %c0_57] : memref<1x256xf32, #tpu.memory_space<vmem>>, vector<1x256xf32>
    %c0_58 = arith.constant 0 : index
    %c0_59 = arith.constant 0 : index
    %110 = vector.load %arg14[%c0_58, %c0_59] : memref<1x256xf32, #tpu.memory_space<vmem>>, vector<1x256xf32>
    %cst_60 = arith.constant dense<0.000000e+00> : vector<8xf32>
    %111 = vector.multi_reduction <add>, %108, %cst_60 [1] : vector<8x256xf32> to vector<8xf32>
    %112 = vector.shape_cast %111 : vector<8xf32> to vector<8x1xf32>
    %cst_61 = arith.constant 2.560000e+02 : f32
    %113 = vector.broadcast %cst_61 : f32 to vector<8x1xf32>
    %114 = arith.divf %112, %113 : vector<8x1xf32>
    %115 = vector.broadcast %114 : vector<8x1xf32> to vector<8x256xf32>
    %116 = arith.subf %108, %115 : vector<8x256xf32>
    %117 = arith.mulf %116, %116 : vector<8x256xf32>
    %cst_62 = arith.constant dense<0.000000e+00> : vector<8xf32>
    %118 = vector.multi_reduction <add>, %117, %cst_62 [1] : vector<8x256xf32> to vector<8xf32>
    %119 = vector.shape_cast %118 : vector<8xf32> to vector<8x1xf32>
    %cst_63 = arith.constant 2.560000e+02 : f32
    %120 = vector.broadcast %cst_63 : f32 to vector<8x1xf32>
    %121 = arith.divf %119, %120 : vector<8x1xf32>
    %cst_64 = arith.constant 9.99999974E-6 : f32
    %122 = vector.broadcast %cst_64 : f32 to vector<8x1xf32>
    %123 = arith.addf %121, %122 : vector<8x1xf32>
    %124 = math.rsqrt %123 : vector<8x1xf32>
    %125 = vector.broadcast %124 : vector<8x1xf32> to vector<8x256xf32>
    %126 = arith.mulf %116, %125 : vector<8x256xf32>
    %127 = vector.broadcast %109 : vector<1x256xf32> to vector<8x256xf32>
    %128 = arith.mulf %126, %127 : vector<8x256xf32>
    %129 = vector.broadcast %110 : vector<1x256xf32> to vector<8x256xf32>
    %130 = arith.addf %128, %129 : vector<8x256xf32>
    %131 = arith.truncf %130 : vector<8x256xf32> to vector<8x256xbf16>
    %cst_65 = arith.constant 0.000000e+00 : f32
    %132 = vector.broadcast %cst_65 : f32 to vector<8x256xf32>
    %c0_66 = arith.constant 0 : index
    %c0_67 = arith.constant 0 : index
    %c0_68 = arith.constant 0 : index
    %133 = vector.load %arg15[%c0_66, %c0_67, %c0_68] : memref<1x256x256xbf16, #tpu.memory_space<vmem>>, vector<1x256x256xbf16>
    %134 = vector.shape_cast %133 : vector<1x256x256xbf16> to vector<256x256xbf16>
    %cst_69 = arith.constant dense<0.000000e+00> : vector<8x256xf32>
    %135 = tpu.matmul %131, %134, %cst_69 {dimension_numbers = #tpu.dot_dimension_numbers<[1], [0], [0], [1], [0, 0, 1, 1], [], []>} : vector<8x256xbf16>, vector<256x256xbf16>, vector<8x256xf32> -> vector<8x256xf32>
    %c0_70 = arith.constant 0 : index
    %c0_71 = arith.constant 0 : index
    %c0_72 = arith.constant 0 : index
    %136 = vector.load %arg16[%c0_70, %c0_71, %c0_72] : memref<1x1x256xf32, #tpu.memory_space<vmem>>, vector<1x1x256xf32>
    %137 = vector.shape_cast %136 : vector<1x1x256xf32> to vector<1x256xf32>
    %138 = vector.broadcast %137 : vector<1x256xf32> to vector<8x256xf32>
    %139 = arith.addf %135, %138 : vector<8x256xf32>
    %cst_73 = arith.constant 0.000000e+00 : f32
    %140 = vector.broadcast %cst_73 : f32 to vector<8x256xf32>
    %141 = arith.maximumf %139, %140 : vector<8x256xf32>
    %142 = arith.truncf %141 : vector<8x256xf32> to vector<8x256xbf16>
    %c0_74 = arith.constant 0 : index
    %c0_75 = arith.constant 0 : index
    %c0_76 = arith.constant 0 : index
    %143 = vector.load %arg17[%c0_74, %c0_75, %c0_76] : memref<1x256x256xbf16, #tpu.memory_space<vmem>>, vector<1x256x256xbf16>
    %144 = vector.shape_cast %143 : vector<1x256x256xbf16> to vector<256x256xbf16>
    %cst_77 = arith.constant dense<0.000000e+00> : vector<8x256xf32>
    %145 = tpu.matmul %142, %144, %cst_77 {dimension_numbers = #tpu.dot_dimension_numbers<[1], [0], [0], [1], [0, 0, 1, 1], [], []>} : vector<8x256xbf16>, vector<256x256xbf16>, vector<8x256xf32> -> vector<8x256xf32>
    %146 = arith.addf %132, %145 : vector<8x256xf32>
    %c0_78 = arith.constant 0 : index
    %c0_79 = arith.constant 0 : index
    %147 = vector.load %arg18[%c0_78, %c0_79] : memref<1x256xf32, #tpu.memory_space<vmem>>, vector<1x256xf32>
    %148 = vector.broadcast %147 : vector<1x256xf32> to vector<8x256xf32>
    %149 = arith.addf %146, %148 : vector<8x256xf32>
    %150 = arith.addf %130, %149 : vector<8x256xf32>
    %c0_80 = arith.constant 0 : index
    %c0_81 = arith.constant 0 : index
    %151 = vector.load %arg19[%c0_80, %c0_81] : memref<1x256xf32, #tpu.memory_space<vmem>>, vector<1x256xf32>
    %c0_82 = arith.constant 0 : index
    %c0_83 = arith.constant 0 : index
    %152 = vector.load %arg20[%c0_82, %c0_83] : memref<1x256xf32, #tpu.memory_space<vmem>>, vector<1x256xf32>
    %cst_84 = arith.constant dense<0.000000e+00> : vector<8xf32>
    %153 = vector.multi_reduction <add>, %150, %cst_84 [1] : vector<8x256xf32> to vector<8xf32>
    %154 = vector.shape_cast %153 : vector<8xf32> to vector<8x1xf32>
    %cst_85 = arith.constant 2.560000e+02 : f32
    %155 = vector.broadcast %cst_85 : f32 to vector<8x1xf32>
    %156 = arith.divf %154, %155 : vector<8x1xf32>
    %157 = vector.broadcast %156 : vector<8x1xf32> to vector<8x256xf32>
    %158 = arith.subf %150, %157 : vector<8x256xf32>
    %159 = arith.mulf %158, %158 : vector<8x256xf32>
    %cst_86 = arith.constant dense<0.000000e+00> : vector<8xf32>
    %160 = vector.multi_reduction <add>, %159, %cst_86 [1] : vector<8x256xf32> to vector<8xf32>
    %161 = vector.shape_cast %160 : vector<8xf32> to vector<8x1xf32>
    %cst_87 = arith.constant 2.560000e+02 : f32
    %162 = vector.broadcast %cst_87 : f32 to vector<8x1xf32>
    %163 = arith.divf %161, %162 : vector<8x1xf32>
    %cst_88 = arith.constant 9.99999974E-6 : f32
    %164 = vector.broadcast %cst_88 : f32 to vector<8x1xf32>
    %165 = arith.addf %163, %164 : vector<8x1xf32>
    %166 = math.rsqrt %165 : vector<8x1xf32>
    %167 = vector.broadcast %166 : vector<8x1xf32> to vector<8x256xf32>
    %168 = arith.mulf %158, %167 : vector<8x256xf32>
    %169 = vector.broadcast %151 : vector<1x256xf32> to vector<8x256xf32>
    %170 = arith.mulf %168, %169 : vector<8x256xf32>
    %171 = vector.broadcast %152 : vector<1x256xf32> to vector<8x256xf32>
    %172 = arith.addf %170, %171 : vector<8x256xf32>
    %c0_89 = arith.constant 0 : index
    %c0_90 = arith.constant 0 : index
    %c0_91 = arith.constant 0 : index
    %173 = vector.load %arg21[%c0_89, %c0_90, %c0_91] : memref<1x8x256xf32, #tpu.memory_space<vmem>>, vector<1x8x256xf32>
    %174 = vector.shape_cast %173 : vector<1x8x256xf32> to vector<8x256xf32>
    %175 = vector.shape_cast %172 : vector<8x256xf32> to vector<1x8x256xf32>
    tpu.vector_store %arg21[%c0_89, %c0_90, %c0_91], %175 {strides = array<i32>} : memref<1x8x256xf32, #tpu.memory_space<vmem>>, vector<1x8x256xf32>,
    return
  }
  func.func @transform_0(%arg0: i32, %arg1: i32) -> (i32, i32, i32) {
    %c0_i32 = arith.constant 0 : i32
    %c0_i32_0 = arith.constant 0 : i32
    return %arg0, %arg1, %c0_i32 : i32, i32, i32
  }
  func.func @transform_1(%arg0: i32, %arg1: i32) -> (i32, i32, i32) {
    %c0_i32 = arith.constant 0 : i32
    %c0_i32_0 = arith.constant 0 : i32
    %c0_i32_1 = arith.constant 0 : i32
    return %arg0, %c0_i32, %c0_i32_0 : i32, i32, i32
  }
  func.func @transform_2(%arg0: i32, %arg1: i32) -> (i32, i32, i32) {
    %c0_i32 = arith.constant 0 : i32
    %c0_i32_0 = arith.constant 0 : i32
    %c0_i32_1 = arith.constant 0 : i32
    return %arg0, %c0_i32, %c0_i32_0 : i32, i32, i32
  }
  func.func @transform_3(%arg0: i32, %arg1: i32) -> (i32, i32, i32) {
    %c0_i32 = arith.constant 0 : i32
    %c0_i32_0 = arith.constant 0 : i32
    %c0_i32_1 = arith.constant 0 : i32
    %c0_i32_2 = arith.constant 0 : i32
    return %c0_i32, %c0_i32_0, %c0_i32_1 : i32, i32, i32
  }
  func.func @transform_4(%arg0: i32, %arg1: i32) -> (i32, i32, i32) {
    %c0_i32 = arith.constant 0 : i32
    %c0_i32_0 = arith.constant 0 : i32
    %c0_i32_1 = arith.constant 0 : i32
    %c0_i32_2 = arith.constant 0 : i32
    return %c0_i32, %c0_i32_0, %c0_i32_1 : i32, i32, i32
  }
  func.func @transform_5(%arg0: i32, %arg1: i32) -> (i32, i32, i32) {
    %c0_i32 = arith.constant 0 : i32
    %c0_i32_0 = arith.constant 0 : i32
    %c0_i32_1 = arith.constant 0 : i32
    %c0_i32_2 = arith.constant 0 : i32
    return %c0_i32, %c0_i32_0, %c0_i32_1 : i32, i32, i32
  }
  func.func @transform_6(%arg0: i32, %arg1: i32) -> (i32, i32, i32) {
    %c0_i32 = arith.constant 0 : i32
    %c0_i32_0 = arith.constant 0 : i32
    %c0_i32_1 = arith.constant 0 : i32
    %c0_i32_2 = arith.constant 0 : i32
    return %c0_i32, %c0_i32_0, %c0_i32_1 : i32, i32, i32
  }
  func.func @transform_7(%arg0: i32, %arg1: i32) -> (i32, i32, i32) {
    %c0_i32 = arith.constant 0 : i32
    %c0_i32_0 = arith.constant 0 : i32
    %c0_i32_1 = arith.constant 0 : i32
    %c0_i32_2 = arith.constant 0 : i32
    return %c0_i32, %c0_i32_0, %c0_i32_1 : i32, i32, i32
  }
  func.func @transform_8(%arg0: i32, %arg1: i32) -> (i32, i32, i32) {
    %c0_i32 = arith.constant 0 : i32
    %c0_i32_0 = arith.constant 0 : i32
    %c0_i32_1 = arith.constant 0 : i32
    %c0_i32_2 = arith.constant 0 : i32
    return %c0_i32, %c0_i32_0, %c0_i32_1 : i32, i32, i32
  }
  func.func @transform_9(%arg0: i32, %arg1: i32) -> (i32, i32, i32) {
    %c0_i32 = arith.constant 0 : i32
    %c0_i32_0 = arith.constant 0 : i32
    %c0_i32_1 = arith.constant 0 : i32
    %c0_i32_2 = arith.constant 0 : i32
    return %c0_i32, %c0_i32_0, %c0_i32_1 : i32, i32, i32
  }
  func.func @transform_10(%arg0: i32, %arg1: i32) -> (i32, i32) {
    %c0_i32 = arith.constant 0 : i32
    %c0_i32_0 = arith.constant 0 : i32
    %c0_i32_1 = arith.constant 0 : i32
    return %c0_i32, %c0_i32_0 : i32, i32
  }
  func.func @transform_11(%arg0: i32, %arg1: i32) -> (i32, i32) {
    %c0_i32 = arith.constant 0 : i32
    %c0_i32_0 = arith.constant 0 : i32
    %c0_i32_1 = arith.constant 0 : i32
    return %c0_i32, %c0_i32_0 : i32, i32
  }
  func.func @transform_12(%arg0: i32, %arg1: i32) -> (i32, i32) {
    %c0_i32 = arith.constant 0 : i32
    %c0_i32_0 = arith.constant 0 : i32
    %c0_i32_1 = arith.constant 0 : i32
    return %c0_i32, %c0_i32_0 : i32, i32
  }
  func.func @transform_13(%arg0: i32, %arg1: i32) -> (i32, i32, i32) {
    %c0_i32 = arith.constant 0 : i32
    %c0_i32_0 = arith.constant 0 : i32
    %c0_i32_1 = arith.constant 0 : i32
    %c0_i32_2 = arith.constant 0 : i32
    return %c0_i32, %c0_i32_0, %c0_i32_1 : i32, i32, i32
  }
  func.func @transform_14(%arg0: i32, %arg1: i32) -> (i32, i32, i32) {
    %c0_i32 = arith.constant 0 : i32
    %c0_i32_0 = arith.constant 0 : i32
    %c0_i32_1 = arith.constant 0 : i32
    %c0_i32_2 = arith.constant 0 : i32
    return %c0_i32, %c0_i32_0, %c0_i32_1 : i32, i32, i32
  }
  func.func @transform_15(%arg0: i32, %arg1: i32) -> (i32, i32, i32) {
    %c0_i32 = arith.constant 0 : i32
    %c0_i32_0 = arith.constant 0 : i32
    %c0_i32_1 = arith.constant 0 : i32
    %c0_i32_2 = arith.constant 0 : i32
    return %c0_i32, %c0_i32_0, %c0_i32_1 : i32, i32, i32
  }
  func.func @transform_16(%arg0: i32, %arg1: i32) -> (i32, i32) {
    %c0_i32 = arith.constant 0 : i32
    %c0_i32_0 = arith.constant 0 : i32
    %c0_i32_1 = arith.constant 0 : i32
    return %c0_i32, %c0_i32_0 : i32, i32
  }
  func.func @transform_17(%arg0: i32, %arg1: i32) -> (i32, i32) {
    %c0_i32 = arith.constant 0 : i32
    %c0_i32_0 = arith.constant 0 : i32
    %c0_i32_1 = arith.constant 0 : i32
    return %c0_i32, %c0_i32_0 : i32, i32
  }
  func.func @transform_18(%arg0: i32, %arg1: i32) -> (i32, i32) {
    %c0_i32 = arith.constant 0 : i32
    %c0_i32_0 = arith.constant 0 : i32
    %c0_i32_1 = arith.constant 0 : i32
    return %c0_i32, %c0_i32_0 : i32, i32
  }
  func.func @transform_19(%arg0: i32, %arg1: i32) -> (i32, i32, i32) {
    %c0_i32 = arith.constant 0 : i32
    %c0_i32_0 = arith.constant 0 : i32
    return %arg0, %arg1, %c0_i32 : i32, i32, i32
  }
}

</mosaic_0001>

<bundles_post_ra>
// kernel: tpu_custom_call.1
= control target key start
LH: loop header
LB: loop body
LE: loop exit
PB: predicated region body
PF: predicated region fallthrough
CT: control target
= control target key end

     0   :  { %s5827_s0 = inlined_call_operand.hbm [shape: f32[2,8,256], index: 0, kind: input, shape index: {}]   ;;  %s5828_s1 = inlined_call_operand.hbm [shape: bf16[2,8,256], index: 1, kind: input, shape index: {}]   ;;  %s5829_s2 = inlined_call_operand.hbm [shape: bf16[2,8,256], index: 2, kind: input, shape index: {}]   ;;  %s5830_s3 = inlined_call_operand.hbm [shape: bf16[2,256,128], index: 3, kind: input, shape index: {}]   ;;  %s5831_s4 = inlined_call_operand.hbm [shape: f32[2,1,128], index: 4, kind: input, shape index: {}]   ;;  %s5832_s5 = inlined_call_operand.hbm [shape: bf16[2,256,128], index: 5, kind: input, shape index: {}]   ;;  %s5833_s6 = inlined_call_operand.hbm [shape: f32[2,1,128], index: 6, kind: input, shape index: {}]   ;;  %s5834_s7 = inlined_call_operand.hbm [shape: bf16[2,256,128], index: 7, kind: input, shape index: {}]   ;;  %s5835_s8 = inlined_call_operand.hbm [shape: f32[2,1,128], index: 8, kind: input, shape index: {}]   ;;  %s5836_s9 = inlined_call_operand.hbm [shape: bf16[2,128,256], index: 9, kind: input, shape index: {}]   ;;  %s5837_s10 = inlined_call_operand.hbm [shape: f32[1,256], index: 10, kind: input, shape index: {}]   ;;  %s5838_s11 = inlined_call_operand.hbm [shape: f32[1,256], index: 11, kind: input, shape index: {}]   ;;  %s5839_s12 = inlined_call_operand.hbm [shape: f32[1,256], index: 12, kind: input, shape index: {}]   ;;  %s5840_s13 = inlined_call_operand.hbm [shape: bf16[1,256,256], index: 13, kind: input, shape index: {}]   ;;  %s5841_s14 = inlined_call_operand.hbm [shape: f32[1,1,256], index: 14, kind: input, shape index: {}]   ;;  %s5842_s15 = inlined_call_operand.hbm [shape: bf16[1,256,256], index: 15, kind: input, shape index: {}]   ;;  %s5843_s16 = inlined_call_operand.hbm [shape: f32[1,256], index: 16, kind: input, shape index: {}]   ;;  %s5844_s17 = inlined_call_operand.hbm [shape: f32[1,256], index: 17, kind: input, shape index: {}]   ;;  %s5845_s18 = inlined_call_operand.hbm [shape: f32[1,256], index: 18, kind: input, shape index: {}]   ;;  %s5846_s19 = inlined_call_operand.hbm [shape: f32[2,8,256], index: 19, kind: output, shape index: {}]  }
   0x1   :  { %5883 = sst [smem:[#allocation56_spill]] %s5827_s0 }
   0x2   :  { %5884 = sst [smem:[#allocation57_spill]] %s5828_s1 }
   0x3   :  { %5885 = sst [smem:[#allocation58_spill]] %s5829_s2 }
   0x4   :  { %5886 = sst [smem:[#allocation59_spill]] %s5830_s3 }
   0x5   :  { %5887 = sst [smem:[#allocation60_spill]] %s5831_s4 }
   0x6   :  { %5888 = sst [smem:[#allocation61_spill]] %s5832_s5 }
   0x7   :  { %5889 = sst [smem:[#allocation62_spill]] %s5833_s6 }
   0x8   :  { %5890 = sst [smem:[#allocation63_spill]] %s5834_s7 }
   0x9   :  { %5891 = sst [smem:[#allocation64_spill]] %s5841_s14 }
   0xa   :  { %5892 = sst [smem:[#allocation65_spill]] %s5843_s16 }
   0xb   :  { %5893 = sst [smem:[#allocation66_spill]] %s5845_s18 }
   0xc   :  { %5894 = sst [smem:[#allocation67_spill]] %s5846_s19 }
   0xd   :  { %24 = vsyncpa [#allocation5], 0 }
   0xe   :  { %26 = vsyncpa [#allocation5 + $0x1], 0 }
   0xf   :  { %27 = vsyncpa [#allocation8], 0 }
  0x10   :  { %28 = vsyncpa [#allocation11], 0 }
  0x11   :  { %29 = vsyncpa [#allocation14], 0 }
  0x12   :  { %30 = vsyncpa [#allocation17], 0 }
  0x13   :  { %31 = vsyncpa [#allocation20], 0 }
  0x14   :  { %32 = vsyncpa [#allocation23], 0 }
  0x15   :  { %33 = vsyncpa [#allocation26], 0 }
  0x16   :  { %34 = vsyncpa [#allocation29], 0 }
  0x17   :  { %35 = vsyncpa [#allocation32], 0 }
  0x18   :  { %36 = vsyncpa [#allocation6], 0 }
  0x19   :  { %38 = vsyncpa [#allocation6 + $0x1], 0  ;;  %s5102_s0 = smov 0   ;;  %s5104_s30 = smov 0  }
  0x1a   :  { %s5106_s20 = smov 0   ;;  %s5108_s21 = smov 0  }
  0x1b   :  { %s5110_s1 = smov 0   ;;  %s5112_s22 = smov 0  }
  0x1c LB: > { %5895 = sst [smem:[#allocation46_spill]] %s4951_s0  ;;  %s3386_s2 = sadd.s32 4294967295, %s4971_s22   ;;  %s4971_s22 = sphi %s5112_s22, %s44_s22   ;;  %s4967_s1 = sphi %s5110_s1, %s5956_s1   ;;  %s4963_s21 = sphi %s5108_s21, %s5955_s21   ;;  %s4959_s20 = sphi %s5106_s20, %s5960_s20   ;;  %s4955_s30 = sphi %s5104_s30, %s5954_s30   ;;  %s4951_s0 = sphi %s5102_s0, %s5953_s0  }
  0x1d   : > { %5896 = sst [smem:[#allocation47_spill]] %s4955_s30  ;;  %s3387_s23 = sadd.s32 4294967294, %s4971_s22  }
  0x1e   : > { %5897 = sst [smem:[#allocation48_spill]] %s4959_s20  ;;  %p78_p0 = scmp.ne.s32.totalorder %s4955_s30, %s4951_s0 }
  0x1f   : > { %5898 = sst [smem:[#allocation49_spill]] %s4967_s1  ;;  %p5136_p1 = scmp.eq.s32.totalorder %s3386_s2, 0 }
  0x20   : > { %5899 = sst [smem:[#allocation50_spill]] %s4971_s22  ;;  %p5140_p2 = scmp.eq.s32.totalorder %s3386_s2, 1 }
  0x21   : > { %s5900_s24 = scalar_select %p5136_p1, 1, 0 }
  0x22   : > { %s5902_s25 = scalar_select %p5140_p2, 1, 0 }
  0x23   : > { %5901 = sst [smem:[#allocation51_spill]] %s5900_s24  ;;  %p498_p3 = scmp.eq.s32.totalorder %s3387_s23, 1 }
  0x24   : > { %5903 = sst [smem:[#allocation52_spill]] %s5902_s25  ;;  %p5146_p4 = por %p5136_p1, %p78_p0 }
  0x25   : > { %p3388_p5 = scmp.ge.s32.totalorder %s4971_s22, 1  ;;  %p5151_p6 = por %p498_p3, %p78_p0 }
  0x26   : > { %s5904_s3 = scalar_select %p5146_p4, 1, 0 }
  0x27   : > { %s5906_s26 = scalar_select %p5151_p6, 1, 0 }
  0x28   : > { %5905 = sst [smem:[#allocation53_spill]] %s5904_s3  ;;  %p505_p7 = scmp.lt.s32.totalorder %s4971_s22, 3 }
  0x29   : > { %5907 = sst [smem:[#allocation54_spill]] %s5906_s26  ;;  %s5855_s27 = sshll.u32 %s4963_s21, 7 }
  0x2a   : > { %p5157_p8 = pnand %p3388_p5, %p505_p7  ;;  %s5910_s23 = sld [smem:[#allocation57_spill]] }
  0x2b   : > { %s4973_s19 = smov [#allocation7]   ;;  %s4974_s2 = smov [#allocation10]  }
  0x2c   : > { %s5908_s28 = scalar_select %p5157_p8, 1, 0 }
  0x2d   : > { %s521_s25 = sshll.u32 %s4973_s19, 4  ;;  %p3883_p9 = pneg %p5157_p8  ;;  %s522_s25 = int_to_ptr.vmem [resolvable:$true] %s521_s25 }
  0x2e   : > { %5909 = sst [smem:[#allocation55_spill]] %s5908_s28 }
  0x2f   : > { %p5173_p11 = pnand %p3883_p9, %p5146_p4  ;;  %p5179_p12 = pnand %p3883_p9, %p5136_p1 }
  0x30   : > { %s5166_s0 = scalar_lea.hbm %s5910_s23, %s5855_s27  ;;  %s545_s27 = sshll.u32 %s4974_s2, 4  ;;  %s546_s27 = int_to_ptr.vmem [resolvable:$true] %s545_s27 }
  0x31   : > { %s5911_s26 = scalar_select %p5173_p11, 1, 0 }
  0x32   : > { %s5912_s29 = scalar_select %p5179_p12, 1, 0 }
  0x33   : > { %s4315_s19 = scalar_lea.hbm %s5166_s0, 128  ;;  %p5872_p0 = pneg %p5173_p11 }
  0x34   : > { %p4316_p13 = scmp.ne.s32.totalorder %s5166_s0, %s4315_s19  ;;  %s4320_s24 = scalar_lea.hbm %s5910_s23, 256 }
  0x35   : > { %p4321_p7 = scmp.lt.u32.totalorder %s5166_s0, %s5910_s23  ;;  %p4322_p9 = scmp.lt.u32.totalorder %s4320_s24, %s4315_s19 }
  0x36   : > { %p4318_p3 = pnand %p5872_p0, %p4316_p13  ;;  %p4324_p6 = scmp.lt.u32.totalorder %s4315_s19, %s5166_s0 }
  0x37   : > { %p4323_p10 = por %p4322_p9, %p4321_p7 }
  0x38   : > { %p4319_p5 = pneg %p4318_p3 }
  0x39   : > { %p4325_p1 = por %p4324_p6, %p4323_p10 }
  0x3b   : > { %p4326_p4 = pnand %p4325_p1, %p4319_p5 }
  0x3d   : > { %4329 = shalt.err (!%p4326_p4)
}
  0x3e   : > { %s4330_s2 = scalar_lea.vmem %s522_s25, 128  ;;  %p4338_p2 = scmp.lt.s32.totalorder %s522_s25, %s522_s25 }
  0x3f   : > { %p4331_p8 = scmp.ne.s32.totalorder %s522_s25, %s4330_s2  ;;  %p4339_p12 = scmp.lt.s32.totalorder %s4330_s2, %s4330_s2 }
  0x41   : > { %p4333_p13 = pnand %p4331_p8, %p5872_p0  ;;  %p4340_p7 = por %p4339_p12, %p4338_p2 }
  0x43   : > { %p4334_p3 = pneg %p4333_p13 }
  0x45   : > { %p4341_p9 = pnand %p4340_p7, %p4334_p3 }
  0x47   : > { %4344 = shalt.err (!%p4341_p9)
}
  0x48   : > { %3886 = dma.hbm_to_vmem [thread:$0]  (!%p5173_p11), %s5166_s0, 128, %s522_s25, [#allocation8]  }
  0x49   : > { %s5913_s24 = sld [smem:[#allocation59_spill]]  ;;  %p5914_p4 = scmp.ne.s32.totalorder %s5912_s29, 0 }
  0x4b   : > { %p5212_p6 = pneg %p5914_p4 }
  0x4d   : > { %s5915_s2 = scalar_select %p5212_p6, 1, 0 }
  0x4f   : > { %s4345_s3 = scalar_lea.hbm %s5913_s24, 4096 }
  0x50   : > { %p4346_p1 = scmp.ne.s32.totalorder %s5913_s24, %s4345_s3  ;;  %p4352_p10 = scmp.lt.u32.totalorder %s4345_s3, %s5913_s24 }
  0x52   : > { %p4348_p2 = pnand %p5212_p6, %p4346_p1 }
  0x54   : > { %p4349_p8 = pneg %p4348_p2 }
  0x56   : > { %p4354_p12 = pnand %p4352_p10, %p4349_p8 }
  0x58   : > { %4357 = shalt.err (!%p4354_p12)
}
  0x59   : > { %s4358_s25 = scalar_lea.vmem %s546_s27, 4096  ;;  %p4366_p7 = scmp.lt.s32.totalorder %s546_s27, %s546_s27 }
  0x5a   : > { %p4359_p5 = scmp.ne.s32.totalorder %s546_s27, %s4358_s25  ;;  %p4367_p9 = scmp.lt.s32.totalorder %s4358_s25, %s4358_s25 }
  0x5c   : > { %p4361_p13 = pnand %p4359_p5, %p5212_p6  ;;  %p4368_p0 = por %p4367_p9, %p4366_p7 }
  0x5e   : > { %p4362_p3 = pneg %p4361_p13 }
  0x60   : > { %p4369_p11 = pnand %p4368_p0, %p4362_p3 }
  0x62   : > { %4372 = shalt.err (!%p4369_p11)
}
  0x63   : > { %s4975_s30 = smov 64   ;;  %s4976_s22 = smov 4  }
  0x64   : > { %3892 = dma.hbm_to_vmem [thread:$0]  (!%p5914_p4), %s5913_s24, 4096, %s546_s27, [#allocation11], %s4975_s30, %s4975_s30, %s4976_s22  }
  0x65   : > { %s4977_s28 = smov [#allocation13]   ;;  %s4978_s0 = smov [#allocation16]  }
  0x66   : > { %s571_s19 = sshll.u32 %s4977_s28, 4  ;;  %s597_s20 = sshll.u32 %s4978_s0, 4  ;;  %s572_s19 = int_to_ptr.vmem [resolvable:$true] %s571_s19  ;;  %s5231_s20 = int_to_ptr.vmem [resolvable:$true] %s597_s20 }
  0x67   : > { %s5916_s5 = sld [smem:[#allocation61_spill]] }
  0x6d   : > { %s4373_s18 = scalar_lea.hbm %s5916_s5, 4096 }
  0x6e   : > { %p4374_p11 = scmp.ne.s32.totalorder %s5916_s5, %s4373_s18  ;;  %p4380_p2 = scmp.lt.u32.totalorder %s4373_s18, %s5916_s5 }
  0x70   : > { %p4376_p0 = pnand %p4374_p11, %p5212_p6 }
  0x72   : > { %p4377_p1 = pneg %p4376_p0 }
  0x74   : > { %p4382_p8 = pnand %p4380_p2, %p4377_p1 }
  0x76   : > { %4385 = shalt.err (!%p4382_p8)
}
  0x77   : > { %s4386_s3 = scalar_lea.vmem %s572_s19, 4096  ;;  %p4394_p13 = scmp.lt.s32.totalorder %s572_s19, %s572_s19 }
  0x78   : > { %p4387_p10 = scmp.ne.s32.totalorder %s572_s19, %s4386_s3  ;;  %p4395_p3 = scmp.lt.s32.totalorder %s4386_s3, %s4386_s3 }
  0x7a   : > { %p4389_p12 = pnand %p4387_p10, %p5212_p6  ;;  %p4396_p7 = por %p4395_p3, %p4394_p13 }
  0x7c   : > { %p4390_p5 = pneg %p4389_p12 }
  0x7e   : > { %p4397_p9 = pnand %p4396_p7, %p4390_p5 }
  0x80   : > { %4400 = shalt.err (!%p4397_p9)
}
  0x81   : > { %3898 = dma.hbm_to_vmem [thread:$0]  (!%p5914_p4), %s5916_s5, 4096, %s572_s19, [#allocation14], %s4975_s30, %s4975_s30, %s4976_s22  }
  0x82   : > { %s5917_s7 = sld [smem:[#allocation63_spill]] }
  0x88   : > { %s4401_s28 = scalar_lea.hbm %s5917_s7, 4096 }
  0x89   : > { %p4402_p11 = scmp.ne.s32.totalorder %s5917_s7, %s4401_s28  ;;  %p4408_p2 = scmp.lt.u32.totalorder %s4401_s28, %s5917_s7 }
  0x8b   : > { %p4404_p0 = pnand %p4402_p11, %p5212_p6 }
  0x8d   : > { %p4405_p1 = pneg %p4404_p0 }
  0x8f   : > { %p4410_p8 = pnand %p4408_p2, %p4405_p1 }
  0x91   : > { %4413 = shalt.err (!%p4410_p8)
}
  0x92   : > { %s4414_s19 = scalar_lea.vmem %s5231_s20, 4096  ;;  %p4422_p13 = scmp.lt.s32.totalorder %s5231_s20, %s5231_s20 }
  0x93   : > { %p4415_p10 = scmp.ne.s32.totalorder %s5231_s20, %s4414_s19  ;;  %p4423_p3 = scmp.lt.s32.totalorder %s4414_s19, %s4414_s19 }
  0x95   : > { %p4417_p12 = pnand %p4415_p10, %p5212_p6  ;;  %p4424_p7 = por %p4423_p3, %p4422_p13 }
  0x97   : > { %p4418_p5 = pneg %p4417_p12 }
  0x99   : > { %p4425_p9 = pnand %p4424_p7, %p4418_p5 }
  0x9b   : > { %4428 = shalt.err (!%p4425_p9)
}
  0x9c   : > { %3904 = dma.hbm_to_vmem [thread:$0]  (!%p5914_p4), %s5917_s7, 4096, %s5231_s20, [#allocation17], %s4975_s30, %s4975_s30, %s4976_s22  }
  0x9d   : > { %s4979_s16 = smov [#allocation19]   ;;  %s4429_s0 = scalar_lea.hbm %s5836_s9, 4096 }
  0x9e   : > { %s623_s18 = sshll.u32 %s4979_s16, 4  ;;  %p4430_p11 = scmp.ne.s32.totalorder %s5836_s9, %s4429_s0  ;;  %s624_s18 = int_to_ptr.vmem [resolvable:$true] %s623_s18 }
  0x9f   : > { %p4436_p2 = scmp.lt.u32.totalorder %s4429_s0, %s5836_s9 }
  0xa0   : > { %p4432_p0 = pnand %p4430_p11, %p5212_p6 }
  0xa2   : > { %p4433_p1 = pneg %p4432_p0 }
  0xa4   : > { %p4438_p8 = pnand %p4436_p2, %p4433_p1 }
  0xa6   : > { %4441 = shalt.err (!%p4438_p8)
}
  0xa7   : > { %s4442_s20 = scalar_lea.vmem %s624_s18, 4096  ;;  %p4450_p13 = scmp.lt.s32.totalorder %s624_s18, %s624_s18 }
  0xa8   : > { %p4443_p10 = scmp.ne.s32.totalorder %s624_s18, %s4442_s20  ;;  %p4451_p3 = scmp.lt.s32.totalorder %s4442_s20, %s4442_s20 }
  0xaa   : > { %p4445_p12 = pnand %p4443_p10, %p5212_p6  ;;  %p4452_p7 = por %p4451_p3, %p4450_p13 }
  0xac   : > { %p4446_p5 = pneg %p4445_p12 }
  0xae   : > { %p4453_p9 = pnand %p4452_p7, %p4446_p5 }
  0xb0   : > { %4456 = shalt.err (!%p4453_p9)
}
  0xb1   : > { %s4980_s30 = smov 128   ;;  %s4981_s22 = smov 8  }
  0xb2   : > { %3910 = dma.hbm_to_vmem [thread:$0]  (!%p5914_p4), %s5836_s9, 4096, %s624_s18, [#allocation20], %s4980_s30, %s4980_s30, %s4981_s22  }
  0xb3   : > { %s4982_s16 = smov [#allocation22]   ;;  %s4983_s28 = smov [#allocation25]  }
  0xb4   : > { %s648_s1 = sshll.u32 %s4982_s16, 4  ;;  %s669_s0 = sshll.u32 %s4983_s28, 4  ;;  %s649_s1 = int_to_ptr.vmem [resolvable:$true] %s648_s1  ;;  %s670_s0 = int_to_ptr.vmem [resolvable:$true] %s669_s0 }
  0xb5   : > { %s4457_s27 = scalar_lea.hbm %s5838_s11, 32 }
  0xb6   : > { %p4458_p11 = scmp.ne.s32.totalorder %s5838_s11, %s4457_s27  ;;  %p4464_p2 = scmp.lt.u32.totalorder %s4457_s27, %s5838_s11 }
  0xb8   : > { %p4460_p0 = pnand %p4458_p11, %p5212_p6 }
  0xba   : > { %p4461_p1 = pneg %p4460_p0 }
  0xbc   : > { %p4466_p8 = pnand %p4464_p2, %p4461_p1 }
  0xbe   : > { %4469 = shalt.err (!%p4466_p8)
}
  0xbf   : > { %s4470_s18 = scalar_lea.vmem %s649_s1, 32  ;;  %p4478_p13 = scmp.lt.s32.totalorder %s649_s1, %s649_s1 }
  0xc0   : > { %p4471_p10 = scmp.ne.s32.totalorder %s649_s1, %s4470_s18  ;;  %p4479_p3 = scmp.lt.s32.totalorder %s4470_s18, %s4470_s18 }
  0xc2   : > { %p4473_p12 = pnand %p4471_p10, %p5212_p6  ;;  %p4480_p7 = por %p4479_p3, %p4478_p13 }
  0xc4   : > { %p4474_p5 = pneg %p4473_p12 }
  0xc6   : > { %p4481_p9 = pnand %p4480_p7, %p4474_p5 }
  0xc8   : > { %4484 = shalt.err (!%p4481_p9)
}
  0xc9   : > { %3916 = dma.hbm_to_vmem [thread:$0]  (!%p5914_p4), %s5838_s11, 32, %s649_s1, [#allocation23]  }
  0xca   : > { %s4485_s16 = scalar_lea.hbm %s5840_s13, 4096 }
  0xcb   : > { %p4486_p11 = scmp.ne.s32.totalorder %s5840_s13, %s4485_s16  ;;  %p4492_p2 = scmp.lt.u32.totalorder %s4485_s16, %s5840_s13 }
  0xcd   : > { %p4488_p0 = pnand %p4486_p11, %p5212_p6 }
  0xcf   : > { %p4489_p1 = pneg %p4488_p0 }
  0xd1   : > { %p4494_p8 = pnand %p4492_p2, %p4489_p1 }
  0xd3   : > { %4497 = shalt.err (!%p4494_p8)
}
  0xd4   : > { %s4498_s19 = scalar_lea.vmem %s670_s0, 4096  ;;  %p4506_p13 = scmp.lt.s32.totalorder %s670_s0, %s670_s0 }
  0xd5   : > { %p4499_p10 = scmp.ne.s32.totalorder %s670_s0, %s4498_s19  ;;  %p4507_p3 = scmp.lt.s32.totalorder %s4498_s19, %s4498_s19 }
  0xd7   : > { %p4501_p12 = pnand %p4499_p10, %p5212_p6  ;;  %p4508_p7 = por %p4507_p3, %p4506_p13 }
  0xd9   : > { %p4502_p5 = pneg %p4501_p12 }
  0xdb   : > { %p4509_p9 = pnand %p4508_p7, %p4502_p5 }
  0xdd   : > { %4512 = shalt.err (!%p4509_p9)
}
  0xde   : > { %3922 = dma.hbm_to_vmem [thread:$0]  (!%p5914_p4), %s5840_s13, 4096, %s670_s0, [#allocation26], %s4980_s30, %s4980_s30, %s4981_s22  }
  0xdf   : > { %s4984_s18 = smov [#allocation28]   ;;  %s4985_s14 = smov [#allocation31]  }
  0xe0   : > { %s693_s3 = sshll.u32 %s4984_s18, 4  ;;  %s718_s5 = sshll.u32 %s4985_s14, 4  ;;  %s694_s3 = int_to_ptr.vmem [resolvable:$true] %s693_s3  ;;  %s719_s5 = int_to_ptr.vmem [resolvable:$true] %s718_s5 }
  0xe1   : > { %s4513_s28 = scalar_lea.hbm %s5842_s15, 4096 }
  0xe2   : > { %p4514_p11 = scmp.ne.s32.totalorder %s5842_s15, %s4513_s28  ;;  %p4520_p2 = scmp.lt.u32.totalorder %s4513_s28, %s5842_s15 }
  0xe4   : > { %p4516_p0 = pnand %p4514_p11, %p5212_p6 }
  0xe6   : > { %p4517_p1 = pneg %p4516_p0 }
  0xe8   : > { %p4522_p8 = pnand %p4520_p2, %p4517_p1 }
  0xea   : > { %4525 = shalt.err (!%p4522_p8)
}
  0xeb   : > { %s4526_s0 = scalar_lea.vmem %s694_s3, 4096  ;;  %p4534_p13 = scmp.lt.s32.totalorder %s694_s3, %s694_s3 }
  0xec   : > { %p4527_p10 = scmp.ne.s32.totalorder %s694_s3, %s4526_s0  ;;  %p4535_p3 = scmp.lt.s32.totalorder %s4526_s0, %s4526_s0 }
  0xee   : > { %p4529_p12 = pnand %p4527_p10, %p5212_p6  ;;  %p4536_p7 = por %p4535_p3, %p4534_p13 }
  0xf0   : > { %p4530_p5 = pneg %p4529_p12 }
  0xf2   : > { %p4537_p9 = pnand %p4536_p7, %p4530_p5 }
  0xf4   : > { %4540 = shalt.err (!%p4537_p9)
}
  0xf5   : > { %3928 = dma.hbm_to_vmem [thread:$0]  (!%p5914_p4), %s5842_s15, 4096, %s694_s3, [#allocation29], %s4980_s30, %s4980_s30, %s4981_s22  }
  0xf6   : > { %s5918_s18 = sshll.u32 %s4963_s21, 7  ;;  %s5919_s16 = sld [smem:[#allocation58_spill]] }
  0xf7   : > { %s4541_s27 = scalar_lea.hbm %s5844_s17, 32 }
  0xf8   : > { %p4542_p11 = scmp.ne.s32.totalorder %s5844_s17, %s4541_s27  ;;  %p4548_p2 = scmp.lt.u32.totalorder %s4541_s27, %s5844_s17 }
  0xfa   : > { %p4544_p0 = pnand %p4542_p11, %p5212_p6 }
  0xfc   : > { %s5366_s28 = scalar_lea.hbm %s5919_s16, %s5918_s18  ;;  %p4545_p1 = pneg %p4544_p0 }
  0xfe   : > { %p4550_p8 = pnand %p4548_p2, %p4545_p1 }
 0x100   : > { %4553 = shalt.err (!%p4550_p8)
}
 0x101   : > { %s4554_s22 = scalar_lea.vmem %s719_s5, 32  ;;  %p4562_p13 = scmp.lt.s32.totalorder %s719_s5, %s719_s5 }
 0x102   : > { %p4555_p10 = scmp.ne.s32.totalorder %s719_s5, %s4554_s22  ;;  %p4563_p3 = scmp.lt.s32.totalorder %s4554_s22, %s4554_s22 }
 0x104   : > { %p4557_p12 = pnand %p4555_p10, %p5212_p6  ;;  %p4564_p7 = por %p4563_p3, %p4562_p13 }
 0x106   : > { %p4558_p5 = pneg %p4557_p12 }
 0x108   : > { %p4565_p9 = pnand %p4564_p7, %p4558_p5 }
 0x10a   : > { %4568 = shalt.err (!%p4565_p9)
}
 0x10b   : > { %3934 = dma.hbm_to_vmem [thread:$0]  (!%p5914_p4), %s5844_s17, 32, %s719_s5, [#allocation32]  }
 0x10c   : > { %s4986_s18 = smov [#allocation9]   ;;  %s4987_s7 = smov [#allocation12]  }
 0x10d   : > { %s535_s14 = sshll.u32 %s4986_s18, 4  ;;  %s558_s25 = sshll.u32 %s4987_s7, 4  ;;  %s536_s14 = int_to_ptr.vmem [resolvable:$true] %s535_s14  ;;  %s5386_s25 = int_to_ptr.vmem [resolvable:$true] %s558_s25 }
 0x10e   : > { %s4569_s23 = scalar_lea.hbm %s5366_s28, 128  ;;  %p5920_p0 = scmp.ne.s32.totalorder %s5911_s26, 0 }
 0x10f   : > { %p4570_p11 = scmp.ne.s32.totalorder %s5366_s28, %s4569_s23  ;;  %s4574_s0 = scalar_lea.hbm %s5919_s16, 256 }
 0x110   : > { %p5921_p1 = pneg %p5920_p0  ;;  %p4575_p10 = scmp.lt.u32.totalorder %s5366_s28, %s5919_s16 }
 0x111   : > { %p4576_p12 = scmp.lt.u32.totalorder %s4574_s0, %s4569_s23  ;;  %p4578_p13 = scmp.lt.u32.totalorder %s4569_s23, %s5366_s28 }
 0x112   : > { %p4572_p2 = pnand %p4570_p11, %p5921_p1 }
 0x113   : > { %p4577_p5 = por %p4576_p12, %p4575_p10 }
 0x114   : > { %p4573_p8 = pneg %p4572_p2 }
 0x115   : > { %p4579_p3 = por %p4578_p13, %p4577_p5 }
 0x117   : > { %p4580_p7 = pnand %p4579_p3, %p4573_p8 }
 0x119   : > { %4583 = shalt.err (!%p4580_p7)
}
 0x11a   : > { %s4584_s5 = scalar_lea.vmem %s536_s14, 128  ;;  %p5922_p11 = pmov %p5921_p1 }
 0x11b   : > { %p4585_p9 = scmp.ne.s32.totalorder %s536_s14, %s4584_s5  ;;  %p4592_p4 = scmp.lt.s32.totalorder %s536_s14, %s536_s14 }
 0x11c   : > { %p4593_p6 = scmp.lt.s32.totalorder %s4584_s5, %s4584_s5 }
 0x11d   : > { %p4587_p1 = pnand %p4585_p9, %p5922_p11 }
 0x11e   : > { %p4594_p10 = por %p4593_p6, %p4592_p4 }
 0x11f   : > { %p4588_p2 = pneg %p4587_p1 }
 0x121   : > { %p4595_p12 = pnand %p4594_p10, %p4588_p2 }
 0x123   : > { %4598 = shalt.err (!%p4595_p12)
}
 0x124   : > { %3889 = dma.hbm_to_vmem [thread:$0]  (!%p5920_p0), %s5366_s28, 128, %s536_s14, [#allocation8]  }
 0x125   : > { %s5923_s4 = sld [smem:[#allocation60_spill]]  ;;  %p5924_p5 = scmp.ne.s32.totalorder %s5915_s2, 0 }
 0x12b   : > { %s4599_s20 = scalar_lea.hbm %s5923_s4, 32 }
 0x12c   : > { %p4600_p8 = scmp.ne.s32.totalorder %s5923_s4, %s4599_s20  ;;  %p4606_p4 = scmp.lt.u32.totalorder %s4599_s20, %s5923_s4 }
 0x12e   : > { %p4602_p13 = pnand %p4600_p8, %p5924_p5 }
 0x130   : > { %p4603_p3 = pneg %p4602_p13 }
 0x132   : > { %p4608_p6 = pnand %p4606_p4, %p4603_p3 }
 0x134   : > { %4611 = shalt.err (!%p4608_p6)
}
 0x135   : > { %s4612_s26 = scalar_lea.vmem %s5386_s25, 32  ;;  %p4620_p11 = scmp.lt.s32.totalorder %s5386_s25, %s5386_s25 }
 0x136   : > { %p4613_p0 = scmp.ne.s32.totalorder %s5386_s25, %s4612_s26  ;;  %p4621_p1 = scmp.lt.s32.totalorder %s4612_s26, %s4612_s26 }
 0x138   : > { %p4615_p7 = pnand %p4613_p0, %p5924_p5  ;;  %p4622_p2 = por %p4621_p1, %p4620_p11 }
 0x13a   : > { %p4616_p9 = pneg %p4615_p7 }
 0x13c   : > { %p4623_p10 = pnand %p4622_p2, %p4616_p9 }
 0x13e   : > { %4626 = shalt.err (!%p4623_p10)
}
 0x13f   : > { %s4988_s28 = smov 16   ;;  %s4989_s14 = smov 1  }
 0x140   : > { %p5925_p12 = scmp.ne.s32.totalorder %s5912_s29, 0  ;;  %s4990_s1 = smov [#allocation15]  }
 0x141   : > { %s584_s30 = sshll.u32 %s4990_s1, 4  ;;  %s4991_s5 = smov [#allocation18]   ;;  %s585_s30 = int_to_ptr.vmem [resolvable:$true] %s584_s30 }
 0x142   : > { %3895 = dma.hbm_to_vmem [thread:$0]  (!%p5925_p12), %s5923_s4, 32, %s5386_s25, [#allocation11], %s4988_s28, %s4988_s28, %s4989_s14  }
 0x143   : > { %s610_s22 = sshll.u32 %s4991_s5, 4  ;;  %s5926_s6 = sld [smem:[#allocation62_spill]]  ;;  %s5433_s22 = int_to_ptr.vmem [resolvable:$true] %s610_s22 }
 0x149   : > { %s4627_s18 = scalar_lea.hbm %s5926_s6, 32 }
 0x14a   : > { %p4628_p8 = scmp.ne.s32.totalorder %s5926_s6, %s4627_s18  ;;  %p4634_p4 = scmp.lt.u32.totalorder %s4627_s18, %s5926_s6 }
 0x14c   : > { %p4630_p13 = pnand %p4628_p8, %p5924_p5 }
 0x14e   : > { %p4631_p3 = pneg %p4630_p13 }
 0x150   : > { %p4636_p6 = pnand %p4634_p4, %p4631_p3 }
 0x152   : > { %4639 = shalt.err (!%p4636_p6)
}
 0x153   : > { %s4640_s26 = scalar_lea.vmem %s585_s30, 32  ;;  %p4648_p11 = scmp.lt.s32.totalorder %s585_s30, %s585_s30 }
 0x154   : > { %p4641_p0 = scmp.ne.s32.totalorder %s585_s30, %s4640_s26  ;;  %p4649_p1 = scmp.lt.s32.totalorder %s4640_s26, %s4640_s26 }
 0x156   : > { %p4643_p7 = pnand %p4641_p0, %p5924_p5  ;;  %p4650_p2 = por %p4649_p1, %p4648_p11 }
 0x158   : > { %p4644_p9 = pneg %p4643_p7 }
 0x15a   : > { %p4651_p10 = pnand %p4650_p2, %p4644_p9 }
 0x15c   : > { %4654 = shalt.err (!%p4651_p10)
}
 0x15d   : > { %3901 = dma.hbm_to_vmem [thread:$0]  (!%p5925_p12), %s5926_s6, 32, %s585_s30, [#allocation14], %s4988_s28, %s4988_s28, %s4989_s14  }
 0x15e   : > { %s4655_s3 = scalar_lea.hbm %s5835_s8, 32 }
 0x15f   : > { %p4656_p8 = scmp.ne.s32.totalorder %s5835_s8, %s4655_s3  ;;  %p4662_p4 = scmp.lt.u32.totalorder %s4655_s3, %s5835_s8 }
 0x161   : > { %p4658_p13 = pnand %p4656_p8, %p5924_p5 }
 0x163   : > { %p4659_p3 = pneg %p4658_p13 }
 0x165   : > { %p4664_p6 = pnand %p4662_p4, %p4659_p3 }
 0x167   : > { %4667 = shalt.err (!%p4664_p6)
}
 0x168   : > { %s4668_s30 = scalar_lea.vmem %s5433_s22, 32  ;;  %p4676_p11 = scmp.lt.s32.totalorder %s5433_s22, %s5433_s22 }
 0x169   : > { %p4669_p0 = scmp.ne.s32.totalorder %s5433_s22, %s4668_s30  ;;  %p4677_p1 = scmp.lt.s32.totalorder %s4668_s30, %s4668_s30 }
 0x16b   : > { %p4671_p7 = pnand %p4669_p0, %p5924_p5  ;;  %p4678_p2 = por %p4677_p1, %p4676_p11 }
 0x16d   : > { %p4672_p9 = pneg %p4671_p7 }
 0x16f   : > { %p4679_p10 = pnand %p4678_p2, %p4672_p9 }
 0x171   : > { %4682 = shalt.err (!%p4679_p10)
}
 0x172   : > { %3907 = dma.hbm_to_vmem [thread:$0]  (!%p5925_p12), %s5835_s8, 32, %s5433_s22, [#allocation17], %s4988_s28, %s4988_s28, %s4989_s14  }
 0x173   : > { %s4992_s26 = smov [#allocation21]   ;;  %s4993_s0 = smov [#allocation24]  }
 0x174   : > { %s637_s19 = sshll.u32 %s4992_s26, 4  ;;  %s659_s1 = sshll.u32 %s4993_s0, 4  ;;  %s638_s19 = int_to_ptr.vmem [resolvable:$true] %s637_s19  ;;  %s5482_s1 = int_to_ptr.vmem [resolvable:$true] %s659_s1 }
 0x175   : > { %s4683_s20 = scalar_lea.hbm %s5837_s10, 32 }
 0x176   : > { %p4684_p8 = scmp.ne.s32.totalorder %s5837_s10, %s4683_s20  ;;  %p4690_p4 = scmp.lt.u32.totalorder %s4683_s20, %s5837_s10 }
 0x178   : > { %p4686_p13 = pnand %p4684_p8, %p5924_p5 }
 0x17a   : > { %p4687_p3 = pneg %p4686_p13 }
 0x17c   : > { %p4692_p6 = pnand %p4690_p4, %p4687_p3 }
 0x17e   : > { %4695 = shalt.err (!%p4692_p6)
}
 0x17f   : > { %s4696_s14 = scalar_lea.vmem %s638_s19, 32  ;;  %p4704_p11 = scmp.lt.s32.totalorder %s638_s19, %s638_s19 }
 0x180   : > { %p4697_p0 = scmp.ne.s32.totalorder %s638_s19, %s4696_s14  ;;  %p4705_p1 = scmp.lt.s32.totalorder %s4696_s14, %s4696_s14 }
 0x182   : > { %p4699_p7 = pnand %p4697_p0, %p5924_p5  ;;  %p4706_p2 = por %p4705_p1, %p4704_p11 }
 0x184   : > { %p4700_p9 = pneg %p4699_p7 }
 0x186   : > { %p4707_p10 = pnand %p4706_p2, %p4700_p9 }
 0x188   : > { %4710 = shalt.err (!%p4707_p10)
}
 0x189   : > { %3913 = dma.hbm_to_vmem [thread:$0]  (!%p5925_p12), %s5837_s10, 32, %s638_s19, [#allocation20]  }
 0x18a   : > { %s4711_s26 = scalar_lea.hbm %s5839_s12, 32 }
 0x18b   : > { %p4712_p8 = scmp.ne.s32.totalorder %s5839_s12, %s4711_s26  ;;  %p4718_p4 = scmp.lt.u32.totalorder %s4711_s26, %s5839_s12 }
 0x18d   : > { %p4714_p13 = pnand %p4712_p8, %p5924_p5 }
 0x18f   : > { %p4715_p3 = pneg %p4714_p13 }
 0x191   : > { %p4720_p6 = pnand %p4718_p4, %p4715_p3 }
 0x193   : > { %4723 = shalt.err (!%p4720_p6)
}
 0x194   : > { %s4724_s19 = scalar_lea.vmem %s5482_s1, 32  ;;  %p4732_p11 = scmp.lt.s32.totalorder %s5482_s1, %s5482_s1 }
 0x195   : > { %p4725_p0 = scmp.ne.s32.totalorder %s5482_s1, %s4724_s19  ;;  %p4733_p1 = scmp.lt.s32.totalorder %s4724_s19, %s4724_s19 }
 0x197   : > { %p4727_p7 = pnand %p4725_p0, %p5924_p5  ;;  %p4734_p2 = por %p4733_p1, %p4732_p11 }
 0x199   : > { %p4728_p9 = pneg %p4727_p7 }
 0x19b   : > { %p4735_p10 = pnand %p4734_p2, %p4728_p9 }
 0x19d   : > { %4738 = shalt.err (!%p4735_p10)
}
 0x19e   : > { %3919 = dma.hbm_to_vmem [thread:$0]  (!%p5925_p12), %s5839_s12, 32, %s5482_s1, [#allocation23]  }
 0x19f   : > { %s4994_s23 = smov [#allocation27]   ;;  %s4995_s14 = smov [#allocation30]  }
 0x1a0   : > { %s683_s28 = sshll.u32 %s4994_s23, 4  ;;  %s707_s22 = sshll.u32 %s4995_s14, 4  ;;  %s684_s28 = int_to_ptr.vmem [resolvable:$true] %s683_s28  ;;  %s5525_s22 = int_to_ptr.vmem [resolvable:$true] %s707_s22 }
 0x1a1   : > { %s5927_s25 = sld [smem:[#allocation64_spill]] }
 0x1a7   : > { %s4739_s26 = scalar_lea.hbm %s5927_s25, 32 }
 0x1a8   : > { %p4740_p8 = scmp.ne.s32.totalorder %s5927_s25, %s4739_s26  ;;  %p4746_p4 = scmp.lt.u32.totalorder %s4739_s26, %s5927_s25 }
 0x1aa   : > { %p4742_p13 = pnand %p4740_p8, %p5924_p5 }
 0x1ac   : > { %p4743_p3 = pneg %p4742_p13 }
 0x1ae   : > { %p4748_p6 = pnand %p4746_p4, %p4743_p3 }
 0x1b0   : > { %4751 = shalt.err (!%p4748_p6)
}
 0x1b1   : > { %s4752_s20 = scalar_lea.vmem %s684_s28, 32  ;;  %p4760_p11 = scmp.lt.s32.totalorder %s684_s28, %s684_s28 }
 0x1b2   : > { %p4753_p0 = scmp.ne.s32.totalorder %s684_s28, %s4752_s20  ;;  %p4761_p1 = scmp.lt.s32.totalorder %s4752_s20, %s4752_s20 }
 0x1b4   : > { %p4755_p7 = pnand %p4753_p0, %p5924_p5  ;;  %p4762_p2 = por %p4761_p1, %p4760_p11 }
 0x1b6   : > { %p4756_p9 = pneg %p4755_p7 }
 0x1b8   : > { %p4763_p10 = pnand %p4762_p2, %p4756_p9 }
 0x1ba   : > { %4766 = shalt.err (!%p4763_p10)
}
 0x1bb   : > { %3925 = dma.hbm_to_vmem [thread:$0]  (!%p5925_p12), %s5927_s25, 32, %s684_s28, [#allocation26]  }
 0x1bc   : > { %s5928_s14 = sld [smem:[#allocation65_spill]] }
 0x1c2   : > { %s4767_s30 = scalar_lea.hbm %s5928_s14, 32 }
 0x1c3   : > { %p4768_p8 = scmp.ne.s32.totalorder %s5928_s14, %s4767_s30  ;;  %p4774_p4 = scmp.lt.u32.totalorder %s4767_s30, %s5928_s14 }
 0x1c5   : > { %p4770_p13 = pnand %p4768_p8, %p5924_p5 }
 0x1c7   : > { %p4771_p3 = pneg %p4770_p13 }
 0x1c9   : > { %p4776_p6 = pnand %p4774_p4, %p4771_p3 }
 0x1cb   : > { %4779 = shalt.err (!%p4776_p6)
}
 0x1cc   : > { %s4780_s28 = scalar_lea.vmem %s5525_s22, 32  ;;  %p4788_p11 = scmp.lt.s32.totalorder %s5525_s22, %s5525_s22 }
 0x1cd   : > { %p4781_p0 = scmp.ne.s32.totalorder %s5525_s22, %s4780_s28  ;;  %p4789_p1 = scmp.lt.s32.totalorder %s4780_s28, %s4780_s28 }
 0x1cf   : > { %p4783_p7 = pnand %p4781_p0, %p5924_p5  ;;  %p4790_p2 = por %p4789_p1, %p4788_p11 }
 0x1d1   : > { %p4784_p9 = pneg %p4783_p7 }
 0x1d3   : > { %p4791_p10 = pnand %p4790_p2, %p4784_p9 }
 0x1d5   : > { %4794 = shalt.err (!%p4791_p10)
}
 0x1d6   : > { %3931 = dma.hbm_to_vmem [thread:$0]  (!%p5925_p12), %s5928_s14, 32, %s5525_s22, [#allocation29]  }
 0x1d7   : > { %s4996_s20 = smov [#allocation33]   ;;  %s5929_s23 = sld [smem:[#allocation66_spill]] }
 0x1d8   : > { %s729_s19 = sshll.u32 %s4996_s20, 4  ;;  %s730_s19 = int_to_ptr.vmem [resolvable:$true] %s729_s19 }
 0x1dd   : > { %s4795_s30 = scalar_lea.hbm %s5929_s23, 32 }
 0x1de   : > { %p4796_p8 = scmp.ne.s32.totalorder %s5929_s23, %s4795_s30  ;;  %p4802_p4 = scmp.lt.u32.totalorder %s4795_s30, %s5929_s23 }
 0x1e0   : > { %p4798_p13 = pnand %p4796_p8, %p5924_p5 }
 0x1e2   : > { %p4799_p3 = pneg %p4798_p13 }
 0x1e4   : > { %p4804_p6 = pnand %p4802_p4, %p4799_p3 }
 0x1e6   : > { %4807 = shalt.err (!%p4804_p6)
}
 0x1e7   : > { %s4808_s22 = scalar_lea.vmem %s730_s19, 32  ;;  %p4816_p11 = scmp.lt.s32.totalorder %s730_s19, %s730_s19 }
 0x1e8   : > { %p4809_p0 = scmp.ne.s32.totalorder %s730_s19, %s4808_s22  ;;  %p4817_p1 = scmp.lt.s32.totalorder %s4808_s22, %s4808_s22 }
 0x1ea   : > { %p4811_p7 = pnand %p4809_p0, %p5924_p5  ;;  %p4818_p2 = por %p4817_p1, %p4816_p11 }
 0x1ec   : > { %p4812_p9 = pneg %p4811_p7 }
 0x1ee   : > { %p4819_p10 = pnand %p4818_p2, %p4812_p9 }
 0x1f0   : > { %4822 = shalt.err (!%p4819_p10)
}
 0x1f1   : > { %s5930_s1 = sld [smem:[#allocation49_spill]]  ;;  %s5931_s20 = sld [smem:[#allocation48_spill]] }
 0x1f2   : > { %s5932_s18 = sld [smem:[#allocation47_spill]]  ;;  %s5933_s7 = sld [smem:[#allocation50_spill]] }
 0x1f3   : > { %s5934_s30 = sld [smem:[#allocation52_spill]] }
 0x1f4   : > { %3937 = dma.hbm_to_vmem [thread:$0]  (!%p5925_p12), %s5929_s23, 32, %s730_s19, [#allocation32]  }
 0x1f7   : > { %s56_s2 = sadd.s32 1, %s5930_s1  ;;  %s65_s27 = sadd.s32 1, %s5931_s20 }
 0x1f8   : > { %p58_p5 = scmp.ge.s32.totalorder %s56_s2, 2  ;;  %p72_p8 = scmp.ne.s32.totalorder %s5931_s20, %s5932_s18 }
 0x1f9   : > { %p73_p13 = scmp.eq.s32.totalorder %s5933_s7, 0  ;;  %p5936_p4 = scmp.ne.s32.totalorder %s5934_s30, 0 }
 0x1fa   : > { %s5958_s2 = smov (%p58_p5, %s56_s2), 0  ;;  %p3962_p12 = scmp.lt.s32.totalorder %s5933_s7, 2 }
 0x1fb   : > { %p5593_p3 = por %p73_p13, %p72_p8  ;;  %p5599_p6 = por %p5936_p4, %p72_p8 }
 0x1fc   : > { %s60_s0 = ssub.s32 %s5930_s1, %s5958_s2  ;;  %s740_s19 = sand.u32 1, %s5931_s20  }
 0x1fd   : > { %p63_p0 = scmp.eq.s32.totalorder %s60_s0, 0  ;;  %s3410_s5 = sshll.u32 %s740_s19, 4 }
 0x1fe   : > { %s3645_s22 = sshll.u32 %s5930_s1, 8  ;;  %s5938_s18 = sld [smem:[#allocation56_spill]] }
 0x1ff   : > { %s5960_s20 = smov (!%p63_p0, %s5931_s20), %s65_s27  ;;  %s744_s30 = scalar_lea.vmem [#allocation4], %s3410_s5 }
 0x200   : > { %s754_s6 = sshll.u32 %s744_s30, 4  ;;  %p5620_p7 = pnand %p3962_p12, %p5593_p3  ;;  %s5616_s6 = int_to_ptr.vmem [resolvable:$true] %s754_s6 }
 0x201   : > { %s741_s1 = scalar_lea.sflag [#allocation5], %s740_s19 }
 0x202   : > { %p4825_p11 = pneg %p5620_p7 }
 0x204   : > { %s5614_s4 = scalar_lea.hbm %s5938_s18, %s3645_s22  ;;  %s4828_s22 = scalar_lea.hbm %s5938_s18, 512 }
 0x205   : > { %s4823_s27 = scalar_lea.hbm %s5614_s4, 256  ;;  %p4829_p10 = scmp.lt.u32.totalorder %s5614_s4, %s5938_s18 }
 0x206   : > { %p4824_p9 = scmp.ne.s32.totalorder %s5614_s4, %s4823_s27  ;;  %p4830_p5 = scmp.lt.u32.totalorder %s4828_s22, %s4823_s27 }
 0x207   : > { %p4832_p13 = scmp.lt.u32.totalorder %s4823_s27, %s5614_s4 }
 0x208   : > { %p4826_p1 = pnand %p4825_p11, %p4824_p9  ;;  %p4831_p8 = por %p4830_p5, %p4829_p10 }
 0x20a   : > { %p4827_p2 = pneg %p4826_p1  ;;  %p4833_p3 = por %p4832_p13, %p4831_p8 }
 0x20c   : > { %p4834_p4 = pnand %p4833_p3, %p4827_p2 }
 0x20e   : > { %4837 = shalt.err (!%p4834_p4)
}
 0x20f   : > { %s4838_s19 = scalar_lea.vmem %s5616_s6, 256  ;;  %s4997_s3 = smov [#allocation4]  }
 0x210   : > { %p4839_p12 = scmp.ne.s32.totalorder %s5616_s6, %s4838_s19  ;;  %s4843_s30 = sshll.u32 %s4997_s3, 4  ;;  %s4844_s30 = int_to_ptr.vmem [resolvable:$false] %s4843_s30 }
 0x211   : > { %s4845_s0 = scalar_lea.vmem %s4844_s30, 512  ;;  %p4846_p1 = scmp.lt.s32.totalorder %s5616_s6, %s4844_s30 }
 0x212   : > { %p4841_p0 = pnand %p4839_p12, %p4825_p11  ;;  %p4847_p10 = scmp.lt.s32.totalorder %s4845_s0, %s4838_s19 }
 0x214   : > { %p4842_p9 = pneg %p4841_p0  ;;  %p4848_p5 = por %p4847_p10, %p4846_p1 }
 0x216   : > { %p4849_p8 = pnand %p4848_p5, %p4842_p9 }
 0x218   : > { %4852 = shalt.err (!%p4849_p8)
}
 0x219   : > { %3941 = dma.hbm_to_vmem [thread:$0]  (!%p5620_p7), %s5614_s4, 256, %s5616_s6, %s741_s1  }
 0x21a   : > { %s5940_s27 = sld [smem:[#allocation55_spill]] }
 0x220   : > { %p5941_p2 = scmp.ne.s32.totalorder %s5940_s27, 0 }
 0x221   : > { %s5942_s5 = sld [smem:[#allocation47_spill]] (!%p5941_p2)  ;;  %s5943_s22 = sld [smem:[#allocation53_spill]] (!%p5941_p2) }
 0x222   : > { %763 = sbr.rel (%p5941_p2) target bundleno = 3416 (0xd58), region = 96 }
 0x227   : > { %s5652_s29 = sand.u32 (!%p5941_p2), 1, %s5942_s5   ;;  %p5944_p11 = scmp.ne.s32.totalorder (!%p5941_p2), %s5943_s22, 0 }
 0x228   : > { %s3414_s28 = sshll.u32 (!%p5941_p2), %s5652_s29, 4  ;;  %s766_s19 = scalar_lea.sflag (!%p5941_p2), [#allocation5], %s5652_s29 }
 0x229   : > { %s5658_s3 = scalar_lea.vmem [#allocation4], %s3414_s28 }
 0x22a   : > { %4906 = dma.done.wait (%p5944_p11), %s766_s19, 256  }
 0x22b   : > { %4908 = vsyncadd (%p5944_p11), %s766_s19, 4294967040 }
 0x22c   : > { %4910 = dma.done.wait (%p5944_p11), [#allocation8], 256  }
 0x22d   : > { %4912 = vsyncadd (%p5944_p11), [#allocation8], 4294967040  ;;  %s5945_s4 = sld [smem:[#allocation51_spill]] }
 0x233   : > { %p5946_p7 = scmp.ne.s32.totalorder %s5945_s4, 0 }
 0x235   : > { %4914 = dma.done.wait (%p5946_p7), [#allocation11], 4128  }
 0x236   : > { %4916 = vsyncadd (%p5946_p7), [#allocation11], 4294963168 }
 0x237   : > { %4918 = dma.done.wait (%p5946_p7), [#allocation14], 4128  }
 0x238   : > { %4920 = vsyncadd (%p5946_p7), [#allocation14], 4294963168 }
 0x239   : > { %4922 = dma.done.wait (%p5946_p7), [#allocation17], 4128  }
 0x23a   : > { %4924 = vsyncadd (%p5946_p7), [#allocation17], 4294963168 }
 0x23b   : > { %4926 = dma.done.wait (%p5946_p7), [#allocation20], 4128  }
 0x23c   : > { %4928 = vsyncadd (%p5946_p7), [#allocation20], 4294963168 }
 0x23d   : > { %4930 = dma.done.wait (%p5946_p7), [#allocation23], 64  }
 0x23e   : > { %4932 = vsyncadd (%p5946_p7), [#allocation23], 4294967232 }
 0x23f   : > { %4934 = dma.done.wait (%p5946_p7), [#allocation26], 4128  }
 0x240   : > { %4936 = vsyncadd (%p5946_p7), [#allocation26], 4294963168 }
 0x241   : > { %4938 = dma.done.wait (%p5946_p7), [#allocation29], 4128  }
 0x242   : > { %4940 = vsyncadd (%p5946_p7), [#allocation29], 4294963168 }
 0x243   : > { %4942 = dma.done.wait (%p5946_p7), [#allocation32], 64  }
 0x244   : > { %4944 = vsyncadd (%p5946_p7), [#allocation32], 4294967232  ;;  %v4055_v0 = vld [vmem:[#allocation13 + $0x40] sm:$0xff]   ;;  %v4057_v2 = vld [vmem:[#allocation13 + $0x48] sm:$0xff]   ;;  %vm4999_vm0 = vmmov 0   ;;  %vm1885_vm1 = vcmask 1043456  }
 0x245   : > { %v4056_v1 = vld [vmem:[#allocation13] sm:$0xff]   ;;  %3647 = vmatprep.subr.bf16.mxu0 %v4055_v0  ;;  %v4058_v3 = vld [vmem:[#allocation13 + $0x8] sm:$0xff]   ;;  %v4059_v4 = vld [vmem:[#allocation13 + $0x50] sm:$0xff]   ;;  %vm1866_vm2 = vcmask 64512   ;;  %s3646_s6 = sshll.u32 %s4963_s21, 8  ;;  %s895_s7 = scalar_lea.vmem [#allocation34], %s3414_s28 }
 0x246   : > { %3648 = vmatpush3.bf16.msra.mxu0 %v4056_v1  ;;  %v4060_v5 = vld [vmem:[#allocation13 + $0x10] sm:$0xff]   ;;  %v4061_v6 = vld [vmem:[#allocation13 + $0x58] sm:$0xff]   ;;  %v4063_v8 = vld [vmem:[#allocation13 + $0x60] sm:$0xff]   ;;  %s3123_s1 = sshll.u32 %s895_s7, 4  ;;  %s5947_s27 = sld [smem:[#allocation67_spill]]  ;;  %s5780_s1 = int_to_ptr.vmem [resolvable:$true] %s3123_s1 }
 0x247   : > { %3649 = vmatprep.subr.bf16.mxu0 %v4057_v2  ;;  %v4062_v7 = vld [vmem:[#allocation13 + $0x18] sm:$0xff]   ;;  %v4064_v9 = vld [vmem:[#allocation13 + $0x20] sm:$0xff]   ;;  %v4065_v10 = vld [vmem:[#allocation13 + $0x68] sm:$0xff]   ;;  %s3107_s21 = scalar_lea.sflag [#allocation6], %s5652_s29  ;;  %s4853_s22 = scalar_lea.vmem %s5780_s1, 256 }
 0x248   : > { %v901_v11 = vld [vmem:[#allocation7] sm:$0xff]  ;;  %v4069_v16 = vld [vmem:[#allocation13 + $0x78] sm:$0xff]   ;;  %v4073_v18 = vld [vmem:[#allocation13 + $0xc0] sm:$0xff]   ;;  %p4854_p13 = scmp.ne.s32.totalorder %s5780_s1, %s4853_s22  ;;  %s5001_s28 = smov [#allocation34]  }
 0x249   : > { %v5700_v12 = vcombine.high %v901_v11, %v901_v11  ;;  %v4066_v13 = vld [vmem:[#allocation13 + $0x28] sm:$0xff]   ;;  %v4067_v14 = vld [vmem:[#allocation13 + $0x70] sm:$0xff]   ;;  %v4070_v17 = vld [vmem:[#allocation13 + $0x38] sm:$0xff]   ;;  %v5703_v19 = vcombine.low %v901_v11, %v901_v11  ;;  %s4857_s19 = sshll.u32 %s5001_s28, 4  ;;  %s4858_s19 = int_to_ptr.vmem [resolvable:$false] %s4857_s19 }
 0x24a   : > { %3650 = vmatpush3.bf16.msra.mxu0 %v4058_v3  ;;  %v4068_v15 = vld [vmem:[#allocation13 + $0x30] sm:$0xff]   ;;  %v4074_v20 = vld [vmem:[#allocation13 + $0x80] sm:$0xff]   ;;  %v4075_v21 = vld [vmem:[#allocation13 + $0xc8] sm:$0xff]   ;;  %p4855_p3 = pnand %p4854_p13, %p5599_p6  ;;  %p4860_p12 = scmp.lt.s32.totalorder %s5780_s1, %s4858_s19 }
 0x24b   : > { %3651 = vmatprep.subr.bf16.mxu0 %v4059_v4  ;;  %1077 = vmatprep.mubr.bf16.mxu0 %v5700_v12  ;;  %v4076_v22 = vld [vmem:[#allocation13 + $0x88] sm:$0xff]   ;;  %v4077_v23 = vld [vmem:[#allocation13 + $0xd0] sm:$0xff]   ;;  %v4079_v25 = vld [vmem:[#allocation13 + $0xd8] sm:$0xff]  }
 0x24c   : > { %v4078_v24 = vld [vmem:[#allocation13 + $0x90] sm:$0xff]   ;;  %v4080_v26 = vld [vmem:[#allocation13 + $0x98] sm:$0xff]   ;;  %v4081_v27 = vld [vmem:[#allocation13 + $0xe0] sm:$0xff]   ;;  %s5778_s5 = scalar_lea.hbm %s5947_s27, %s3646_s6  ;;  %p4856_p4 = pneg %p4855_p3 }
 0x24d   : > { %v4082_v28 = vld [vmem:[#allocation13 + $0xa0] sm:$0xff]   ;;  %v4083_v29 = vld [vmem:[#allocation13 + $0xe8] sm:$0xff]   ;;  %v4085_v32 = vld [vmem:[#allocation13 + $0xf0] sm:$0xff]  }
 0x24e   : > { %3652 = vmatpush3.bf16.msra.mxu0 %v4060_v5  ;;  %v4084_v30 = vld [vmem:[#allocation13 + $0xa8] sm:$0xff]   ;;  %v4109_v36 = vld [vmem:[#allocation16 + $0x50] sm:$0xff]   ;;  %v4111_v40 = vld [vmem:[#allocation16 + $0x58] sm:$0xff]  }
 0x24f   : > { %3653 = vmatprep.subr.bf16.mxu0 %v4061_v6  ;;  %v4105_v31 = vld [vmem:[#allocation16 + $0x40] sm:$0xff]   ;;  %v4107_v34 = vld [vmem:[#allocation16 + $0x48] sm:$0xff]   ;;  %v4087_v38 = vld [vmem:[#allocation13 + $0xf8] sm:$0xff]  }
 0x250   : > { %v4106_v33 = vld [vmem:[#allocation16] sm:$0xff]   ;;  %3669 = vmatprep.subr.bf16.mxu1 %v4105_v31  ;;  %v4108_v35 = vld [vmem:[#allocation16 + $0x8] sm:$0xff]   ;;  %v4110_v39 = vld [vmem:[#allocation16 + $0x10] sm:$0xff]  }
 0x251   : > { %3670 = vmatpush3.bf16.msra.mxu1 %v4106_v33  ;;  %v4086_v37 = vld [vmem:[#allocation13 + $0xb0] sm:$0xff]   ;;  %v4088_v41 = vld [vmem:[#allocation13 + $0xb8] sm:$0xff]   ;;  %v4113_v44 = vld [vmem:[#allocation16 + $0x60] sm:$0xff]  }
 0x252   : > { %3654 = vmatpush3.bf16.msra.mxu0 %v4062_v7  ;;  %3671 = vmatprep.subr.bf16.mxu1 %v4107_v34  ;;  %v4089_v42 = vld [vmem:[#allocation10 + $0x40] sm:$0xff]   ;;  %v4091_v46 = vld [vmem:[#allocation10 + $0x48] sm:$0xff]   ;;  %v902_v48 = vld [vmem:[#allocation9] sm:$0xff] }
 0x253   : > { %3655 = vmatprep.subr.bf16.mxu0 %v4063_v8  ;;  %v4112_v43 = vld [vmem:[#allocation16 + $0x18] sm:$0xff]   ;;  %v4114_v47 = vld [vmem:[#allocation16 + $0x20] sm:$0xff]   ;;  %v4115_v49 = vld [vmem:[#allocation16 + $0x68] sm:$0xff]   ;;  %v3453_v50 = vcombine.high %v902_v48, %v902_v48  ;;  %v3452_v2 = vcombine.low %v902_v48, %v902_v48 }
 0x254   : > { %v4090_v45 = vld [vmem:[#allocation10] sm:$0xff]   ;;  %v4092_v51 = vld [vmem:[#allocation10 + $0x8] sm:$0xff]   ;;  %v4093_v52 = vld [vmem:[#allocation10 + $0x50] sm:$0xff]  }
 0x255   : > { %3672 = vmatpush3.bf16.msra.mxu1 %v4108_v35  ;;  %v4116_v53 = vld [vmem:[#allocation16 + $0x28] sm:$0xff]   ;;  %v4117_v54 = vld [vmem:[#allocation16 + $0x70] sm:$0xff]   ;;  %1261 = vmatprep.mubr.bf16.mxu1 %v3453_v50  ;;  %v4119_v59 = vld [vmem:[#allocation16 + $0x78] sm:$0xff]  }
 0x256   : > { %3656 = vmatpush3.bf16.msra.mxu0 %v4064_v9  ;;  %3673 = vmatprep.subr.bf16.mxu1 %v4109_v36  ;;  %v4094_v55 = vld [vmem:[#allocation10 + $0x10] sm:$0xff]   ;;  %v4095_v56 = vld [vmem:[#allocation10 + $0x58] sm:$0xff]   ;;  %v4097_v60 = vld [vmem:[#allocation10 + $0x60] sm:$0xff]  }
 0x257   : > { %3657 = vmatprep.subr.bf16.mxu0 %v4065_v10  ;;  %v4118_v57 = vld [vmem:[#allocation16 + $0x30] sm:$0xff]   ;;  %v4120_v61 = vld [vmem:[#allocation16 + $0x38] sm:$0xff]   ;;  %v4123_v62 = vld [vmem:[#allocation16 + $0xc0] sm:$0xff]  }
 0x258   : > { %v4096_v58 = vld [vmem:[#allocation10 + $0x18] sm:$0xff]   ;;  %v4098_v63 = vld [vmem:[#allocation10 + $0x20] sm:$0xff]   ;;  %v4099_v0 = vld [vmem:[#allocation10 + $0x68] sm:$0xff]  }
 0x259   : > { %3674 = vmatpush3.bf16.msra.mxu1 %v4110_v39  ;;  %v4124_v1 = vld [vmem:[#allocation16 + $0x80] sm:$0xff]   ;;  %v4125_v3 = vld [vmem:[#allocation16 + $0xc8] sm:$0xff]   ;;  %v4127_v7 = vld [vmem:[#allocation16 + $0xd0] sm:$0xff]  }
 0x25a   : > { %3658 = vmatpush3.bf16.msra.mxu0 %v4066_v13  ;;  %3675 = vmatprep.subr.bf16.mxu1 %v4111_v40  ;;  %v4100_v4 = vld [vmem:[#allocation10 + $0x28] sm:$0xff]   ;;  %v4101_v5 = vld [vmem:[#allocation10 + $0x70] sm:$0xff]   ;;  %v4103_v9 = vld [vmem:[#allocation10 + $0x78] sm:$0xff]  }
 0x25b   : > { %3659 = vmatprep.subr.bf16.mxu0 %v4067_v14  ;;  %v4126_v6 = vld [vmem:[#allocation16 + $0x88] sm:$0xff]   ;;  %v4128_v10 = vld [vmem:[#allocation16 + $0x90] sm:$0xff]   ;;  %v4129_v11 = vld [vmem:[#allocation16 + $0xd8] sm:$0xff]  }
 0x25c   : > { %v4102_v8 = vld [vmem:[#allocation10 + $0x30] sm:$0xff]   ;;  %v4104_v13 = vld [vmem:[#allocation10 + $0x38] sm:$0xff]   ;;  %v3470_v35 = vld [vmem:[#allocation15 + $0x1] ss:$0 sm:$0xff] }
 0x25d   : > { %3676 = vmatpush3.bf16.msra.mxu1 %v4112_v43  ;;  %v4130_v14 = vld [vmem:[#allocation16 + $0x98] sm:$0xff]  }
 0x25e   : > { %3660 = vmatpush3.bf16.msra.mxu0 %v4068_v15  ;;  %3677 = vmatprep.subr.bf16.mxu1 %v4113_v44  ;;  %v4131_v15 = vld [vmem:[#allocation16 + $0xe0] sm:$0xff]  }
 0x25f   : > { %3661 = vmatprep.subr.bf16.mxu0 %v4069_v16  ;;  %v4132_v16 = vld [vmem:[#allocation16 + $0xa0] sm:$0xff]  }
 0x260   : > { %v3451_v44 = vld [vmem:[#allocation18] ss:$0 sm:$0xff] }
 0x261   : > { %3678 = vmatpush3.bf16.msra.mxu1 %v4114_v47 }
 0x262   : > { %3662 = vmatpush3.bf16.msra.mxu0 %v4070_v17  ;;  %3679 = vmatprep.subr.bf16.mxu1 %v4115_v49  ;;  %v4133_v17 = vld [vmem:[#allocation16 + $0xe8] sm:$0xff]  }
 0x263   : > { %3691 = vmatprep.subr.bf16.mxu0 %v4073_v18  ;;  %v4134_v18 = vld [vmem:[#allocation16 + $0xa8] sm:$0xff]  }
 0x265   : > { %1078 = vmatmul.mubr.bf16.vlgmr.msra.gmra.mrb[0].mxu0 %v5703_v19  ;;  %3680 = vmatpush3.bf16.msra.mxu1 %v4116_v53 }
 0x266   : > { %3692 = vmatpush3.bf16.msra.mxu0 %v4074_v20  ;;  %1440 = vmatprep.mubr.bf16.mxu0 %v5700_v12  ;;  %v4135_v20 = vld [vmem:[#allocation16 + $0xf0] sm:$0xff]  }
 0x267   : > { %3693 = vmatprep.subr.bf16.mxu0 %v4075_v21  ;;  %3681 = vmatprep.subr.bf16.mxu1 %v4117_v54  ;;  %v4136_v21 = vld [vmem:[#allocation16 + $0xb0] sm:$0xff]  }
 0x269   : > { %3682 = vmatpush3.bf16.msra.mxu1 %v4118_v57 }
 0x26a   : > { %3694 = vmatpush3.bf16.msra.mxu0 %v4076_v22  ;;  %3683 = vmatprep.subr.bf16.mxu1 %v4119_v59  ;;  %v4137_v22 = vld [vmem:[#allocation16 + $0xf8] sm:$0xff]  }
 0x26b   : > { %3695 = vmatprep.subr.bf16.mxu0 %v4077_v23  ;;  %v4138_v23 = vld [vmem:[#allocation16 + $0xb8] sm:$0xff]  }
 0x26d   : > { %3684 = vmatpush3.bf16.msra.mxu1 %v4120_v61 }
 0x26e   : > { %3696 = vmatpush3.bf16.msra.mxu0 %v4078_v24  ;;  %3713 = vmatprep.subr.bf16.mxu1 %v4123_v62  ;;  %v4998_v24 = vmov 0.0  }
 0x26f   : > { %3697 = vmatprep.subr.bf16.mxu0 %v4079_v25 }
 0x270   : > { %1262 = vmatmul.mubr.bf16.vlgmr.msra.gmra.mrb[0].mxu1 %v3452_v2 }
 0x271   : > { %3714 = vmatpush3.bf16.msra.mxu1 %v4124_v1  ;;  %1620 = vmatprep.mubr.bf16.mxu1 %v3453_v50 }
 0x272   : > { %3698 = vmatpush3.bf16.msra.mxu0 %v4080_v26  ;;  %3715 = vmatprep.subr.bf16.mxu1 %v4125_v3  ;;  %v3432_v26 = vld [vmem:[#allocation15] ss:$0 sm:$0xff] }
 0x273   : > { %3699 = vmatprep.subr.bf16.mxu0 %v4081_v27 }
 0x275   : > { %3716 = vmatpush3.bf16.msra.mxu1 %v4126_v6 }
 0x276   : > { %3700 = vmatpush3.bf16.msra.mxu0 %v4082_v28  ;;  %3717 = vmatprep.subr.bf16.mxu1 %v4127_v7 }
 0x277   : > { %3701 = vmatprep.subr.bf16.mxu0 %v4083_v29 }
 0x279   : > { %3718 = vmatpush3.bf16.msra.mxu1 %v4128_v10 }
 0x27a   : > { %3702 = vmatpush3.bf16.msra.mxu0 %v4084_v30  ;;  %3719 = vmatprep.subr.bf16.mxu1 %v4129_v11  ;;  %v4139_v11 = vld [vmem:[#allocation10 + $0xc0] sm:$0xff]  }
 0x27b   : > { %3703 = vmatprep.subr.bf16.mxu0 %v4085_v32 }
 0x27d   : > { %3720 = vmatpush3.bf16.msra.mxu1 %v4130_v14 }
 0x27e   : > { %3704 = vmatpush3.bf16.msra.mxu0 %v4086_v37  ;;  %3721 = vmatprep.subr.bf16.mxu1 %v4131_v15 }
 0x27f   : > { %3705 = vmatprep.subr.bf16.mxu0 %v4087_v38 }
 0x281   : > { %3722 = vmatpush3.bf16.msra.mxu1 %v4132_v16 }
 0x282   : > { %3706 = vmatpush3.bf16.msra.mxu0 %v4088_v41  ;;  %3723 = vmatprep.subr.bf16.mxu1 %v4133_v17  ;;  %v4140_v17 = vld [vmem:[#allocation10 + $0x80] sm:$0xff]  }
 0x283   : > { %3735 = vmatprep.subr.bf16.mxu0 %v4089_v42 }
 0x285   : > { %1441 = vmatmul.mubr.bf16.vlgmr.msra.gmra.mrb[4].mxu0 %v5703_v19  ;;  %3724 = vmatpush3.bf16.msra.mxu1 %v4134_v18 }
 0x286   : > { %3736 = vmatpush3.bf16.msra.mxu0 %v4090_v45  ;;  %1814 = vmatprep.mubr.bf16.mxu0 %v5700_v12 }
 0x287   : > { %3737 = vmatprep.subr.bf16.mxu0 %v4091_v46  ;;  %3725 = vmatprep.subr.bf16.mxu1 %v4135_v20 }
 0x289   : > { %3726 = vmatpush3.bf16.msra.mxu1 %v4136_v21  ;;  %v4141_v21 = vld [vmem:[#allocation10 + $0xc8] sm:$0xff]  }
 0x28a   : > { %3738 = vmatpush3.bf16.msra.mxu0 %v4092_v51  ;;  %3727 = vmatprep.subr.bf16.mxu1 %v4137_v22  ;;  %v4142_v22 = vld [vmem:[#allocation10 + $0x88] sm:$0xff]  }
 0x28b   : > { %3739 = vmatprep.subr.bf16.mxu0 %v4093_v52  ;;  %v3504_v52 = vld [vmem:[#allocation12] ss:$0 sm:$0xff] }
 0x28d   : > { %3728 = vmatpush3.bf16.msra.mxu1 %v4138_v23  ;;  %v4143_v23 = vld [vmem:[#allocation10 + $0xd0] sm:$0xff]  }
 0x28e   : > { %3740 = vmatpush3.bf16.msra.mxu0 %v4094_v55  ;;  %3787 = vmatprep.subr.bf16.mxu1 %v4998_v24 }
 0x28f   : > { %3741 = vmatprep.subr.bf16.mxu0 %v4095_v56 }
 0x290   : > { %1621 = vmatmul.mubr.bf16.vlgmr.msra.gmra.mrb[4].mxu1 %v3452_v2 }
 0x291   : > { %3789 = vmatprep.mubr.msk.bf16.mxu1 %vm4999_vm0, %v4998_v24 }
 0x292   : > { %3742 = vmatpush3.bf16.msra.mxu0 %v4096_v58 }
 0x293   : > { %3743 = vmatprep.subr.bf16.mxu0 %v4097_v60 }
 0x296   : > { %3744 = vmatpush3.bf16.msra.mxu0 %v4098_v63  ;;  %v3487_v63 = vld [vmem:[#allocation18 + $0x1] ss:$0 sm:$0xff] }
 0x297   : > { %3745 = vmatprep.subr.bf16.mxu0 %v4099_v0 }
 0x29a   : > { %3746 = vmatpush3.bf16.msra.mxu0 %v4100_v4 }
 0x29b   : > { %3747 = vmatprep.subr.bf16.mxu0 %v4101_v5 }
 0x29e   : > { %3748 = vmatpush3.bf16.msra.mxu0 %v4102_v8 }
 0x29f   : > { %3749 = vmatprep.subr.bf16.mxu0 %v4103_v9 }
 0x2a2   : > { %3750 = vmatpush3.bf16.msra.mxu0 %v4104_v13 }
 0x2a3   : > { %3799 = vmatprep.subr.bf16.mxu0 %v4998_v24 }
 0x2a5   : > { %1815 = vmatmul.mubr.bf16.vlgmr.msra.gmra.mrb[8].mxu0 %v5703_v19 }
 0x2a6   : > { %3801 = vmatprep.mubr.msk.bf16.mxu0 %vm4999_vm0, %v4998_v24 }
 0x338   : > { %v3663_v25 = vpop.f32.mrb[0].mxu0 }
 0x339   : > { %v3664_v27 = vpop.f32.mrb[1].mxu0 }
 0x33a   : > { %v3665_v28 = vadd.f32 %v3664_v27, %v3663_v25  ;;  %v3666_v29 = vpop.f32.mrb[2].mxu0  ;;  %v4144_v25 = vld [vmem:[#allocation10 + $0x90] sm:$0xff]   ;;  %v4146_v27 = vld [vmem:[#allocation10 + $0x98] sm:$0xff]  }
 0x33b   : > { %v3667_v30 = vpop.f32.mrb[3].mxu0  ;;  %v4148_v29 = vld [vmem:[#allocation10 + $0xa0] sm:$0xff]  }
 0x33c   : > { %v1080_v31 = vadd.f32 %v3665_v28, %v3432_v26  ;;  %v4145_v26 = vld [vmem:[#allocation10 + $0xd8] sm:$0xff]   ;;  %v4147_v28 = vld [vmem:[#allocation10 + $0xe0] sm:$0xff]   ;;  %v4149_v30 = vld [vmem:[#allocation10 + $0xe8] sm:$0xff]  }
 0x33e   : > { %v1085_v32 = vpack.c.bf16 %v1080_v31, %v1080_v31  ;;  %v4150_v31 = vld [vmem:[#allocation10 + $0xa8] sm:$0xff]  }
 0x340   : > { %1086 = vst [vmem:[#allocation2] sm:$0xf] %v1085_v32  ;;  %v4151_v32 = vld [vmem:[#allocation10 + $0xf0] sm:$0xff]  }
 0x343   : > { %v3685_v43 = vpop.f32.mrb[0].mxu1 }
 0x344   : > { %v3686_v45 = vpop.f32.mrb[1].mxu1 }
 0x345   : > { %v3687_v46 = vadd.f32 %v3686_v45, %v3685_v43  ;;  %v3688_v47 = vpop.f32.mrb[2].mxu1  ;;  %v4169_v43 = vld [vmem:[#allocation19 + $0x44] ss:$8 sps:$4 sm:$0xff]   ;;  %v4172_v45 = vld [vmem:[#allocation19 + $0x54] ss:$8 sps:$4 sm:$0xff]  }
 0x346   : > { %v3689_v48 = vpop.f32.mrb[3].mxu1  ;;  %v4173_v47 = vld [vmem:[#allocation19 + $0x60] ss:$8 sps:$4 sm:$0xff]  }
 0x347   : > { %v1824_v33 = vld [vmem:[#allocation2] sm:$0xf]  ;;  %v1264_v49 = vadd.f32 %v3687_v46, %v3451_v44  ;;  %v4167_v44 = vld [vmem:[#allocation19 + $0x40] ss:$8 sps:$4 sm:$0xff]  }
 0x348   : > { %3788 = vmatpush3.bf16.xpose.msra.mxu1 %v1824_v33  ;;  %v4153_v33 = vld [vmem:[#allocation10 + $0xf8] sm:$0xff]  }
 0x349   : > { %3793 = vmatprep.subr.bf16.mxu1 %v4998_v24  ;;  %v1269_v50 = vpack.c.bf16 %v1264_v49, %v1264_v49  ;;  %v4170_v46 = vld [vmem:[#allocation19 + $0x50] ss:$8 sps:$4 sm:$0xff]   ;;  %v4178_v48 = vld [vmem:[#allocation19 + $0x74] ss:$8 sps:$4 sm:$0xff]  }
 0x34a   : > { %v4176_v49 = vld [vmem:[#allocation19 + $0x70] ss:$8 sps:$4 sm:$0xff]  }
 0x34b   : > { %1270 = vst [vmem:[#allocation3] sm:$0xf] %v1269_v50  ;;  %v5000_v50 = vmov 0  }
 0x352   : > { %v1825_v58 = vld [vmem:[#allocation3] sm:$0xf] }
 0x353   : > { %v1887_v61 = vsel %vm1885_vm1, %v1825_v58, 0 }
 0x358   : > { %v3707_v34 = vpop.f32.mrb[4].mxu0 }
 0x359   : > { %v3708_v36 = vpop.f32.mrb[5].mxu0 }
 0x35a   : > { %v3709_v37 = vadd.f32 %v3708_v36, %v3707_v34  ;;  %v3710_v38 = vpop.f32.mrb[6].mxu0  ;;  %v4154_v34 = vld [vmem:[#allocation10 + $0xb8] sm:$0xff]   ;;  %v4155_v36 = vld [vmem:[#allocation19] ss:$8 sps:$4 sm:$0xff]  }
 0x35b   : > { %v3711_v39 = vpop.f32.mrb[7].mxu0  ;;  %v4158_v38 = vld [vmem:[#allocation19 + $0x10] ss:$8 sps:$4 sm:$0xff]  }
 0x35c   : > { %v1443_v40 = vadd.f32 %v3709_v37, %v3470_v35  ;;  %v4157_v35 = vld [vmem:[#allocation19 + $0x4] ss:$8 sps:$4 sm:$0xff]   ;;  %v4160_v37 = vld [vmem:[#allocation19 + $0x14] ss:$8 sps:$4 sm:$0xff]  }
 0x35d   : > { %v4163_v39 = vld [vmem:[#allocation19 + $0x24] ss:$8 sps:$4 sm:$0xff]  }
 0x35e   : > { %v1448_v41 = vpack.c.bf16 %v1443_v40, %v1443_v40  ;;  %v4161_v40 = vld [vmem:[#allocation19 + $0x20] ss:$8 sps:$4 sm:$0xff]  }
 0x360   : > { %1450 = vst [vmem:[#allocation2 + $0x4] sm:$0xf] %v1448_v41  ;;  %v4166_v41 = vld [vmem:[#allocation19 + $0x34] ss:$8 sps:$4 sm:$0xff]  }
 0x363   : > { %v3729_v62 = vpop.f32.mrb[4].mxu1 }
 0x364   : > { %v3730_v0 = vpop.f32.mrb[5].mxu1 }
 0x365   : > { %v3731_v1 = vadd.f32 %v3730_v0, %v3729_v62  ;;  %v3732_v2 = vpop.f32.mrb[6].mxu1 }
 0x366   : > { %v3733_v3 = vpop.f32.mrb[7].mxu1  ;;  %v3524_v2 = vld [vmem:[#allocation12 + $0x1] ss:$0 sm:$0xff] }
 0x367   : > { %v2132_v42 = vld [vmem:[#allocation2 + $0x4] sm:$0xf]  ;;  %v1623_v4 = vadd.f32 %v3731_v1, %v3487_v63 }
 0x368   : > { %3800 = vmatpush3.bf16.xpose.msra.mxu0 %v2132_v42  ;;  %v4164_v42 = vld [vmem:[#allocation19 + $0x30] ss:$8 sps:$4 sm:$0xff]  }
 0x369   : > { %3805 = vmatprep.subr.bf16.mxu0 %v4998_v24  ;;  %v1628_v5 = vpack.c.bf16 %v1623_v4, %v1623_v4 }
 0x36b   : > { %1630 = vst [vmem:[#allocation3 + $0x4] sm:$0xf] %v1628_v5 }
 0x378   : > { %v3751_v51 = vpop.f32.mrb[8].mxu0 }
 0x379   : > { %v3752_v53 = vpop.f32.mrb[9].mxu0 }
 0x37a   : > { %v3753_v54 = vadd.f32 %v3752_v53, %v3751_v51  ;;  %v3754_v55 = vpop.f32.mrb[10].mxu0 }
 0x37b   : > { %v3755_v56 = vpop.f32.mrb[11].mxu0 }
 0x37c   : > { %v1817_v57 = vadd.f32 %v3753_v54, %v3504_v52 }
 0x37e   : > { %v1822_v59 = vmul.f32 0.088388346, %v1817_v57 }
 0x380   : > { %v1823_v60 = vpack.c.bf16 %v1822_v59, %v1822_v59 }
 0x382   : > { %3790 = vmatmul.mubr.bf16.vlgmr.msra.gmra.mrb[8].mxu1 %v1823_v60 }
 0x383   : > { %3794 = vmatpush3.bf16.msra.mxu1 %v1887_v61  ;;  %3795 = vmatprep.mubr.msk.bf16.mxu1 %vm4999_vm0, %v4998_v24 }
 0x384   : > { %3761 = vmatprep.subr.bf16.mxu1 %v4139_v11 }
 0x455   : > { %v1860_v6 = vpop.f32.mrb[8].mxu1 }
 0x456   : > { %v3791_v7 = vpop.f32.mrb[9].mxu1  ;;  %v1867_v8 = vsel %vm1866_vm2, %v1860_v6, -inf }
 0x457   : > { %1868 = vmax.xlane.f32.xlu0 %v1867_v8  ;;  %v1863_v9 = vpop.f32.mrb[10].mxu1 }
 0x458   : > { %v3792_v10 = vpop.f32.mrb[11].mxu1  ;;  %v2135_v9 = vld [vmem:[#allocation3 + $0x4] sm:$0xf] }
 0x459   : > { %v2195_v11 = vsel %vm1885_vm1, %v2135_v9, 0 }
 0x4e4   : > { %v5722_v13 = vpop.xlane.xlu0 %1868 }
 0x4e5   : > { %v1873_v14 = vsub.f32 %v1860_v6, %v5722_v13  ;;  %v1870_v51 = vsub.f32 -inf, %v5722_v13 }
 0x4e7   : > { %v1874_v15 = vmul.f32 1.442695, %v1873_v14  ;;  %v1871_v52 = vmul.f32 1.442695, %v1870_v51 }
 0x4e9   : > { %4299 = vpow2.f32 %v1874_v15 }
 0x4ea   : > { %4301 = vpow2.f32 %v1871_v52 }
 0x4f3   : > { %v4300_v16 = vpop.eup %4299 }
 0x4f4   : > { %v1877_v18 = vsel %vm1866_vm2, %v4300_v16, 0.0  ;;  %v1881_v20 = vpack.c.bf16 %v4300_v16, %v4300_v16  ;;  %v4302_v53 = vpop.eup %4301 }
 0x4f5   : > { %1878 = vadd.xlane.f32.xlu1 %v1877_v18  ;;  %v1876_v55 = vmul.f32 0.0, %v4302_v53 }
 0x4f6   : > { %3796 = vmatmul.mubr.msk.bf16.vlgmr.msra.gmra.mrb[12].mxu1 %vm1866_vm2, %v1881_v20 }
 0x4f7   : > { %3762 = vmatpush3.bf16.msra.mxu1 %v4140_v17  ;;  %2119 = vmatprep.mubr.bf16.mxu1 %v5700_v12  ;;  %v4152_v12 = vld [vmem:[#allocation10 + $0xb0] sm:$0xff]  }
 0x4f8   : > { %3763 = vmatprep.subr.bf16.mxu1 %v4141_v21 }
 0x4fb   : > { %3764 = vmatpush3.bf16.msra.mxu1 %v4142_v22 }
 0x4fc   : > { %3765 = vmatprep.subr.bf16.mxu1 %v4143_v23 }
 0x4ff   : > { %3766 = vmatpush3.bf16.msra.mxu1 %v4144_v25 }
 0x500   : > { %3767 = vmatprep.subr.bf16.mxu1 %v4145_v26 }
 0x503   : > { %3768 = vmatpush3.bf16.msra.mxu1 %v4146_v27 }
 0x504   : > { %3769 = vmatprep.subr.bf16.mxu1 %v4147_v28 }
 0x507   : > { %3770 = vmatpush3.bf16.msra.mxu1 %v4148_v29  ;;  %v4179_v29 = vld [vmem:[#allocation19 + $0x80] ss:$8 sps:$4 sm:$0xff]  }
 0x508   : > { %3771 = vmatprep.subr.bf16.mxu1 %v4149_v30  ;;  %v4181_v30 = vld [vmem:[#allocation19 + $0x84] ss:$8 sps:$4 sm:$0xff]  }
 0x50b   : > { %3772 = vmatpush3.bf16.msra.mxu1 %v4150_v31  ;;  %v4184_v31 = vld [vmem:[#allocation19 + $0x94] ss:$8 sps:$4 sm:$0xff]  }
 0x50c   : > { %3773 = vmatprep.subr.bf16.mxu1 %v4151_v32  ;;  %v4182_v32 = vld [vmem:[#allocation19 + $0x90] ss:$8 sps:$4 sm:$0xff]  }
 0x50f   : > { %3774 = vmatpush3.bf16.msra.mxu1 %v4152_v12  ;;  %v4187_v12 = vld [vmem:[#allocation19 + $0xa4] ss:$8 sps:$4 sm:$0xff]  }
 0x510   : > { %3775 = vmatprep.subr.bf16.mxu1 %v4153_v33  ;;  %v4185_v33 = vld [vmem:[#allocation19 + $0xa0] ss:$8 sps:$4 sm:$0xff]  }
 0x513   : > { %3776 = vmatpush3.bf16.msra.mxu1 %v4154_v34  ;;  %v4190_v34 = vld [vmem:[#allocation19 + $0xb4] ss:$8 sps:$4 sm:$0xff]  }
 0x514   : > { %2460 = vmatprep.subr.bf16.mxu1 %v4157_v35  ;;  %v4188_v35 = vld [vmem:[#allocation19 + $0xb0] ss:$8 sps:$4 sm:$0xff]  }
 0x516   : > { %2120 = vmatmul.mubr.bf16.vlgmr.msra.gmra.mrb[16].mxu1 %v5703_v19  ;;  %v4175_v19 = vld [vmem:[#allocation19 + $0x64] ss:$8 sps:$4 sm:$0xff]  }
 0x517   : > { %2461 = vmatpush1.bf16.msra.mxu1 %v4155_v36  ;;  %2492 = vmatprep.mubr.bf16.mxu1 %v5000_v50  ;;  %v4193_v36 = vld [vmem:[#allocation19 + $0xc4] ss:$8 sps:$4 sm:$0xff]  }
 0x518   : > { %2462 = vmatprep.subr.bf16.mxu1 %v4160_v37  ;;  %v4191_v37 = vld [vmem:[#allocation19 + $0xc0] ss:$8 sps:$4 sm:$0xff]  }
 0x51b   : > { %2463 = vmatpush1.bf16.msra.mxu1 %v4158_v38  ;;  %v4196_v38 = vld [vmem:[#allocation19 + $0xd4] ss:$8 sps:$4 sm:$0xff]  }
 0x51c   : > { %2464 = vmatprep.subr.bf16.mxu1 %v4163_v39  ;;  %v4194_v39 = vld [vmem:[#allocation19 + $0xd0] ss:$8 sps:$4 sm:$0xff]  }
 0x51f   : > { %2465 = vmatpush1.bf16.msra.mxu1 %v4161_v40  ;;  %v4199_v40 = vld [vmem:[#allocation19 + $0xe4] ss:$8 sps:$4 sm:$0xff]  }
 0x520   : > { %2466 = vmatprep.subr.bf16.mxu1 %v4166_v41  ;;  %v4197_v41 = vld [vmem:[#allocation19 + $0xe0] ss:$8 sps:$4 sm:$0xff]  }
 0x523   : > { %2467 = vmatpush1.bf16.msra.mxu1 %v4164_v42  ;;  %v4202_v42 = vld [vmem:[#allocation19 + $0xf4] ss:$8 sps:$4 sm:$0xff]  }
 0x524   : > { %2468 = vmatprep.subr.bf16.mxu1 %v4169_v43  ;;  %v4200_v43 = vld [vmem:[#allocation19 + $0xf0] ss:$8 sps:$4 sm:$0xff]  }
 0x527   : > { %2469 = vmatpush1.bf16.msra.mxu1 %v4167_v44 }
 0x528   : > { %2470 = vmatprep.subr.bf16.mxu1 %v4172_v45 }
 0x52b   : > { %2471 = vmatpush1.bf16.msra.mxu1 %v4170_v46 }
 0x52c   : > { %2472 = vmatprep.subr.bf16.mxu1 %v4175_v19 }
 0x52f   : > { %2473 = vmatpush1.bf16.msra.mxu1 %v4173_v47 }
 0x530   : > { %2474 = vmatprep.subr.bf16.mxu1 %v4178_v48 }
 0x533   : > { %2475 = vmatpush1.bf16.msra.mxu1 %v4176_v49 }
 0x582   : > { %v1879_v54 = vpop.xlane.xlu1 %1878 }
 0x583   : > { %v1880_v56 = vadd.f32 %v1879_v54, %v1876_v55 }
 0x585   : > { %4303 = vrcp.f32 %v1880_v56 }
 0x58f   : > { %v4304_v60 = vpop.eup %4303 }
 0x5c9   : > { %v1923_v57 = vpop.f32.mrb[12].mxu1 }
 0x5ca   : > { %v1929_v58 = vadd.f32 %v1923_v57, %v1876_v55  ;;  %v3797_v59 = vpop.f32.mrb[13].mxu1  ;;  %v2503_v57 = vlaneseq }
 0x5cb   : > { %v1926_v61 = vpop.f32.mrb[14].mxu1 }
 0x5cc   : > { %v1932_v62 = vmul.f32 %v4304_v60, %v1929_v58  ;;  %v3798_v63 = vpop.f32.mrb[15].mxu1  ;;  %v2504_v58 = vshrl.u32 %v2503_v57, 7  ;;  %v2501_v60 = vld [vmem:[#allocation21] sm:$0x3]  ;;  %v4257_v57 = vld [vmem:[#allocation28 + $0x20] ss:$8 sps:$4 sm:$0xff]  }
 0x5ce   : > { %v1933_v0 = vpack.c.bf16 %v1932_v62, %v1932_v62  ;;  %v5740_v59 = vsub.s32 0, %v2504_v58  ;;  %v5742_v61 = vsub.s32 1, %v2504_v58  ;;  %v4262_v58 = vld [vmem:[#allocation28 + $0x34] ss:$8 sps:$4 sm:$0xff]  }
 0x5d0   : > { %2493 = vmatmul.mubr.bf16.vlgmr.msra.gmra.mrb[20].mxu1 %v1933_v0  ;;  %v2506_v62 = vrot.slane %v2501_v60, %v5740_v59  ;;  %v2510_v0 = vrot.slane %v2501_v60, %v5742_v61  ;;  %v4260_v60 = vld [vmem:[#allocation28 + $0x30] ss:$8 sps:$4 sm:$0xff]  }
 0x5e9   : > { %v3777_v1 = vpop.f32.mrb[16].mxu1 }
 0x5ea   : > { %v3778_v3 = vpop.f32.mrb[17].mxu1 }
 0x5eb   : > { %v3779_v4 = vadd.f32 %v3778_v3, %v3777_v1  ;;  %v3780_v5 = vpop.f32.mrb[18].mxu1 }
 0x5ec   : > { %v3781_v6 = vpop.f32.mrb[19].mxu1  ;;  %v1631_v5 = vld [vmem:[%s5658_s3] sm:$0xff] }
 0x5ed   : > { %v2122_v7 = vadd.f32 %v3779_v4, %v3524_v2 }
 0x5ef   : > { %v2127_v8 = vmul.f32 0.088388346, %v2122_v7 }
 0x5f1   : > { %v2128_v10 = vpack.c.bf16 %v2127_v8, %v2127_v8  ;;  %v1632_v8 = vld [vmem:[%s5658_s3 + $0x8] sm:$0xff]  ;;  %s4859_s3 = scalar_lea.vmem %s4858_s19, 512 }
 0x5f2   : > { %p4861_p0 = scmp.lt.s32.totalorder %s4859_s3, %s4853_s22 }
 0x5f3   : > { %3802 = vmatmul.mubr.bf16.vlgmr.msra.gmra.mrb[12].mxu0 %v2128_v10 }
 0x5f4   : > { %3806 = vmatpush3.bf16.msra.mxu0 %v2195_v11  ;;  %3807 = vmatprep.mubr.msk.bf16.mxu0 %vm4999_vm0, %v4998_v24  ;;  %p4862_p9 = por %p4861_p0, %p4860_p12 }
 0x5f5   : > { %2339 = vmatprep.subr.bf16.mxu0 %v4181_v30  ;;  %v4224_v30 = vld [vmem:[#allocation25 + $0x70] ss:$8 sps:$4 sm:$0xff]  }
 0x5f6   : > { %p4863_p1 = pnand %p4862_p9, %p4856_p4 }
 0x6a3   : > { %v5733_v13 = vpop.f32.mrb[20].mxu1 }
 0x6a4   : > { %v5735_v14 = vpop.f32.mrb[21].mxu1 }
 0x6a5   : > { %v2498_v15 = vpop.f32.mrb[22].mxu1 }
 0x6a6   : > { %v2499_v16 = vpop.f32.mrb[23].mxu1 }
 0x6a7   : > { %v4203_v16 = vld [vmem:[#allocation25] ss:$8 sps:$4 sm:$0xff]  }
 0x6c6   : > { %v2170_v17 = vpop.f32.mrb[12].mxu0 }
 0x6c7   : > { %v3803_v18 = vpop.f32.mrb[13].mxu0  ;;  %v2176_v20 = vsel %vm1866_vm2, %v2170_v17, -inf }
 0x6c8   : > { %2177 = vmax.xlane.f32.xlu0 %v2176_v20  ;;  %v2173_v21 = vpop.f32.mrb[14].mxu0  ;;  %v4208_v18 = vld [vmem:[#allocation25 + $0x14] ss:$8 sps:$4 sm:$0xff]   ;;  %v4206_v20 = vld [vmem:[#allocation25 + $0x10] ss:$8 sps:$4 sm:$0xff]  }
 0x6c9   : > { %v3804_v22 = vpop.f32.mrb[15].mxu0  ;;  %v4214_v21 = vld [vmem:[#allocation25 + $0x34] ss:$8 sps:$4 sm:$0xff]  }
 0x6ca   : > { %v4212_v22 = vld [vmem:[#allocation25 + $0x30] ss:$8 sps:$4 sm:$0xff]  }
 0x755   : > { %v2178_v23 = vpop.xlane.xlu0 %2177 }
 0x756   : > { %v2182_v25 = vsub.f32 %v2170_v17, %v2178_v23  ;;  %v2179_v44 = vsub.f32 -inf, %v2178_v23  ;;  %v4205_v17 = vld [vmem:[#allocation25 + $0x4] ss:$8 sps:$4 sm:$0xff]  }
 0x757   : > { %v4217_v23 = vld [vmem:[#allocation25 + $0x44] ss:$8 sps:$4 sm:$0xff]  }
 0x758   : > { %v2183_v26 = vmul.f32 1.442695, %v2182_v25  ;;  %v2180_v45 = vmul.f32 1.442695, %v2179_v44  ;;  %v4215_v25 = vld [vmem:[#allocation25 + $0x40] ss:$8 sps:$4 sm:$0xff]  }
 0x759   : > { %v4236_v44 = vld [vmem:[#allocation25 + $0xb0] ss:$8 sps:$4 sm:$0xff]  }
 0x75a   : > { %4305 = vpow2.f32 %v2183_v26  ;;  %v4220_v26 = vld [vmem:[#allocation25 + $0x54] ss:$8 sps:$4 sm:$0xff]  }
 0x75b   : > { %4307 = vpow2.f32 %v2180_v45  ;;  %v4241_v45 = vld [vmem:[#allocation25 + $0xc4] ss:$8 sps:$4 sm:$0xff]  }
 0x764   : > { %v4306_v27 = vpop.eup %4305 }
 0x765   : > { %v2186_v24 = vsel %vm1866_vm2, %v4306_v27, 0.0  ;;  %v2190_v28 = vpack.c.bf16 %v4306_v27, %v4306_v27  ;;  %v4308_v46 = vpop.eup %4307  ;;  %v4218_v27 = vld [vmem:[#allocation25 + $0x50] ss:$8 sps:$4 sm:$0xff]  }
 0x766   : > { %2187 = vadd.xlane.f32.xlu1 %v2186_v24  ;;  %v2185_v47 = vmul.f32 0.0, %v4308_v46  ;;  %v4223_v24 = vld [vmem:[#allocation25 + $0x64] ss:$8 sps:$4 sm:$0xff]   ;;  %v4239_v46 = vld [vmem:[#allocation25 + $0xc0] ss:$8 sps:$4 sm:$0xff]  }
 0x767   : > { %3808 = vmatmul.mubr.msk.bf16.vlgmr.msra.gmra.mrb[16].mxu0 %vm1866_vm2, %v2190_v28  ;;  %v4221_v28 = vld [vmem:[#allocation25 + $0x60] ss:$8 sps:$4 sm:$0xff]  }
 0x768   : > { %2371 = vmatprep.mubr.bf16.mxu0 %v5000_v50  ;;  %2340 = vmatpush1.bf16.msra.mxu0 %v4179_v29  ;;  %v4226_v29 = vld [vmem:[#allocation25 + $0x74] ss:$8 sps:$4 sm:$0xff]  }
 0x769   : > { %2341 = vmatprep.subr.bf16.mxu0 %v4184_v31  ;;  %v4229_v31 = vld [vmem:[#allocation25 + $0x84] ss:$8 sps:$4 sm:$0xff]  }
 0x76c   : > { %2342 = vmatpush1.bf16.msra.mxu0 %v4182_v32  ;;  %v4227_v32 = vld [vmem:[#allocation25 + $0x80] ss:$8 sps:$4 sm:$0xff]  }
 0x76d   : > { %2343 = vmatprep.subr.bf16.mxu0 %v4187_v12  ;;  %v4232_v12 = vld [vmem:[#allocation25 + $0x94] ss:$8 sps:$4 sm:$0xff]  }
 0x770   : > { %2344 = vmatpush1.bf16.msra.mxu0 %v4185_v33  ;;  %v4230_v33 = vld [vmem:[#allocation25 + $0x90] ss:$8 sps:$4 sm:$0xff]  }
 0x771   : > { %2345 = vmatprep.subr.bf16.mxu0 %v4190_v34 }
 0x774   : > { %2346 = vmatpush1.bf16.msra.mxu0 %v4188_v35 }
 0x775   : > { %2347 = vmatprep.subr.bf16.mxu0 %v4193_v36 }
 0x778   : > { %2348 = vmatpush1.bf16.msra.mxu0 %v4191_v37 }
 0x779   : > { %2349 = vmatprep.subr.bf16.mxu0 %v4196_v38 }
 0x77c   : > { %2350 = vmatpush1.bf16.msra.mxu0 %v4194_v39 }
 0x77d   : > { %2351 = vmatprep.subr.bf16.mxu0 %v4199_v40 }
 0x780   : > { %2352 = vmatpush1.bf16.msra.mxu0 %v4197_v41  ;;  %v4235_v41 = vld [vmem:[#allocation25 + $0xa4] ss:$8 sps:$4 sm:$0xff]  }
 0x781   : > { %2353 = vmatprep.subr.bf16.mxu0 %v4202_v42  ;;  %v4233_v42 = vld [vmem:[#allocation25 + $0xa0] ss:$8 sps:$4 sm:$0xff]  }
 0x784   : > { %2354 = vmatpush1.bf16.msra.mxu0 %v4200_v43  ;;  %v4238_v43 = vld [vmem:[#allocation25 + $0xb4] ss:$8 sps:$4 sm:$0xff]  }
 0x785   : > { %2768 = vmatprep.subr.bf16.mxu0 %v4205_v17  ;;  %v4289_v17 = vld [vmem:[#allocation28 + $0xc4] ss:$8 sps:$4 sm:$0xff]  }
 0x7f3   : > { %v2188_v19 = vpop.xlane.xlu1 %2187 }
 0x7f4   : > { %v2189_v48 = vadd.f32 %v2188_v19, %v2185_v47  ;;  %v4244_v19 = vld [vmem:[#allocation25 + $0xd4] ss:$8 sps:$4 sm:$0xff]  }
 0x7f6   : > { %4309 = vrcp.f32 %v2189_v48  ;;  %v4247_v48 = vld [vmem:[#allocation25 + $0xe4] ss:$8 sps:$4 sm:$0xff]  }
 0x800   : > { %v4310_v52 = vpop.eup %4309 }
 0x83a   : > { %v2231_v49 = vpop.f32.mrb[16].mxu0 }
 0x83b   : > { %v2237_v50 = vadd.f32 %v2231_v49, %v2185_v47  ;;  %v3809_v51 = vpop.f32.mrb[17].mxu0  ;;  %v4242_v47 = vld [vmem:[#allocation25 + $0xd0] ss:$8 sps:$4 sm:$0xff]   ;;  %v4245_v49 = vld [vmem:[#allocation25 + $0xe0] ss:$8 sps:$4 sm:$0xff]  }
 0x83c   : > { %v2234_v53 = vpop.f32.mrb[18].mxu0  ;;  %v4248_v51 = vld [vmem:[#allocation25 + $0xf0] ss:$8 sps:$4 sm:$0xff]  }
 0x83d   : > { %v2240_v54 = vmul.f32 %v4310_v52, %v2237_v50  ;;  %v3810_v55 = vpop.f32.mrb[19].mxu0  ;;  %v4250_v50 = vld [vmem:[#allocation25 + $0xf4] ss:$8 sps:$4 sm:$0xff]   ;;  %v4251_v52 = vld [vmem:[#allocation28] ss:$8 sps:$4 sm:$0xff]  }
 0x83e   : > { %v4253_v53 = vld [vmem:[#allocation28 + $0x4] ss:$8 sps:$4 sm:$0xff]   ;;  %v4254_v55 = vld [vmem:[#allocation28 + $0x10] ss:$8 sps:$4 sm:$0xff]  }
 0x83f   : > { %v2241_v56 = vpack.c.bf16 %v2240_v54, %v2240_v54  ;;  %v4256_v54 = vld [vmem:[#allocation28 + $0x14] ss:$8 sps:$4 sm:$0xff]   ;;  %3017 = vmatprep.subr.bf16.mxu1 %v4253_v53  ;;  %v2845_v53 = vld [vmem:[#allocation30] sm:$0x3] }
 0x840   : > { %3018 = vmatpush1.bf16.msra.mxu1 %v4251_v52 }
 0x841   : > { %2372 = vmatmul.mubr.bf16.vlgmr.msra.gmra.mrb[20].mxu0 %v2241_v56  ;;  %3019 = vmatprep.subr.bf16.mxu1 %v4256_v54  ;;  %v4259_v56 = vld [vmem:[#allocation28 + $0x24] ss:$8 sps:$4 sm:$0xff]   ;;  %v2850_v54 = vrot.slane %v2845_v53, %v5740_v59 }
 0x842   : > { %2769 = vmatpush1.bf16.msra.mxu0 %v4203_v16  ;;  %v4284_v16 = vld [vmem:[#allocation28 + $0xb0] ss:$8 sps:$4 sm:$0xff]  }
 0x843   : > { %2770 = vmatprep.subr.bf16.mxu0 %v4208_v18  ;;  %v4287_v18 = vld [vmem:[#allocation28 + $0xc0] ss:$8 sps:$4 sm:$0xff]  }
 0x844   : > { %3020 = vmatpush1.bf16.msra.mxu1 %v4254_v55  ;;  %v2854_v55 = vrot.slane %v2845_v53, %v5742_v61 }
 0x845   : > { %3021 = vmatprep.subr.bf16.mxu1 %v4259_v56 }
 0x846   : > { %2771 = vmatpush1.bf16.msra.mxu0 %v4206_v20  ;;  %v4292_v20 = vld [vmem:[#allocation28 + $0xd4] ss:$8 sps:$4 sm:$0xff]  }
 0x848   : > { %3022 = vmatpush1.bf16.msra.mxu1 %v4257_v57 }
 0x849   : > { %3023 = vmatprep.subr.bf16.mxu1 %v4262_v58 }
 0x84c   : > { %3024 = vmatpush1.bf16.msra.mxu1 %v4260_v60 }
 0x914   : > { %v2373_v63 = vpop.f32.mrb[20].mxu0 }
 0x915   : > { %v2495_v1 = vadd.f32 %v5733_v13, %v2373_v63  ;;  %v2375_v2 = vpop.f32.mrb[21].mxu0  ;;  %v4211_v13 = vld [vmem:[#allocation25 + $0x24] ss:$8 sps:$4 sm:$0xff]  }
 0x916   : > { %v2497_v3 = vadd.f32 %v5735_v14, %v2375_v2  ;;  %v2377_v4 = vpop.f32.mrb[22].mxu0  ;;  %v4209_v14 = vld [vmem:[#allocation25 + $0x20] ss:$8 sps:$4 sm:$0xff]   ;;  %2772 = vmatprep.subr.bf16.mxu0 %v4211_v13  ;;  %v4290_v13 = vld [vmem:[#allocation28 + $0xd0] ss:$8 sps:$4 sm:$0xff]  }
 0x917   : > { %v2513_v6 = vadd.f32 %v2506_v62, %v2495_v1  ;;  %v2378_v7 = vpop.f32.mrb[23].mxu0  ;;  %2773 = vmatpush1.bf16.msra.mxu0 %v4209_v14  ;;  %v4265_v62 = vld [vmem:[#allocation28 + $0x44] ss:$8 sps:$4 sm:$0xff]   ;;  %v4263_v63 = vld [vmem:[#allocation28 + $0x40] ss:$8 sps:$4 sm:$0xff]  }
 0x918   : > { %v2514_v9 = vadd.f32 %v2510_v0, %v2497_v3  ;;  %2774 = vmatprep.subr.bf16.mxu0 %v4214_v21  ;;  %3025 = vmatprep.subr.bf16.mxu1 %v4265_v62  ;;  %v4268_v0 = vld [vmem:[#allocation28 + $0x54] ss:$8 sps:$4 sm:$0xff]   ;;  %v4266_v1 = vld [vmem:[#allocation28 + $0x50] ss:$8 sps:$4 sm:$0xff]   ;;  %v4271_v2 = vld [vmem:[#allocation28 + $0x64] ss:$8 sps:$4 sm:$0xff]  }
 0x919   : > { %v2515_v10 = vadd.f32 %v2513_v6, %v1631_v5  ;;  %3026 = vmatpush1.bf16.msra.mxu1 %v4263_v63  ;;  %v4269_v3 = vld [vmem:[#allocation28 + $0x60] ss:$8 sps:$4 sm:$0xff]   ;;  %v4274_v4 = vld [vmem:[#allocation28 + $0x74] ss:$8 sps:$4 sm:$0xff]   ;;  %v4272_v5 = vld [vmem:[#allocation28 + $0x70] ss:$8 sps:$4 sm:$0xff]  }
 0x91a   : > { %v2516_v11 = vadd.f32 %v2514_v9, %v1632_v8  ;;  %3027 = vmatprep.subr.bf16.mxu1 %v4268_v0  ;;  %v4277_v6 = vld [vmem:[#allocation28 + $0x84] ss:$8 sps:$4 sm:$0xff]   ;;  %v4275_v7 = vld [vmem:[#allocation28 + $0x80] ss:$8 sps:$4 sm:$0xff]   ;;  %v4280_v8 = vld [vmem:[#allocation28 + $0x94] ss:$8 sps:$4 sm:$0xff]  }
 0x91b   : > { %2775 = vmatpush1.bf16.msra.mxu0 %v4212_v22  ;;  %v4278_v9 = vld [vmem:[#allocation28 + $0x90] ss:$8 sps:$4 sm:$0xff]  }
 0x91c   : > { %v2519_v15 = vadd.f32 %v2516_v11, %v2515_v10  ;;  %2776 = vmatprep.subr.bf16.mxu0 %v4217_v23  ;;  %v2517_v23 = vld [vmem:[#allocation22] sm:$0x3] }
 0x91d   : > { %3028 = vmatpush1.bf16.msra.mxu1 %v4266_v1 }
 0x91e   : > { %2520 = vadd.xlane.f32.xlu0 %v2519_v15  ;;  %3029 = vmatprep.subr.bf16.mxu1 %v4271_v2  ;;  %v4286_v15 = vld [vmem:[#allocation28 + $0xb4] ss:$8 sps:$4 sm:$0xff]  }
 0x91f   : > { %2777 = vmatpush1.bf16.msra.mxu0 %v4215_v25  ;;  %v2518_v25 = vld [vmem:[#allocation24] sm:$0x3] }
 0x920   : > { %2778 = vmatprep.subr.bf16.mxu0 %v4220_v26  ;;  %v2540_v26 = vrot.slane %v2517_v23, %v5740_v59 }
 0x921   : > { %3030 = vmatpush1.bf16.msra.mxu1 %v4269_v3 }
 0x922   : > { %3031 = vmatprep.subr.bf16.mxu1 %v4274_v4 }
 0x923   : > { %2779 = vmatpush1.bf16.msra.mxu0 %v4218_v27  ;;  %v2544_v27 = vrot.slane %v2517_v23, %v5742_v61 }
 0x924   : > { %2780 = vmatprep.subr.bf16.mxu0 %v4223_v24 }
 0x925   : > { %3032 = vmatpush1.bf16.msra.mxu1 %v4272_v5 }
 0x926   : > { %3033 = vmatprep.subr.bf16.mxu1 %v4277_v6 }
 0x927   : > { %2781 = vmatpush1.bf16.msra.mxu0 %v4221_v28 }
 0x928   : > { %2782 = vmatprep.subr.bf16.mxu0 %v4226_v29 }
 0x929   : > { %3034 = vmatpush1.bf16.msra.mxu1 %v4275_v7 }
 0x92a   : > { %3035 = vmatprep.subr.bf16.mxu1 %v4280_v8 }
 0x92b   : > { %2783 = vmatpush1.bf16.msra.mxu0 %v4224_v30  ;;  %v2553_v30 = vrot.slane %v2518_v25, %v5740_v59 }
 0x92c   : > { %2784 = vmatprep.subr.bf16.mxu0 %v4229_v31  ;;  %v2557_v31 = vrot.slane %v2518_v25, %v5742_v61 }
 0x92d   : > { %3036 = vmatpush1.bf16.msra.mxu1 %v4278_v9 }
 0x92f   : > { %2785 = vmatpush1.bf16.msra.mxu0 %v4227_v32 }
 0x930   : > { %2786 = vmatprep.subr.bf16.mxu0 %v4232_v12 }
 0x933   : > { %2787 = vmatpush1.bf16.msra.mxu0 %v4230_v33 }
 0x934   : > { %2788 = vmatprep.subr.bf16.mxu0 %v4235_v41  ;;  %v4298_v41 = vld [vmem:[#allocation28 + $0xf4] ss:$8 sps:$4 sm:$0xff]  }
 0x937   : > { %2789 = vmatpush1.bf16.msra.mxu0 %v4233_v42 }
 0x938   : > { %2790 = vmatprep.subr.bf16.mxu0 %v4238_v43 }
 0x93b   : > { %2791 = vmatpush1.bf16.msra.mxu0 %v4236_v44 }
 0x93c   : > { %2792 = vmatprep.subr.bf16.mxu0 %v4241_v45 }
 0x93f   : > { %2793 = vmatpush1.bf16.msra.mxu0 %v4239_v46 }
 0x940   : > { %2794 = vmatprep.subr.bf16.mxu0 %v4244_v19 }
 0x943   : > { %2795 = vmatpush1.bf16.msra.mxu0 %v4242_v47 }
 0x944   : > { %2796 = vmatprep.subr.bf16.mxu0 %v4247_v48 }
 0x947   : > { %2797 = vmatpush1.bf16.msra.mxu0 %v4245_v49 }
 0x948   : > { %2798 = vmatprep.subr.bf16.mxu0 %v4250_v50 }
 0x94b   : > { %2799 = vmatpush1.bf16.msra.mxu0 %v4248_v51 }
 0x9ab   : > { %v2521_v34 = vpop.xlane.xlu0 %2520 }
 0x9ac   : > { %v2523_v35 = vmul.f32 0.00390625, %v2521_v34 }
 0x9ae   : > { %v5750_v36 = vsub.f32 %v2515_v10, %v2523_v35  ;;  %v5752_v37 = vsub.f32 %v2516_v11, %v2523_v35  ;;  %v4283_v10 = vld [vmem:[#allocation28 + $0xa4] ss:$8 sps:$4 sm:$0xff]   ;;  %v4281_v11 = vld [vmem:[#allocation28 + $0xa0] ss:$8 sps:$4 sm:$0xff]  }
 0x9af   : > { %3037 = vmatprep.subr.bf16.mxu1 %v4283_v10 }
 0x9b0   : > { %v2526_v38 = vmul.f32 %v5750_v36, %v5750_v36  ;;  %v2527_v39 = vmul.f32 %v5752_v37, %v5752_v37  ;;  %3038 = vmatpush1.bf16.msra.mxu1 %v4281_v11 }
 0x9b1   : > { %3039 = vmatprep.subr.bf16.mxu1 %v4286_v15 }
 0x9b2   : > { %v2528_v40 = vadd.f32 %v2527_v39, %v2526_v38  ;;  %v4295_v39 = vld [vmem:[#allocation28 + $0xe4] ss:$8 sps:$4 sm:$0xff]  }
 0x9b4   : > { %2529 = vadd.xlane.f32.xlu1 %v2528_v40  ;;  %3040 = vmatpush1.bf16.msra.mxu1 %v4284_v16  ;;  %v4293_v40 = vld [vmem:[#allocation28 + $0xe0] ss:$8 sps:$4 sm:$0xff]  }
 0x9b5   : > { %3041 = vmatprep.subr.bf16.mxu1 %v4289_v17  ;;  %v3060_v16 = vld [vmem:[#allocation31] sm:$0x3]  ;;  %v3061_v17 = vld [vmem:[#allocation33] sm:$0x3] }
 0x9b6   : > { %v3099_v23 = vrot.slane %v3061_v17, %v5742_v61 }
 0x9b8   : > { %3042 = vmatpush1.bf16.msra.mxu1 %v4287_v18  ;;  %v3082_v18 = vrot.slane %v3060_v16, %v5740_v59 }
 0x9b9   : > { %3043 = vmatprep.subr.bf16.mxu1 %v4292_v20  ;;  %v3086_v20 = vrot.slane %v3060_v16, %v5742_v61 }
 0x9bc   : > { %3044 = vmatpush1.bf16.msra.mxu1 %v4290_v13 }
 0x9bd   : > { %3045 = vmatprep.subr.bf16.mxu1 %v4295_v39 }
 0x9c0   : > { %3046 = vmatpush1.bf16.msra.mxu1 %v4293_v40 }
 0x9c1   : > { %3047 = vmatprep.subr.bf16.mxu1 %v4298_v41 }
 0xa41   : > { %v2530_v14 = vpop.xlane.xlu1 %2529 }
 0xa42   : > { %v2531_v21 = vmul.f32 0.00390625, %v2530_v14 }
 0xa44   : > { %v2532_v22 = vadd.f32 1e-05, %v2531_v21 }
 0xa46   : > { %4311 = vrsqrt.f32 %v2532_v22  ;;  %v3095_v22 = vrot.slane %v3061_v17, %v5740_v59 }
 0xa50   : > { %v4312_v24 = vpop.eup %4311 }
 0xa51   : > { %v2534_v28 = vmul.f32 %v4312_v24, %v5750_v36  ;;  %v2535_v29 = vmul.f32 %v4312_v24, %v5752_v37  ;;  %v4296_v36 = vld [vmem:[#allocation28 + $0xf0] ss:$8 sps:$4 sm:$0xff]   ;;  %v2596_v37 = vld [vmem:[#allocation27] sm:$0x3] }
 0xa52   : > { %3048 = vmatpush1.bf16.msra.mxu1 %v4296_v36  ;;  %v2601_v42 = vrot.slane %v2596_v37, %v5740_v59  ;;  %v2605_v43 = vrot.slane %v2596_v37, %v5742_v61 }
 0xa53   : > { %v2548_v32 = vmul.f32 %v2544_v27, %v2535_v29  ;;  %v2547_v12 = vmul.f32 %v2540_v26, %v2534_v28 }
 0xa55   : > { %v2561_v33 = vadd.f32 %v2557_v31, %v2548_v32  ;;  %v2560_v34 = vadd.f32 %v2553_v30, %v2547_v12 }
 0xa57   : > { %v2563_v35 = vpack.c.bf16 %v2561_v33, %v2561_v33  ;;  %v2562_v38 = vpack.c.bf16 %v2560_v34, %v2560_v34 }
 0xa59   : > { %2800 = vmatprep.mubr.bf16.mxu0 %v2563_v35 }
 0xa5a   : > { %2801 = vmatmul.mubr.bf16.vlgmr.msra.gmra.mrb[24].mxu0 %v2562_v38 }
 0xb2d   : > { %v2802_v44 = vpop.f32.mrb[24].mxu0 }
 0xb2e   : > { %v2803_v45 = vadd.f32 %v2802_v44, %v2601_v42  ;;  %v2804_v46 = vpop.f32.mrb[25].mxu0 }
 0xb2f   : > { %v2805_v19 = vadd.f32 %v2804_v46, %v2605_v43  ;;  %v2806_v47 = vpop.f32.mrb[26].mxu0 }
 0xb30   : > { %v2809_v48 = vmax.f32 %v2803_v45, 0.0  ;;  %v2807_v49 = vpop.f32.mrb[27].mxu0 }
 0xb31   : > { %v2810_v50 = vmax.f32 %v2805_v19, 0.0 }
 0xb32   : > { %v2811_v52 = vpack.c.bf16 %v2809_v48, %v2809_v48 }
 0xb33   : > { %v2812_v51 = vpack.c.bf16 %v2810_v50, %v2810_v50 }
 0xb35   : > { %3049 = vmatprep.mubr.bf16.mxu1 %v2812_v51 }
 0xb36   : > { %3050 = vmatmul.mubr.bf16.vlgmr.msra.gmra.mrb[24].mxu1 %v2811_v52 }
 0xc09   : > { %v3051_v56 = vpop.f32.mrb[24].mxu1 }
 0xc0a   : > { %v3052_v57 = vadd.f32 %v3051_v56, %v2850_v54  ;;  %v3053_v58 = vpop.f32.mrb[25].mxu1 }
 0xc0b   : > { %v3054_v60 = vadd.f32 %v3053_v58, %v2854_v55  ;;  %v3055_v62 = vpop.f32.mrb[26].mxu1 }
 0xc0c   : > { %v3058_v63 = vadd.f32 %v3052_v57, %v2560_v34  ;;  %v3056_v0 = vpop.f32.mrb[27].mxu1 }
 0xc0d   : > { %v3059_v1 = vadd.f32 %v3054_v60, %v2561_v33 }
 0xc0f   : > { %v3062_v2 = vadd.f32 %v3059_v1, %v3058_v63 }
 0xc11   : > { %3063 = vadd.xlane.f32.xlu0 %v3062_v2 }
 0xc9e   : > { %v3064_v3 = vpop.xlane.xlu0 %3063 }
 0xc9f   : > { %v3065_v4 = vmul.f32 0.00390625, %v3064_v3 }
 0xca1   : > { %v3066_v5 = vsub.f32 %v3058_v63, %v3065_v4  ;;  %v3067_v6 = vsub.f32 %v3059_v1, %v3065_v4 }
 0xca3   : > { %v3068_v7 = vmul.f32 %v3066_v5, %v3066_v5  ;;  %v3069_v8 = vmul.f32 %v3067_v6, %v3067_v6 }
 0xca5   : > { %v3070_v9 = vadd.f32 %v3069_v8, %v3068_v7 }
 0xca7   : > { %3071 = vadd.xlane.f32.xlu1 %v3070_v9 }
 0xd34   : > { %v3072_v10 = vpop.xlane.xlu1 %3071 }
 0xd35   : > { %v3073_v11 = vmul.f32 0.00390625, %v3072_v10 }
 0xd37   : > { %v3074_v15 = vadd.f32 1e-05, %v3073_v11 }
 0xd39   : > { %4313 = vrsqrt.f32 %v3074_v15 }
 0xd43   : > { %v4314_v13 = vpop.eup %4313 }
 0xd44   : > { %v3076_v14 = vmul.f32 %v4314_v13, %v3066_v5  ;;  %v3077_v21 = vmul.f32 %v4314_v13, %v3067_v6 }
 0xd46   : > { %v3089_v25 = vmul.f32 %v3082_v18, %v3076_v14  ;;  %v3090_v26 = vmul.f32 %v3086_v20, %v3077_v21 }
 0xd48   : > { %v3102_v27 = vadd.f32 %v3095_v22, %v3089_v25  ;;  %v3103_v24 = vadd.f32 %v3099_v23, %v3090_v26 }
 0xd4a   : > { %3104 = vst [vmem:[%s895_s7] sm:$0xff] %v3102_v27  ;;  %3105 = vst [vmem:[%s895_s7 + $0x8] sm:$0xff] %v3103_v24 }
 0xd4b   : > { %4866 = shalt.err (!%p4863_p1)
}
 0xd4c   : > { %s4867_s29 = scalar_lea.hbm %s5778_s5, 256  ;;  %s4871_s7 = scalar_lea.hbm %s5947_s27, 512 }
 0xd4d   : > { %p4868_p10 = scmp.ne.s32.totalorder %s5778_s5, %s4867_s29  ;;  %p4872_p2 = scmp.lt.u32.totalorder %s5778_s5, %s5947_s27 }
 0xd4e   : > { %p4873_p11 = scmp.lt.u32.totalorder %s4871_s7, %s4867_s29  ;;  %p4875_p13 = scmp.lt.u32.totalorder %s4867_s29, %s5778_s5 }
 0xd4f   : > { %p4869_p5 = pnand %p4868_p10, %p5599_p6 }
 0xd50   : > { %p4874_p7 = por %p4873_p11, %p4872_p2 }
 0xd51   : > { %p4870_p8 = pneg %p4869_p5 }
 0xd52   : > { %p4876_p3 = por %p4875_p13, %p4874_p7 }
 0xd54   : > { %p4877_p4 = pnand %p4876_p3, %p4870_p8 }
 0xd56   : > { %4880 = shalt.err (!%p4877_p4)
}
 0xd57   : > { %3881 = dma.vmem_to_hbm [thread:$0]  (%p5599_p6), %s5780_s1, 256, %s5778_s5, %s3107_s21  }
 0xd58 PF: > { %s5948_s22 = sld [smem:[#allocation46_spill]]  ;;  %s5949_s28 = sld [smem:[#allocation54_spill]] }
 0xd59   : > { %s5950_s19 = sld [smem:[#allocation50_spill]] }
 0xd5e   : > { %s3135_s3 = sand.u32 1, %s5948_s22   ;;  %p5951_p12 = scmp.ne.s32.totalorder %s5949_s28, 0 }
 0xd5f   : > { %p5952_p0 = scmp.ge.s32.totalorder %s5950_s19, 2  ;;  %s3136_s4 = scalar_lea.sflag [#allocation6], %s3135_s3 }
 0xd61   : > { %p3943_p9 = pnand %p5952_p0, %p5951_p12 }
 0xd63   : > { %4946 = dma.done.wait (!%p3943_p9), %s3136_s4, 256  }
 0xd64   : > { %4948 = vsyncadd (!%p3943_p9), %s3136_s4, 4294967040  ;;  %s44_s22 = sadd.s32 1, %s5950_s19   ;;  %s5953_s0 = sld [smem:[#allocation47_spill]] }
 0xd65   : > { %p41_p1 = scmp.ge.s32.totalorder %s44_s22, 4   ;;  %s5954_s30 = sld [smem:[#allocation48_spill]] }
 0xd66   : > { %s5955_s21 = sld [smem:[#allocation49_spill]]  ;;  %s5956_s1 = smov %s5958_s2 }
 0xd67   :  { %43 = sbr.rel (!%p41_p1) target bundleno = 28 (0x1c), region = 231 }
 0xd6e   :  { %3141 = vsyncpa [#allocation5], 1 }
 0xd6f   :  { %3143 = vsyncpa [#allocation5 + $0x1], 1 }
 0xd70   :  { %3144 = vsyncpa [#allocation8], 1 }
 0xd71   :  { %3145 = vsyncpa [#allocation11], 1 }
 0xd72   :  { %3146 = vsyncpa [#allocation14], 1 }
 0xd73   :  { %3147 = vsyncpa [#allocation17], 1 }
 0xd74   :  { %3148 = vsyncpa [#allocation20], 1 }
 0xd75   :  { %3149 = vsyncpa [#allocation23], 1 }
 0xd76   :  { %3150 = vsyncpa [#allocation26], 1 }
 0xd77   :  { %3151 = vsyncpa [#allocation29], 1 }
 0xd78   :  { %3152 = vsyncpa [#allocation32], 1 }
 0xd79   :  { %3153 = vsyncpa [#allocation6], 1 }
 0xd7a   :  { %3155 = vsyncpa [#allocation6 + $0x1], 1 }

// kernel: tpu_custom_call.1
= control target key start
LH: loop header
LB: loop body
LE: loop exit
PB: predicated region body
PF: predicated region fallthrough
CT: control target
= control target key end

     0   :  { %s5904_s0 = inlined_call_operand.hbm [shape: f32[2,8,256], index: 0, kind: input, shape index: {}]   ;;  %s5905_s1 = inlined_call_operand.hbm [shape: bf16[2,8,256], index: 1, kind: input, shape index: {}]   ;;  %s5906_s2 = inlined_call_operand.hbm [shape: bf16[2,8,256], index: 2, kind: input, shape index: {}]   ;;  %s5907_s3 = inlined_call_operand.hbm [shape: bf16[2,256,128], index: 3, kind: input, shape index: {}]   ;;  %s5908_s4 = inlined_call_operand.hbm [shape: f32[2,1,128], index: 4, kind: input, shape index: {}]   ;;  %s5909_s5 = inlined_call_operand.hbm [shape: bf16[2,256,128], index: 5, kind: input, shape index: {}]   ;;  %s5910_s6 = inlined_call_operand.hbm [shape: f32[2,1,128], index: 6, kind: input, shape index: {}]   ;;  %s5911_s7 = inlined_call_operand.hbm [shape: bf16[2,256,128], index: 7, kind: input, shape index: {}]   ;;  %s5912_s8 = inlined_call_operand.hbm [shape: f32[2,1,128], index: 8, kind: input, shape index: {}]   ;;  %s5913_s9 = inlined_call_operand.hbm [shape: bf16[2,128,256], index: 9, kind: input, shape index: {}]   ;;  %s5914_s10 = inlined_call_operand.hbm [shape: f32[1,256], index: 10, kind: input, shape index: {}]   ;;  %s5915_s11 = inlined_call_operand.hbm [shape: f32[1,256], index: 11, kind: input, shape index: {}]   ;;  %s5916_s12 = inlined_call_operand.hbm [shape: f32[1,256], index: 12, kind: input, shape index: {}]   ;;  %s5917_s13 = inlined_call_operand.hbm [shape: bf16[1,256,256], index: 13, kind: input, shape index: {}]   ;;  %s5918_s14 = inlined_call_operand.hbm [shape: f32[1,1,256], index: 14, kind: input, shape index: {}]   ;;  %s5919_s15 = inlined_call_operand.hbm [shape: bf16[1,256,256], index: 15, kind: input, shape index: {}]   ;;  %s5920_s16 = inlined_call_operand.hbm [shape: f32[1,256], index: 16, kind: input, shape index: {}]   ;;  %s5921_s17 = inlined_call_operand.hbm [shape: f32[1,256], index: 17, kind: input, shape index: {}]   ;;  %s5922_s18 = inlined_call_operand.hbm [shape: f32[1,256], index: 18, kind: input, shape index: {}]   ;;  %s5923_s19 = inlined_call_operand.hbm [shape: f32[2,8,256], index: 19, kind: output, shape index: {}]  }
   0x1   :  { %5960 = sst [smem:[#allocation52_spill]] %s5904_s0 }
   0x2   :  { %5961 = sst [smem:[#allocation53_spill]] %s5905_s1 }
   0x3   :  { %5962 = sst [smem:[#allocation54_spill]] %s5906_s2 }
   0x4   :  { %5963 = sst [smem:[#allocation55_spill]] %s5907_s3 }
   0x5   :  { %5964 = sst [smem:[#allocation56_spill]] %s5908_s4 }
   0x6   :  { %5965 = sst [smem:[#allocation57_spill]] %s5909_s5 }
   0x7   :  { %5966 = sst [smem:[#allocation58_spill]] %s5910_s6 }
   0x8   :  { %5967 = sst [smem:[#allocation59_spill]] %s5911_s7 }
   0x9   :  { %5968 = sst [smem:[#allocation60_spill]] %s5912_s8 }
   0xa   :  { %5969 = sst [smem:[#allocation61_spill]] %s5913_s9 }
   0xb   :  { %5970 = sst [smem:[#allocation62_spill]] %s5914_s10 }
   0xc   :  { %5971 = sst [smem:[#allocation63_spill]] %s5915_s11 }
   0xd   :  { %5972 = sst [smem:[#allocation64_spill]] %s5916_s12 }
   0xe   :  { %5973 = sst [smem:[#allocation65_spill]] %s5917_s13 }
   0xf   :  { %5974 = sst [smem:[#allocation66_spill]] %s5918_s14 }
  0x10   :  { %5975 = sst [smem:[#allocation67_spill]] %s5919_s15 }
  0x11   :  { %5976 = sst [smem:[#allocation68_spill]] %s5920_s16 }
  0x12   :  { %5977 = sst [smem:[#allocation69_spill]] %s5921_s17 }
  0x13   :  { %5978 = sst [smem:[#allocation70_spill]] %s5922_s18 }
  0x14   :  { %5979 = sst [smem:[#allocation71_spill]] %s5923_s19 }
  0x15   :  { %24 = vsyncpa [#allocation5], 0 }
  0x16   :  { %26 = vsyncpa [#allocation5 + $0x1], 0 }
  0x17   :  { %27 = vsyncpa [#allocation8], 0 }
  0x18   :  { %29 = vsyncpa [#allocation8 + $0x1], 0 }
  0x19   :  { %30 = vsyncpa [#allocation11], 0 }
  0x1a   :  { %31 = vsyncpa [#allocation14], 0 }
  0x1b   :  { %32 = vsyncpa [#allocation17], 0 }
  0x1c   :  { %33 = vsyncpa [#allocation20], 0 }
  0x1d   :  { %34 = vsyncpa [#allocation23], 0 }
  0x1e   :  { %35 = vsyncpa [#allocation26], 0 }
  0x1f   :  { %36 = vsyncpa [#allocation29], 0 }
  0x20   :  { %37 = vsyncpa [#allocation32], 0 }
  0x21   :  { %38 = vsyncpa [#allocation6], 0 }
  0x22   :  { %40 = vsyncpa [#allocation6 + $0x1], 0  ;;  %s5156_s0 = smov 0   ;;  %s5158_s30 = smov 0  }
  0x23   :  { %s5160_s20 = smov 0   ;;  %s5162_s21 = smov 0  }
  0x24   :  { %s5164_s1 = smov 0   ;;  %s5166_s22 = smov 0  }
  0x25 LB: > { %5980 = sst [smem:[#allocation46_spill]] %s5013_s20  ;;  %s5187_s2 = sadd.s32 4294967295, %s5025_s22   ;;  %s5025_s22 = sphi %s5166_s22, %s46_s22   ;;  %s5021_s1 = sphi %s5164_s1, %s6054_s1   ;;  %s5017_s21 = sphi %s5162_s21, %s6053_s21   ;;  %s5013_s20 = sphi %s5160_s20, %s6049_s20   ;;  %s5009_s30 = sphi %s5158_s30, %s6052_s30   ;;  %s5005_s0 = sphi %s5156_s0, %s6051_s0  }
  0x26   : > { %5981 = sst [smem:[#allocation47_spill]] %s5017_s21  ;;  %p3440_p0 = scmp.ge.s32.totalorder %s5025_s22, 1 }
  0x27   : > { %5982 = sst [smem:[#allocation48_spill]] %s5025_s22  ;;  %p5937_p1 = scmp.eq.s32.totalorder %s5187_s2, 0 }
  0x28   : > { %p507_p2 = scmp.lt.s32.totalorder %s5025_s22, 3  ;;  %s5027_s24 = smov [#allocation10]  }
  0x29   : > { %s519_s25 = sshll.u32 %s5027_s24, 4  ;;  %s5028_s26 = smov [#allocation13]   ;;  %s5196_s25 = int_to_ptr.vmem [resolvable:$true] %s519_s25 }
  0x2a   : > { %p5192_p3 = pnand %p3440_p0, %p507_p2  ;;  %s545_s27 = sshll.u32 %s5028_s26, 4  ;;  %s5207_s27 = int_to_ptr.vmem [resolvable:$true] %s545_s27 }
  0x2b   : > { %s5029_s28 = smov [#allocation16]   ;;  %s5986_s21 = sld [smem:[#allocation55_spill]] }
  0x2c   : > { %s5983_s23 = scalar_select %p5192_p3, 1, 0 }
  0x2d   : > { %p3939_p4 = pneg %p5192_p3  ;;  %s5209_s29 = sshll.u32 %s5029_s28, 4  ;;  %s572_s29 = int_to_ptr.vmem [resolvable:$true] %s5209_s29 }
  0x2e   : > { %5984 = sst [smem:[#allocation49_spill]] %s5983_s23 }
  0x2f   : > { %p5203_p6 = pnand %p3939_p4, %p5937_p1 }
  0x31   : > { %s5985_s3 = scalar_select %p5203_p6, 1, 0 }
  0x32   : > { %s5987_s18 = smov %s5986_s21  ;;  %s4369_s16 = scalar_lea.hbm %s5986_s21, 4096 }
  0x33   : > { %p4370_p7 = scmp.ne.s32.totalorder %s5987_s18, %s4369_s16  ;;  %p5219_p8 = pneg %p5203_p6 }
  0x34   : > { %p4376_p11 = scmp.lt.u32.totalorder %s4369_s16, %s5987_s18 }
  0x35   : > { %s5988_s12 = scalar_select %p5219_p8, 1, 0 }
  0x36   : > { %p4372_p9 = pnand %p5219_p8, %p4370_p7 }
  0x38   : > { %p4373_p10 = pneg %p4372_p9 }
  0x3a   : > { %p4378_p12 = pnand %p4376_p11, %p4373_p10 }
  0x3c   : > { %4381 = shalt.err (!%p4378_p12)
}
  0x3d   : > { %s4382_s14 = scalar_lea.vmem %s5196_s25, 4096  ;;  %p4390_p4 = scmp.lt.s32.totalorder %s5196_s25, %s5196_s25 }
  0x3e   : > { %p4383_p13 = scmp.ne.s32.totalorder %s5196_s25, %s4382_s14  ;;  %p4391_p5 = scmp.lt.s32.totalorder %s4382_s14, %s4382_s14 }
  0x40   : > { %p4385_p0 = pnand %p4383_p13, %p5219_p8  ;;  %p4392_p7 = por %p4391_p5, %p4390_p4 }
  0x42   : > { %p4386_p2 = pneg %p4385_p0 }
  0x44   : > { %p4393_p9 = pnand %p4392_p7, %p4386_p2 }
  0x46   : > { %4396 = shalt.err (!%p4393_p9)
}
  0x47   : > { %s5030_s19 = smov 64   ;;  %s5031_s16 = smov 4  }
  0x48   : > { %3942 = dma.hbm_to_vmem [thread:$0]  (!%p5203_p6), %s5987_s18, 4096, %s5196_s25, [#allocation11], %s5030_s19, %s5030_s19, %s5031_s16  }
  0x49   : > { %s5989_s5 = sld [smem:[#allocation57_spill]] }
  0x4f   : > { %s4397_s28 = scalar_lea.hbm %s5989_s5, 4096 }
  0x50   : > { %p4398_p5 = scmp.ne.s32.totalorder %s5989_s5, %s4397_s28  ;;  %p4404_p12 = scmp.lt.u32.totalorder %s4397_s28, %s5989_s5 }
  0x52   : > { %p4400_p10 = pnand %p4398_p5, %p5219_p8 }
  0x54   : > { %p4401_p11 = pneg %p4400_p10 }
  0x56   : > { %p4406_p13 = pnand %p4404_p12, %p4401_p11 }
  0x58   : > { %4409 = shalt.err (!%p4406_p13)
}
  0x59   : > { %s4410_s25 = scalar_lea.vmem %s5207_s27, 4096  ;;  %p4418_p7 = scmp.lt.s32.totalorder %s5207_s27, %s5207_s27 }
  0x5a   : > { %p4411_p0 = scmp.ne.s32.totalorder %s5207_s27, %s4410_s25  ;;  %p4419_p9 = scmp.lt.s32.totalorder %s4410_s25, %s4410_s25 }
  0x5c   : > { %p4413_p2 = pnand %p4411_p0, %p5219_p8  ;;  %p4420_p5 = por %p4419_p9, %p4418_p7 }
  0x5e   : > { %p4414_p4 = pneg %p4413_p2 }
  0x60   : > { %p4421_p10 = pnand %p4420_p5, %p4414_p4 }
  0x62   : > { %4424 = shalt.err (!%p4421_p10)
}
  0x63   : > { %3948 = dma.hbm_to_vmem [thread:$0]  (!%p5203_p6), %s5989_s5, 4096, %s5207_s27, [#allocation14], %s5030_s19, %s5030_s19, %s5031_s16  }
  0x64   : > { %s5990_s7 = sld [smem:[#allocation59_spill]] }
  0x6a   : > { %s4425_s23 = scalar_lea.hbm %s5990_s7, 4096 }
  0x6b   : > { %p4426_p11 = scmp.ne.s32.totalorder %s5990_s7, %s4425_s23  ;;  %p4432_p0 = scmp.lt.u32.totalorder %s4425_s23, %s5990_s7 }
  0x6d   : > { %p4428_p12 = pnand %p4426_p11, %p5219_p8 }
  0x6f   : > { %p4429_p13 = pneg %p4428_p12 }
  0x71   : > { %p4434_p2 = pnand %p4432_p0, %p4429_p13 }
  0x73   : > { %4437 = shalt.err (!%p4434_p2)
}
  0x74   : > { %s4438_s25 = scalar_lea.vmem %s572_s29, 4096  ;;  %p4446_p5 = scmp.lt.s32.totalorder %s572_s29, %s572_s29 }
  0x75   : > { %p4439_p4 = scmp.ne.s32.totalorder %s572_s29, %s4438_s25  ;;  %p4447_p10 = scmp.lt.s32.totalorder %s4438_s25, %s4438_s25 }
  0x77   : > { %p4441_p7 = pnand %p4439_p4, %p5219_p8  ;;  %p4448_p1 = por %p4447_p10, %p4446_p5 }
  0x79   : > { %p4442_p9 = pneg %p4441_p7 }
  0x7b   : > { %p4449_p3 = pnand %p4448_p1, %p4442_p9 }
  0x7d   : > { %4452 = shalt.err (!%p4449_p3)
}
  0x7e   : > { %3954 = dma.hbm_to_vmem [thread:$0]  (!%p5203_p6), %s5990_s7, 4096, %s572_s29, [#allocation17], %s5030_s19, %s5030_s19, %s5031_s16  }
  0x7f   : > { %s5032_s8 = smov [#allocation19]   ;;  %s5991_s9 = sld [smem:[#allocation61_spill]] }
  0x80   : > { %s597_s10 = sshll.u32 %s5032_s8, 4  ;;  %s598_s10 = int_to_ptr.vmem [resolvable:$true] %s597_s10 }
  0x85   : > { %s4453_s24 = scalar_lea.hbm %s5991_s9, 4096 }
  0x86   : > { %p4454_p1 = scmp.ne.s32.totalorder %s5991_s9, %s4453_s24  ;;  %p4460_p12 = scmp.lt.u32.totalorder %s4453_s24, %s5991_s9 }
  0x88   : > { %p4456_p3 = pnand %p4454_p1, %p5219_p8 }
  0x8a   : > { %p4457_p11 = pneg %p4456_p3 }
  0x8c   : > { %p4462_p13 = pnand %p4460_p12, %p4457_p11 }
  0x8e   : > { %4465 = shalt.err (!%p4462_p13)
}
  0x8f   : > { %s4466_s29 = scalar_lea.vmem %s598_s10, 4096  ;;  %p4474_p7 = scmp.lt.s32.totalorder %s598_s10, %s598_s10 }
  0x90   : > { %p4467_p0 = scmp.ne.s32.totalorder %s598_s10, %s4466_s29  ;;  %p4475_p9 = scmp.lt.s32.totalorder %s4466_s29, %s4466_s29 }
  0x92   : > { %p4469_p2 = pnand %p4467_p0, %p5219_p8  ;;  %p4476_p5 = por %p4475_p9, %p4474_p7 }
  0x94   : > { %p4470_p4 = pneg %p4469_p2 }
  0x96   : > { %p4477_p10 = pnand %p4476_p5, %p4470_p4 }
  0x98   : > { %4480 = shalt.err (!%p4477_p10)
}
  0x99   : > { %s5033_s19 = smov 128   ;;  %s5034_s16 = smov 8  }
  0x9a   : > { %3960 = dma.hbm_to_vmem [thread:$0]  (!%p5203_p6), %s5991_s9, 4096, %s598_s10, [#allocation20], %s5033_s19, %s5033_s19, %s5034_s16  }
  0x9b   : > { %s5035_s8 = smov [#allocation22]   ;;  %s5036_s23 = smov [#allocation25]  }
  0x9c   : > { %s622_s21 = sshll.u32 %s5035_s8, 4  ;;  %s643_s24 = sshll.u32 %s5036_s23, 4  ;;  %s623_s21 = int_to_ptr.vmem [resolvable:$true] %s622_s21  ;;  %s5312_s24 = int_to_ptr.vmem [resolvable:$true] %s643_s24 }
  0x9d   : > { %s5992_s11 = sld [smem:[#allocation63_spill]] }
  0xa3   : > { %s4481_s14 = scalar_lea.hbm %s5992_s11, 32 }
  0xa4   : > { %p4482_p1 = scmp.ne.s32.totalorder %s5992_s11, %s4481_s14  ;;  %p4488_p12 = scmp.lt.u32.totalorder %s4481_s14, %s5992_s11 }
  0xa6   : > { %p4484_p3 = pnand %p4482_p1, %p5219_p8 }
  0xa8   : > { %p4485_p11 = pneg %p4484_p3 }
  0xaa   : > { %p4490_p13 = pnand %p4488_p12, %p4485_p11 }
  0xac   : > { %4493 = shalt.err (!%p4490_p13)
}
  0xad   : > { %s4494_s6 = scalar_lea.vmem %s623_s21, 32  ;;  %p4502_p7 = scmp.lt.s32.totalorder %s623_s21, %s623_s21 }
  0xae   : > { %p4495_p0 = scmp.ne.s32.totalorder %s623_s21, %s4494_s6  ;;  %p4503_p9 = scmp.lt.s32.totalorder %s4494_s6, %s4494_s6 }
  0xb0   : > { %p4497_p2 = pnand %p4495_p0, %p5219_p8  ;;  %p4504_p5 = por %p4503_p9, %p4502_p7 }
  0xb2   : > { %p4498_p4 = pneg %p4497_p2 }
  0xb4   : > { %p4505_p10 = pnand %p4504_p5, %p4498_p4 }
  0xb6   : > { %4508 = shalt.err (!%p4505_p10)
}
  0xb7   : > { %3966 = dma.hbm_to_vmem [thread:$0]  (!%p5203_p6), %s5992_s11, 32, %s623_s21, [#allocation23]  }
  0xb8   : > { %s5993_s13 = sld [smem:[#allocation65_spill]] }
  0xbe   : > { %s4509_s14 = scalar_lea.hbm %s5993_s13, 4096 }
  0xbf   : > { %p4510_p1 = scmp.ne.s32.totalorder %s5993_s13, %s4509_s14  ;;  %p4516_p12 = scmp.lt.u32.totalorder %s4509_s14, %s5993_s13 }
  0xc1   : > { %p4512_p3 = pnand %p4510_p1, %p5219_p8 }
  0xc3   : > { %p4513_p11 = pneg %p4512_p3 }
  0xc5   : > { %p4518_p13 = pnand %p4516_p12, %p4513_p11 }
  0xc7   : > { %4521 = shalt.err (!%p4518_p13)
}
  0xc8   : > { %s4522_s21 = scalar_lea.vmem %s5312_s24, 4096  ;;  %p4530_p7 = scmp.lt.s32.totalorder %s5312_s24, %s5312_s24 }
  0xc9   : > { %p4523_p0 = scmp.ne.s32.totalorder %s5312_s24, %s4522_s21  ;;  %p4531_p9 = scmp.lt.s32.totalorder %s4522_s21, %s4522_s21 }
  0xcb   : > { %p4525_p2 = pnand %p4523_p0, %p5219_p8  ;;  %p4532_p5 = por %p4531_p9, %p4530_p7 }
  0xcd   : > { %p4526_p4 = pneg %p4525_p2 }
  0xcf   : > { %p4533_p10 = pnand %p4532_p5, %p4526_p4 }
  0xd1   : > { %4536 = shalt.err (!%p4533_p10)
}
  0xd2   : > { %3972 = dma.hbm_to_vmem [thread:$0]  (!%p5203_p6), %s5993_s13, 4096, %s5312_s24, [#allocation26], %s5033_s19, %s5033_s19, %s5034_s16  }
  0xd3   : > { %s5037_s23 = smov [#allocation28]   ;;  %s5038_s28 = smov [#allocation31]  }
  0xd4   : > { %s667_s26 = sshll.u32 %s5037_s23, 4  ;;  %s692_s14 = sshll.u32 %s5038_s28, 4  ;;  %s668_s26 = int_to_ptr.vmem [resolvable:$true] %s667_s26  ;;  %s5358_s14 = int_to_ptr.vmem [resolvable:$true] %s692_s14 }
  0xd5   : > { %s5994_s15 = sld [smem:[#allocation67_spill]] }
  0xdb   : > { %s4537_s27 = scalar_lea.hbm %s5994_s15, 4096 }
  0xdc   : > { %p4538_p1 = scmp.ne.s32.totalorder %s5994_s15, %s4537_s27  ;;  %p4544_p12 = scmp.lt.u32.totalorder %s4537_s27, %s5994_s15 }
  0xde   : > { %p4540_p3 = pnand %p4538_p1, %p5219_p8 }
  0xe0   : > { %p4541_p11 = pneg %p4540_p3 }
  0xe2   : > { %p4546_p13 = pnand %p4544_p12, %p4541_p11 }
  0xe4   : > { %4549 = shalt.err (!%p4546_p13)
}
  0xe5   : > { %s4550_s8 = scalar_lea.vmem %s668_s26, 4096  ;;  %p4558_p7 = scmp.lt.s32.totalorder %s668_s26, %s668_s26 }
  0xe6   : > { %p4551_p0 = scmp.ne.s32.totalorder %s668_s26, %s4550_s8  ;;  %p4559_p9 = scmp.lt.s32.totalorder %s4550_s8, %s4550_s8 }
  0xe8   : > { %p4553_p2 = pnand %p4551_p0, %p5219_p8  ;;  %p4560_p5 = por %p4559_p9, %p4558_p7 }
  0xea   : > { %p4554_p4 = pneg %p4553_p2 }
  0xec   : > { %p4561_p10 = pnand %p4560_p5, %p4554_p4 }
  0xee   : > { %4564 = shalt.err (!%p4561_p10)
}
  0xef   : > { %3978 = dma.hbm_to_vmem [thread:$0]  (!%p5203_p6), %s5994_s15, 4096, %s668_s26, [#allocation29], %s5033_s19, %s5033_s19, %s5034_s16  }
  0xf0   : > { %s5995_s17 = sld [smem:[#allocation69_spill]] }
  0xf6   : > { %s4565_s27 = scalar_lea.hbm %s5995_s17, 32 }
  0xf7   : > { %p4566_p1 = scmp.ne.s32.totalorder %s5995_s17, %s4565_s27  ;;  %p4572_p12 = scmp.lt.u32.totalorder %s4565_s27, %s5995_s17 }
  0xf9   : > { %p4568_p3 = pnand %p4566_p1, %p5219_p8 }
  0xfb   : > { %p4569_p11 = pneg %p4568_p3 }
  0xfd   : > { %p4574_p13 = pnand %p4572_p12, %p4569_p11 }
  0xff   : > { %4577 = shalt.err (!%p4574_p13)
}
 0x100   : > { %s4578_s19 = scalar_lea.vmem %s5358_s14, 32  ;;  %p4586_p7 = scmp.lt.s32.totalorder %s5358_s14, %s5358_s14 }
 0x101   : > { %p4579_p0 = scmp.ne.s32.totalorder %s5358_s14, %s4578_s19  ;;  %p4587_p9 = scmp.lt.s32.totalorder %s4578_s19, %s4578_s19 }
 0x103   : > { %p4581_p2 = pnand %p4579_p0, %p5219_p8  ;;  %p4588_p5 = por %p4587_p9, %p4586_p7 }
 0x105   : > { %p4582_p4 = pneg %p4581_p2 }
 0x107   : > { %p4589_p10 = pnand %p4588_p5, %p4582_p4 }
 0x109   : > { %4592 = shalt.err (!%p4589_p10)
}
 0x10a   : > { %3984 = dma.hbm_to_vmem [thread:$0]  (!%p5203_p6), %s5995_s17, 32, %s5358_s14, [#allocation32]  }
 0x10b   : > { %s3439_s8 = sadd.s32 4294967294, %s5025_s22   ;;  %s58_s23 = sadd.s32 1, %s5021_s1 }
 0x10c   : > { %p60_p1 = scmp.ge.s32.totalorder %s58_s23, 2  ;;  %s67_s28 = sadd.s32 1, %s5013_s20 }
 0x10d   : > { %p74_p3 = scmp.ne.s32.totalorder %s5013_s20, %s5009_s30  ;;  %p75_p11 = scmp.eq.s32.totalorder %s5025_s22, 0 }
 0x10e   : > { %s6056_s23 = smov (%p60_p1, %s58_s23), 0  ;;  %p80_p13 = scmp.ne.s32.totalorder %s5009_s30, %s5005_s0 }
 0x10f   : > { %5996 = sst [smem:[#allocation50_spill]] %s6056_s23  ;;  %p5412_p12 = por %p75_p11, %p74_p3 }
 0x110   : > { %s62_s14 = ssub.s32 %s5021_s1, %s6056_s23  ;;  %p494_p0 = scmp.eq.s32.totalorder %s5187_s2, 1 }
 0x111   : > { %p65_p2 = scmp.eq.s32.totalorder %s62_s14, 0  ;;  %p5998_p4 = scmp.eq.s32.totalorder %s5187_s2, 0 }
 0x112   : > { %p5427_p9 = por %p494_p0, %p74_p3  ;;  %p500_p5 = scmp.eq.s32.totalorder %s3439_s8, 1 }
 0x113   : > { %p5423_p7 = por %p5998_p4, %p80_p13  ;;  %p4018_p1 = scmp.lt.s32.totalorder %s5025_s22, 2 }
 0x114   : > { %s6000_s27 = scalar_select %p5427_p9, 1, 0 }
 0x115   : > { %s5999_s29 = scalar_select %p5423_p7, 1, 0 }
 0x116   : > { %s5432_s10 = scalar_select %p65_p2, %s5013_s20, %s67_s28  }
 0x117   : > { %p5434_p10 = por %p500_p5, %p80_p13  ;;  %s5440_s6 = sand.u32 1, %s5013_s20  }
 0x118   : > { %6001 = sst [smem:[#allocation51_spill]] %s5432_s10  ;;  %s735_s24 = sand.u32 1, %s5025_s22  }
 0x119   : > { %s6002_s21 = scalar_select %p5434_p10, 1, 0 }
 0x11a   : > { %p5445_p11 = pnand %p4018_p1, %p5412_p12  ;;  %s5939_s16 = sshll.u32 %s5440_s6, 3 }
 0x11b   : > { %s5940_s26 = sshll.u32 %s5021_s1, 7  ;;  %s6004_s14 = sld [smem:[#allocation53_spill]] }
 0x11c   : > { %s6003_s19 = scalar_select %p5445_p11, 1, 0 }
 0x11d   : > { %s739_s7 = scalar_lea.vmem [#allocation7], %s5939_s16  ;;  %s5462_s9 = scalar_lea.sflag [#allocation8], %s735_s24 }
 0x11e   : > { %s747_s25 = sshll.u32 %s739_s7, 4  ;;  %p5468_p12 = pneg %p5445_p11  ;;  %s5460_s25 = int_to_ptr.vmem [resolvable:$true] %s747_s25 }
 0x120   : > { %s6005_s13 = scalar_select %p5468_p12, 1, 0 }
 0x121   : > { %s5456_s5 = scalar_lea.hbm %s6004_s14, %s5940_s26  ;;  %s4598_s16 = scalar_lea.hbm %s6004_s14, 256 }
 0x122   : > { %s4593_s11 = scalar_lea.hbm %s5456_s5, 128  ;;  %p4599_p2 = scmp.lt.u32.totalorder %s5456_s5, %s6004_s14 }
 0x123   : > { %p4594_p3 = scmp.ne.s32.totalorder %s5456_s5, %s4593_s11  ;;  %p4600_p4 = scmp.lt.u32.totalorder %s4598_s16, %s4593_s11 }
 0x124   : > { %p4602_p1 = scmp.lt.u32.totalorder %s4593_s11, %s5456_s5 }
 0x125   : > { %p4596_p13 = pnand %p5468_p12, %p4594_p3  ;;  %p4601_p5 = por %p4600_p4, %p4599_p2 }
 0x127   : > { %p4597_p0 = pneg %p4596_p13  ;;  %p4603_p10 = por %p4602_p1, %p4601_p5 }
 0x129   : > { %p4604_p9 = pnand %p4603_p10, %p4597_p0 }
 0x12b   : > { %4607 = shalt.err (!%p4604_p9)
}
 0x12c   : > { %s4608_s24 = scalar_lea.vmem %s5460_s25, 128  ;;  %s5039_s8 = smov [#allocation7]  }
 0x12d   : > { %p4609_p3 = scmp.ne.s32.totalorder %s5460_s25, %s4608_s24  ;;  %s4613_s28 = sshll.u32 %s5039_s8, 4  ;;  %s4614_s28 = int_to_ptr.vmem [resolvable:$false] %s4613_s28 }
 0x12e   : > { %s4615_s26 = scalar_lea.vmem %s4614_s28, 256  ;;  %p4616_p6 = scmp.lt.s32.totalorder %s5460_s25, %s4614_s28 }
 0x12f   : > { %p4611_p13 = pnand %p4609_p3, %p5468_p12  ;;  %p4617_p8 = scmp.lt.s32.totalorder %s4615_s26, %s4608_s24 }
 0x131   : > { %p4612_p7 = pneg %p4611_p13  ;;  %p4618_p2 = por %p4617_p8, %p4616_p6 }
 0x133   : > { %p4619_p4 = pnand %p4618_p2, %p4612_p7 }
 0x135   : > { %4622 = shalt.err (!%p4619_p4)
}
 0x136   : > { %3994 = dma.hbm_to_vmem [thread:$0]  (!%p5445_p11), %s5456_s5, 128, %s5460_s25, %s5462_s9  }
 0x137   : > { %s6006_s11 = sshll.u32 %s5021_s1, 7  ;;  %s6007_s14 = sld [smem:[#allocation54_spill]] }
 0x138   : > { %s5040_s15 = smov [#allocation12]   ;;  %s6008_s4 = sld [smem:[#allocation56_spill]] }
 0x139   : > { %s532_s28 = sshll.u32 %s5040_s15, 4  ;;  %p6009_p8 = scmp.ne.s32.totalorder %s5988_s12, 0  ;;  %s533_s28 = int_to_ptr.vmem [resolvable:$true] %s532_s28 }
 0x13d   : > { %s5497_s8 = scalar_lea.hbm %s6007_s14, %s6006_s11 }
 0x13e   : > { %s4623_s17 = scalar_lea.hbm %s6008_s4, 32 }
 0x13f   : > { %p4624_p6 = scmp.ne.s32.totalorder %s6008_s4, %s4623_s17  ;;  %p4630_p10 = scmp.lt.u32.totalorder %s4623_s17, %s6008_s4 }
 0x141   : > { %p4626_p7 = pnand %p4624_p6, %p6009_p8 }
 0x143   : > { %p4627_p9 = pneg %p4626_p7 }
 0x145   : > { %p4632_p0 = pnand %p4630_p10, %p4627_p9 }
 0x147   : > { %4635 = shalt.err (!%p4632_p0)
}
 0x148   : > { %s4636_s11 = scalar_lea.vmem %s533_s28, 32  ;;  %p4644_p13 = scmp.lt.s32.totalorder %s533_s28, %s533_s28 }
 0x149   : > { %p4637_p5 = scmp.ne.s32.totalorder %s533_s28, %s4636_s11  ;;  %p4645_p2 = scmp.lt.s32.totalorder %s4636_s11, %s4636_s11 }
 0x14b   : > { %p4639_p1 = pnand %p4637_p5, %p6009_p8  ;;  %p4646_p4 = por %p4645_p2, %p4644_p13 }
 0x14d   : > { %p4640_p3 = pneg %p4639_p1 }
 0x14f   : > { %p4647_p11 = pnand %p4646_p4, %p4640_p3 }
 0x151   : > { %4650 = shalt.err (!%p4647_p11)
}
 0x152   : > { %s5041_s15 = smov 16   ;;  %s5042_s18 = smov 1  }
 0x153   : > { %p6010_p6 = scmp.ne.s32.totalorder %s5985_s3, 0  ;;  %s5043_s16 = smov [#allocation15]  }
 0x154   : > { %s558_s7 = sshll.u32 %s5043_s16, 4  ;;  %s5044_s24 = smov [#allocation18]   ;;  %s559_s7 = int_to_ptr.vmem [resolvable:$true] %s558_s7 }
 0x155   : > { %3945 = dma.hbm_to_vmem [thread:$0]  (!%p6010_p6), %s6008_s4, 32, %s533_s28, [#allocation11], %s5041_s15, %s5041_s15, %s5042_s18  }
 0x156   : > { %s584_s26 = sshll.u32 %s5044_s24, 4  ;;  %s6011_s11 = sld [smem:[#allocation58_spill]]  ;;  %s5520_s26 = int_to_ptr.vmem [resolvable:$true] %s584_s26 }
 0x15c   : > { %s4651_s10 = scalar_lea.hbm %s6011_s11, 32 }
 0x15d   : > { %p4652_p11 = scmp.ne.s32.totalorder %s6011_s11, %s4651_s10  ;;  %p4658_p10 = scmp.lt.u32.totalorder %s4651_s10, %s6011_s11 }
 0x15f   : > { %p4654_p7 = pnand %p4652_p11, %p6009_p8 }
 0x161   : > { %p4655_p9 = pneg %p4654_p7 }
 0x163   : > { %p4660_p0 = pnand %p4658_p10, %p4655_p9 }
 0x165   : > { %4663 = shalt.err (!%p4660_p0)
}
 0x166   : > { %s4664_s23 = scalar_lea.vmem %s559_s7, 32  ;;  %p4672_p13 = scmp.lt.s32.totalorder %s559_s7, %s559_s7 }
 0x167   : > { %p4665_p5 = scmp.ne.s32.totalorder %s559_s7, %s4664_s23  ;;  %p4673_p2 = scmp.lt.s32.totalorder %s4664_s23, %s4664_s23 }
 0x169   : > { %p4667_p1 = pnand %p4665_p5, %p6009_p8  ;;  %p4674_p4 = por %p4673_p2, %p4672_p13 }
 0x16b   : > { %p4668_p3 = pneg %p4667_p1 }
 0x16d   : > { %p4675_p12 = pnand %p4674_p4, %p4668_p3 }
 0x16f   : > { %4678 = shalt.err (!%p4675_p12)
}
 0x170   : > { %3951 = dma.hbm_to_vmem [thread:$0]  (!%p6010_p6), %s6011_s11, 32, %s559_s7, [#allocation14], %s5041_s15, %s5041_s15, %s5042_s18  }
 0x171   : > { %s6012_s24 = sld [smem:[#allocation60_spill]] }
 0x177   : > { %s4679_s5 = scalar_lea.hbm %s6012_s24, 32 }
 0x178   : > { %p4680_p11 = scmp.ne.s32.totalorder %s6012_s24, %s4679_s5  ;;  %p4686_p9 = scmp.lt.u32.totalorder %s4679_s5, %s6012_s24 }
 0x17a   : > { %p4682_p12 = pnand %p4680_p11, %p6009_p8 }
 0x17c   : > { %p4683_p7 = pneg %p4682_p12 }
 0x17e   : > { %p4688_p10 = pnand %p4686_p9, %p4683_p7 }
 0x180   : > { %4691 = shalt.err (!%p4688_p10)
}
 0x181   : > { %s4692_s7 = scalar_lea.vmem %s5520_s26, 32  ;;  %p4700_p3 = scmp.lt.s32.totalorder %s5520_s26, %s5520_s26 }
 0x182   : > { %p4693_p0 = scmp.ne.s32.totalorder %s5520_s26, %s4692_s7  ;;  %p4701_p13 = scmp.lt.s32.totalorder %s4692_s7, %s4692_s7 }
 0x184   : > { %p4695_p5 = pnand %p4693_p0, %p6009_p8  ;;  %p4702_p2 = por %p4701_p13, %p4700_p3 }
 0x186   : > { %p4696_p1 = pneg %p4695_p5 }
 0x188   : > { %p4703_p4 = pnand %p4702_p2, %p4696_p1 }
 0x18a   : > { %4706 = shalt.err (!%p4703_p4)
}
 0x18b   : > { %3957 = dma.hbm_to_vmem [thread:$0]  (!%p6010_p6), %s6012_s24, 32, %s5520_s26, [#allocation17], %s5041_s15, %s5041_s15, %s5042_s18  }
 0x18c   : > { %s5045_s10 = smov [#allocation21]   ;;  %s5046_s5 = smov [#allocation24]  }
 0x18d   : > { %s611_s16 = sshll.u32 %s5045_s10, 4  ;;  %s633_s25 = sshll.u32 %s5046_s5, 4  ;;  %s612_s16 = int_to_ptr.vmem [resolvable:$true] %s611_s16  ;;  %s5569_s25 = int_to_ptr.vmem [resolvable:$true] %s633_s25 }
 0x18e   : > { %s6013_s23 = sld [smem:[#allocation62_spill]] }
 0x194   : > { %s4707_s7 = scalar_lea.hbm %s6013_s23, 32 }
 0x195   : > { %p4708_p11 = scmp.ne.s32.totalorder %s6013_s23, %s4707_s7  ;;  %p4714_p9 = scmp.lt.u32.totalorder %s4707_s7, %s6013_s23 }
 0x197   : > { %p4710_p12 = pnand %p4708_p11, %p6009_p8 }
 0x199   : > { %p4711_p7 = pneg %p4710_p12 }
 0x19b   : > { %p4716_p10 = pnand %p4714_p9, %p4711_p7 }
 0x19d   : > { %4719 = shalt.err (!%p4716_p10)
}
 0x19e   : > { %s4720_s18 = scalar_lea.vmem %s612_s16, 32  ;;  %p4728_p3 = scmp.lt.s32.totalorder %s612_s16, %s612_s16 }
 0x19f   : > { %p4721_p0 = scmp.ne.s32.totalorder %s612_s16, %s4720_s18  ;;  %p4729_p13 = scmp.lt.s32.totalorder %s4720_s18, %s4720_s18 }
 0x1a1   : > { %p4723_p5 = pnand %p4721_p0, %p6009_p8  ;;  %p4730_p2 = por %p4729_p13, %p4728_p3 }
 0x1a3   : > { %p4724_p1 = pneg %p4723_p5 }
 0x1a5   : > { %p4731_p4 = pnand %p4730_p2, %p4724_p1 }
 0x1a7   : > { %4734 = shalt.err (!%p4731_p4)
}
 0x1a8   : > { %3963 = dma.hbm_to_vmem [thread:$0]  (!%p6010_p6), %s6013_s23, 32, %s612_s16, [#allocation20]  }
 0x1a9   : > { %s6014_s10 = sld [smem:[#allocation64_spill]] }
 0x1af   : > { %s4735_s5 = scalar_lea.hbm %s6014_s10, 32 }
 0x1b0   : > { %p4736_p11 = scmp.ne.s32.totalorder %s6014_s10, %s4735_s5  ;;  %p4742_p9 = scmp.lt.u32.totalorder %s4735_s5, %s6014_s10 }
 0x1b2   : > { %p4738_p12 = pnand %p4736_p11, %p6009_p8 }
 0x1b4   : > { %p4739_p7 = pneg %p4738_p12 }
 0x1b6   : > { %p4744_p10 = pnand %p4742_p9, %p4739_p7 }
 0x1b8   : > { %4747 = shalt.err (!%p4744_p10)
}
 0x1b9   : > { %s4748_s16 = scalar_lea.vmem %s5569_s25, 32  ;;  %p4756_p3 = scmp.lt.s32.totalorder %s5569_s25, %s5569_s25 }
 0x1ba   : > { %p4749_p0 = scmp.ne.s32.totalorder %s5569_s25, %s4748_s16  ;;  %p4757_p13 = scmp.lt.s32.totalorder %s4748_s16, %s4748_s16 }
 0x1bc   : > { %p4751_p5 = pnand %p4749_p0, %p6009_p8  ;;  %p4758_p2 = por %p4757_p13, %p4756_p3 }
 0x1be   : > { %p4752_p1 = pneg %p4751_p5 }
 0x1c0   : > { %p4759_p4 = pnand %p4758_p2, %p4752_p1 }
 0x1c2   : > { %4762 = shalt.err (!%p4759_p4)
}
 0x1c3   : > { %3969 = dma.hbm_to_vmem [thread:$0]  (!%p6010_p6), %s6014_s10, 32, %s5569_s25, [#allocation23]  }
 0x1c4   : > { %s5047_s4 = smov [#allocation27]   ;;  %s5048_s11 = smov [#allocation30]  }
 0x1c5   : > { %s657_s26 = sshll.u32 %s5047_s4, 4  ;;  %s681_s22 = sshll.u32 %s5048_s11, 4  ;;  %s658_s26 = int_to_ptr.vmem [resolvable:$true] %s657_s26  ;;  %s5612_s22 = int_to_ptr.vmem [resolvable:$true] %s681_s22 }
 0x1c6   : > { %s6015_s28 = sld [smem:[#allocation66_spill]] }
 0x1cc   : > { %s4763_s7 = scalar_lea.hbm %s6015_s28, 32 }
 0x1cd   : > { %p4764_p11 = scmp.ne.s32.totalorder %s6015_s28, %s4763_s7  ;;  %p4770_p9 = scmp.lt.u32.totalorder %s4763_s7, %s6015_s28 }
 0x1cf   : > { %p4766_p12 = pnand %p4764_p11, %p6009_p8 }
 0x1d1   : > { %p4767_p7 = pneg %p4766_p12 }
 0x1d3   : > { %p4772_p10 = pnand %p4770_p9, %p4767_p7 }
 0x1d5   : > { %4775 = shalt.err (!%p4772_p10)
}
 0x1d6   : > { %s4776_s18 = scalar_lea.vmem %s658_s26, 32  ;;  %p4784_p3 = scmp.lt.s32.totalorder %s658_s26, %s658_s26 }
 0x1d7   : > { %p4777_p0 = scmp.ne.s32.totalorder %s658_s26, %s4776_s18  ;;  %p4785_p13 = scmp.lt.s32.totalorder %s4776_s18, %s4776_s18 }
 0x1d9   : > { %p4779_p5 = pnand %p4777_p0, %p6009_p8  ;;  %p4786_p2 = por %p4785_p13, %p4784_p3 }
 0x1db   : > { %p4780_p1 = pneg %p4779_p5 }
 0x1dd   : > { %p4787_p4 = pnand %p4786_p2, %p4780_p1 }
 0x1df   : > { %4790 = shalt.err (!%p4787_p4)
}
 0x1e0   : > { %3975 = dma.hbm_to_vmem [thread:$0]  (!%p6010_p6), %s6015_s28, 32, %s658_s26, [#allocation26]  }
 0x1e1   : > { %s6016_s7 = sld [smem:[#allocation68_spill]] }
 0x1e7   : > { %s4791_s20 = scalar_lea.hbm %s6016_s7, 32 }
 0x1e8   : > { %p4792_p11 = scmp.ne.s32.totalorder %s6016_s7, %s4791_s20  ;;  %p4798_p9 = scmp.lt.u32.totalorder %s4791_s20, %s6016_s7 }
 0x1ea   : > { %p4794_p12 = pnand %p4792_p11, %p6009_p8 }
 0x1ec   : > { %p4795_p7 = pneg %p4794_p12 }
 0x1ee   : > { %p4800_p10 = pnand %p4798_p9, %p4795_p7 }
 0x1f0   : > { %4803 = shalt.err (!%p4800_p10)
}
 0x1f1   : > { %s4804_s26 = scalar_lea.vmem %s5612_s22, 32  ;;  %p4812_p3 = scmp.lt.s32.totalorder %s5612_s22, %s5612_s22 }
 0x1f2   : > { %p4805_p0 = scmp.ne.s32.totalorder %s5612_s22, %s4804_s26  ;;  %p4813_p13 = scmp.lt.s32.totalorder %s4804_s26, %s4804_s26 }
 0x1f4   : > { %p4807_p5 = pnand %p4805_p0, %p6009_p8  ;;  %p4814_p2 = por %p4813_p13, %p4812_p3 }
 0x1f6   : > { %p4808_p1 = pneg %p4807_p5 }
 0x1f8   : > { %p4815_p4 = pnand %p4814_p2, %p4808_p1 }
 0x1fa   : > { %4818 = shalt.err (!%p4815_p4)
}
 0x1fb   : > { %3981 = dma.hbm_to_vmem [thread:$0]  (!%p6010_p6), %s6016_s7, 32, %s5612_s22, [#allocation29]  }
 0x1fc   : > { %s5049_s5 = smov [#allocation33]   ;;  %s3458_s20 = sshll.u32 %s5440_s6, 4 }
 0x1fd   : > { %s703_s17 = sshll.u32 %s5049_s5, 4  ;;  %s6017_s25 = sld [smem:[#allocation70_spill]]  ;;  %s704_s17 = int_to_ptr.vmem [resolvable:$true] %s703_s17 }
 0x203   : > { %s4819_s18 = scalar_lea.hbm %s6017_s25, 32 }
 0x204   : > { %p4820_p11 = scmp.ne.s32.totalorder %s6017_s25, %s4819_s18  ;;  %p4826_p9 = scmp.lt.u32.totalorder %s4819_s18, %s6017_s25 }
 0x206   : > { %p4822_p12 = pnand %p4820_p11, %p6009_p8 }
 0x208   : > { %p4823_p7 = pneg %p4822_p12 }
 0x20a   : > { %p4828_p10 = pnand %p4826_p9, %p4823_p7 }
 0x20c   : > { %4831 = shalt.err (!%p4828_p10)
}
 0x20d   : > { %s4832_s22 = scalar_lea.vmem %s704_s17, 32  ;;  %p4840_p3 = scmp.lt.s32.totalorder %s704_s17, %s704_s17 }
 0x20e   : > { %p4833_p0 = scmp.ne.s32.totalorder %s704_s17, %s4832_s22  ;;  %p4841_p13 = scmp.lt.s32.totalorder %s4832_s22, %s4832_s22 }
 0x210   : > { %p4835_p5 = pnand %p4833_p0, %p6009_p8  ;;  %p4842_p2 = por %p4841_p13, %p4840_p3 }
 0x212   : > { %p4836_p1 = pneg %p4835_p5 }
 0x214   : > { %p4843_p4 = pnand %p4842_p2, %p4836_p1 }
 0x216   : > { %4846 = shalt.err (!%p4843_p4)
}
 0x217   : > { %3987 = dma.hbm_to_vmem [thread:$0]  (!%p6010_p6), %s6017_s25, 32, %s704_s17, [#allocation32]  }
 0x218   : > { %s3699_s23 = sshll.u32 %s5021_s1, 8  ;;  %s718_s5 = scalar_lea.vmem [#allocation4], %s3458_s20 }
 0x219   : > { %s728_s16 = sshll.u32 %s718_s5, 4  ;;  %s6018_s18 = sld [smem:[#allocation52_spill]]  ;;  %s729_s16 = int_to_ptr.vmem [resolvable:$true] %s728_s16 }
 0x21a   : > { %s715_s3 = scalar_lea.sflag [#allocation5], %s5440_s6  ;;  %p6019_p11 = scmp.ne.s32.totalorder %s6005_s13, 0 }
 0x21f   : > { %s5678_s26 = scalar_lea.hbm %s6018_s18, %s3699_s23  ;;  %s4852_s20 = scalar_lea.hbm %s6018_s18, 512 }
 0x220   : > { %s4847_s4 = scalar_lea.hbm %s5678_s26, 256  ;;  %p4853_p6 = scmp.lt.u32.totalorder %s5678_s26, %s6018_s18 }
 0x221   : > { %p4848_p8 = scmp.ne.s32.totalorder %s5678_s26, %s4847_s4  ;;  %p4854_p9 = scmp.lt.u32.totalorder %s4852_s20, %s4847_s4 }
 0x222   : > { %p4856_p0 = scmp.lt.u32.totalorder %s4847_s4, %s5678_s26 }
 0x223   : > { %p4850_p12 = pnand %p4848_p8, %p6019_p11  ;;  %p4855_p10 = por %p4854_p9, %p4853_p6 }
 0x225   : > { %p4851_p7 = pneg %p4850_p12  ;;  %p4857_p5 = por %p4856_p0, %p4855_p10 }
 0x227   : > { %p4858_p1 = pnand %p4857_p5, %p4851_p7 }
 0x229   : > { %4861 = shalt.err (!%p4858_p1)
}
 0x22a   : > { %s4862_s23 = scalar_lea.vmem %s729_s16, 256  ;;  %s5050_s5 = smov [#allocation4]  }
 0x22b   : > { %p4863_p3 = scmp.ne.s32.totalorder %s729_s16, %s4862_s23  ;;  %s4867_s12 = sshll.u32 %s5050_s5, 4  ;;  %s4868_s12 = int_to_ptr.vmem [resolvable:$false] %s4867_s12 }
 0x22c   : > { %s4869_s15 = scalar_lea.vmem %s4868_s12, 512  ;;  %p4870_p4 = scmp.lt.s32.totalorder %s729_s16, %s4868_s12 }
 0x22d   : > { %p4865_p13 = pnand %p4863_p3, %p6019_p11  ;;  %p4871_p8 = scmp.lt.s32.totalorder %s4869_s15, %s4862_s23 }
 0x22f   : > { %p4866_p2 = pneg %p4865_p13  ;;  %p4872_p12 = por %p4871_p8, %p4870_p4 }
 0x231   : > { %p4873_p6 = pnand %p4872_p12, %p4866_p2 }
 0x233   : > { %4876 = shalt.err (!%p4873_p6)
}
 0x234   : > { %p6020_p9 = scmp.ne.s32.totalorder %s6003_s19, 0  ;;  %s6021_s4 = sshll.u32 %s5440_s6, 3 }
 0x235   : > { %s758_s17 = scalar_lea.vmem [#allocation9], %s6021_s4  ;;  %s4877_s20 = scalar_lea.hbm %s5497_s8, 128 }
 0x236   : > { %3991 = dma.hbm_to_vmem [thread:$0]  (!%p6020_p9), %s5678_s26, 256, %s729_s16, %s715_s3  }
 0x237   : > { %s766_s22 = sshll.u32 %s758_s17, 4  ;;  %p4878_p7 = scmp.ne.s32.totalorder %s5497_s8, %s4877_s20  ;;  %s767_s22 = int_to_ptr.vmem [resolvable:$true] %s766_s22 }
 0x238   : > { %s4882_s23 = scalar_lea.hbm %s6007_s14, 256  ;;  %p4883_p5 = scmp.lt.u32.totalorder %s5497_s8, %s6007_s14 }
 0x239   : > { %p4880_p10 = pnand %p4878_p7, %p6019_p11  ;;  %p4884_p1 = scmp.lt.u32.totalorder %s4882_s23, %s4877_s20 }
 0x23a   : > { %p4886_p13 = scmp.lt.u32.totalorder %s4877_s20, %s5497_s8 }
 0x23b   : > { %p4881_p0 = pneg %p4880_p10  ;;  %p4885_p3 = por %p4884_p1, %p4883_p5 }
 0x23d   : > { %p4887_p2 = por %p4886_p13, %p4885_p3 }
 0x23f   : > { %p4888_p4 = pnand %p4887_p2, %p4881_p0 }
 0x241   : > { %4891 = shalt.err (!%p4888_p4)
}
 0x242   : > { %s4892_s6 = scalar_lea.vmem %s767_s22, 128  ;;  %s5051_s16 = smov [#allocation9]  }
 0x243   : > { %p4893_p8 = scmp.ne.s32.totalorder %s767_s22, %s4892_s6  ;;  %s4897_s26 = sshll.u32 %s5051_s16, 4  ;;  %s4898_s26 = int_to_ptr.vmem [resolvable:$false] %s4897_s26 }
 0x244   : > { %s4899_s3 = scalar_lea.vmem %s4898_s26, 256  ;;  %p4900_p7 = scmp.lt.s32.totalorder %s767_s22, %s4898_s26 }
 0x245   : > { %p4895_p12 = pnand %p4893_p8, %p6019_p11  ;;  %p4901_p10 = scmp.lt.s32.totalorder %s4899_s3, %s4892_s6 }
 0x247   : > { %p4896_p6 = pneg %p4895_p12  ;;  %p4902_p9 = por %p4901_p10, %p4900_p7 }
 0x249   : > { %p4903_p1 = pnand %p4902_p9, %p4896_p6 }
 0x24b   : > { %4906 = shalt.err (!%p4903_p1)
}
 0x24c   : > { %p6022_p5 = scmp.ne.s32.totalorder %s6003_s19, 0  ;;  %s6023_s15 = sld [smem:[#allocation49_spill]] }
 0x24e   : > { %3997 = dma.hbm_to_vmem [thread:$0]  (!%p6022_p5), %s5497_s8, 128, %s767_s22, %s5462_s9  }
 0x252   : > { %p6024_p0 = scmp.ne.s32.totalorder %s6023_s15, 0 }
 0x253   : > { %s5721_s13 = sand.u32 (!%p6024_p0), 1, %s5009_s30   ;;  %p6025_p11 = scmp.ne.s32.totalorder (!%p6024_p0), %s5999_s29, 0 }
 0x254   : > { %775 = sbr.rel (%p6024_p0) target bundleno = 3468 (0xd8c), region = 96  ;;  %s3468_s4 = sshll.u32 (!%p6024_p0), %s5721_s13, 4 }
 0x255   : > { %s778_s17 = scalar_lea.sflag (!%p6024_p0), [#allocation5], %s5721_s13  ;;  %s5727_s20 = scalar_lea.vmem (!%p6024_p0), [#allocation4], %s3468_s4 }
 0x25b   : > { %4960 = dma.done.wait (%p6025_p11), %s778_s17, 256  }
 0x25c   : > { %4962 = vsyncadd (%p6025_p11), %s778_s17, 4294967040  ;;  %s786_s9 = sand.u32 1, %s5187_s2   ;;  %s3469_s19 = sshll.u32 %s5721_s13, 3 }
 0x25d   : > { %s787_s8 = scalar_lea.sflag [#allocation8], %s786_s9  ;;  %s5735_s22 = scalar_lea.vmem [#allocation7], %s3469_s19 }
 0x25e   : > { %4964 = dma.done.wait (%p6025_p11), %s787_s8, 256  }
 0x25f   : > { %4966 = vsyncadd (%p6025_p11), %s787_s8, 4294967040  ;;  %s5741_s10 = scalar_lea.vmem [#allocation9], %s3469_s19  ;;  %p6026_p9 = scmp.eq.s32.totalorder %s5187_s2, 0 }
 0x261   : > { %4968 = dma.done.wait (%p6026_p9), [#allocation11], 4128   ;;  %p6027_p3 = pmov %p6026_p9 }
 0x263   : > { %4970 = vsyncadd (%p6027_p3), [#allocation11], 4294963168  ;;  %p6028_p13 = pmov %p6027_p3 }
 0x264   : > { %p6029_p2 = pmov %p6027_p3 }
 0x265   : > { %4972 = dma.done.wait (%p6028_p13), [#allocation14], 4128  }
 0x266   : > { %4974 = vsyncadd (%p6029_p2), [#allocation14], 4294963168  ;;  %p6030_p4 = pmov %p6029_p2 }
 0x267   : > { %p6031_p8 = pmov %p6029_p2 }
 0x268   : > { %4976 = dma.done.wait (%p6030_p4), [#allocation17], 4128  }
 0x269   : > { %4978 = vsyncadd (%p6031_p8), [#allocation17], 4294963168  ;;  %p6032_p12 = pmov %p6029_p2 }
 0x26a   : > { %p6033_p6 = pmov %p6029_p2 }
 0x26b   : > { %4980 = dma.done.wait (%p6032_p12), [#allocation20], 4128  }
 0x26c   : > { %4982 = vsyncadd (%p6033_p6), [#allocation20], 4294963168  ;;  %p6034_p7 = pmov %p6029_p2 }
 0x26d   : > { %p6035_p10 = pmov %p6029_p2 }
 0x26e   : > { %4984 = dma.done.wait (%p6034_p7), [#allocation23], 64  }
 0x26f   : > { %4986 = vsyncadd (%p6035_p10), [#allocation23], 4294967232  ;;  %p6036_p1 = pmov %p6029_p2 }
 0x271   : > { %4988 = dma.done.wait (%p6036_p1), [#allocation26], 4128   ;;  %p6037_p5 = pmov %p6036_p1 }
 0x272   : > { %p6038_p0 = pmov %p6036_p1 }
 0x273   : > { %4990 = vsyncadd (%p6037_p5), [#allocation26], 4294963168 }
 0x274   : > { %4992 = dma.done.wait (%p6038_p0), [#allocation29], 4128   ;;  %p6039_p11 = pmov %p6038_p0 }
 0x275   : > { %p6040_p9 = pmov %p6038_p0 }
 0x276   : > { %4994 = vsyncadd (%p6039_p11), [#allocation29], 4294963168 }
 0x277   : > { %4996 = dma.done.wait (%p6040_p9), [#allocation32], 64   ;;  %p6041_p3 = pmov %p6038_p0 }
 0x278   : > { %v4109_v0 = vld [vmem:[#allocation13 + $0x40] sm:$0xff]   ;;  %v4111_v2 = vld [vmem:[#allocation13 + $0x48] sm:$0xff]   ;;  %v4113_v4 = vld [vmem:[#allocation13 + $0x50] sm:$0xff]   ;;  %vm5053_vm0 = vmmov 0   ;;  %vm1917_vm1 = vcmask 1043456   ;;  %vm1898_vm2 = vcmask 64512  }
 0x279   : > { %4998 = vsyncadd (%p6041_p3), [#allocation32], 4294967232  ;;  %v4110_v1 = vld [vmem:[#allocation13] sm:$0xff]   ;;  %3703 = vmatprep.subr.bf16.mxu0 %v4109_v0  ;;  %v4112_v3 = vld [vmem:[#allocation13 + $0x8] sm:$0xff]   ;;  %s6042_s2 = sld [smem:[#allocation47_spill]]  ;;  %s927_s11 = scalar_lea.vmem [#allocation34], %s3468_s4 }
 0x27a   : > { %3704 = vmatpush3.bf16.msra.mxu0 %v4110_v1  ;;  %v4114_v5 = vld [vmem:[#allocation13 + $0x10] sm:$0xff]   ;;  %v4115_v6 = vld [vmem:[#allocation13 + $0x58] sm:$0xff]   ;;  %v4117_v8 = vld [vmem:[#allocation13 + $0x60] sm:$0xff]   ;;  %s3155_s23 = sshll.u32 %s927_s11, 4  ;;  %s6043_s6 = sld [smem:[#allocation71_spill]]  ;;  %s5857_s23 = int_to_ptr.vmem [resolvable:$true] %s3155_s23 }
 0x27b   : > { %3705 = vmatprep.subr.bf16.mxu0 %v4111_v2  ;;  %v4116_v7 = vld [vmem:[#allocation13 + $0x18] sm:$0xff]   ;;  %v4118_v9 = vld [vmem:[#allocation13 + $0x20] sm:$0xff]   ;;  %v4119_v10 = vld [vmem:[#allocation13 + $0x68] sm:$0xff]   ;;  %s3139_s26 = scalar_lea.sflag [#allocation6], %s5721_s13  ;;  %s4907_s3 = scalar_lea.vmem %s5857_s23, 256 }
 0x27c   : > { %v933_v11 = vld [vmem:[%s5735_s22] sm:$0xff]  ;;  %v4121_v14 = vld [vmem:[#allocation13 + $0x70] sm:$0xff]   ;;  %p4908_p13 = scmp.ne.s32.totalorder %s5857_s23, %s4907_s3  ;;  %p6044_p2 = scmp.ne.s32.totalorder %s6000_s27, 0 }
 0x27d   : > { %v5776_v12 = vcombine.high %v933_v11, %v933_v11  ;;  %v4120_v13 = vld [vmem:[#allocation13 + $0x28] sm:$0xff]   ;;  %v4122_v15 = vld [vmem:[#allocation13 + $0x30] sm:$0xff]   ;;  %v4123_v16 = vld [vmem:[#allocation13 + $0x78] sm:$0xff]   ;;  %v5779_v19 = vcombine.low %v933_v11, %v933_v11  ;;  %s5055_s15 = smov [#allocation34]  }
 0x27e   : > { %3706 = vmatpush3.bf16.msra.mxu0 %v4112_v3  ;;  %v4124_v17 = vld [vmem:[#allocation13 + $0x38] sm:$0xff]   ;;  %v4127_v18 = vld [vmem:[#allocation13 + $0xc0] sm:$0xff]   ;;  %v4129_v21 = vld [vmem:[#allocation13 + $0xc8] sm:$0xff]   ;;  %p4909_p4 = pnand %p4908_p13, %p6044_p2  ;;  %s4911_s4 = sshll.u32 %s5055_s15, 4  ;;  %s4912_s4 = int_to_ptr.vmem [resolvable:$false] %s4911_s4 }
 0x27f   : > { %3707 = vmatprep.subr.bf16.mxu0 %v4113_v4  ;;  %1109 = vmatprep.mubr.bf16.mxu0 %v5776_v12  ;;  %v4128_v20 = vld [vmem:[#allocation13 + $0x80] sm:$0xff]   ;;  %v4130_v22 = vld [vmem:[#allocation13 + $0x88] sm:$0xff]   ;;  %v4131_v23 = vld [vmem:[#allocation13 + $0xd0] sm:$0xff]   ;;  %s3702_s29 = sshll.u32 %s6042_s2, 8  ;;  %s4913_s17 = scalar_lea.vmem %s4912_s4, 512 }
 0x280   : > { %v4132_v24 = vld [vmem:[#allocation13 + $0x90] sm:$0xff]   ;;  %v4133_v25 = vld [vmem:[#allocation13 + $0xd8] sm:$0xff]   ;;  %v4135_v27 = vld [vmem:[#allocation13 + $0xe0] sm:$0xff]   ;;  %s5855_s16 = scalar_lea.hbm %s6043_s6, %s3702_s29  ;;  %p4910_p8 = pneg %p4909_p4 }
 0x281   : > { %v4134_v26 = vld [vmem:[#allocation13 + $0x98] sm:$0xff]   ;;  %v4136_v28 = vld [vmem:[#allocation13 + $0xa0] sm:$0xff]   ;;  %v4137_v29 = vld [vmem:[#allocation13 + $0xe8] sm:$0xff]   ;;  %p4914_p12 = scmp.lt.s32.totalorder %s5857_s23, %s4912_s4  ;;  %p4915_p6 = scmp.lt.s32.totalorder %s4913_s17, %s4907_s3 }
 0x282   : > { %3708 = vmatpush3.bf16.msra.mxu0 %v4114_v5  ;;  %v4138_v30 = vld [vmem:[#allocation13 + $0xa8] sm:$0xff]   ;;  %v4139_v32 = vld [vmem:[#allocation13 + $0xf0] sm:$0xff]   ;;  %v4141_v38 = vld [vmem:[#allocation13 + $0xf8] sm:$0xff]  }
 0x283   : > { %3709 = vmatprep.subr.bf16.mxu0 %v4115_v6  ;;  %v4159_v31 = vld [vmem:[#allocation16 + $0x40] sm:$0xff]   ;;  %v4161_v34 = vld [vmem:[#allocation16 + $0x48] sm:$0xff]   ;;  %v4163_v36 = vld [vmem:[#allocation16 + $0x50] sm:$0xff]   ;;  %p4916_p7 = por %p4915_p6, %p4914_p12 }
 0x284   : > { %v4160_v33 = vld [vmem:[#allocation16] sm:$0xff]   ;;  %3725 = vmatprep.subr.bf16.mxu1 %v4159_v31  ;;  %v4162_v35 = vld [vmem:[#allocation16 + $0x8] sm:$0xff]   ;;  %v4164_v39 = vld [vmem:[#allocation16 + $0x10] sm:$0xff]  }
 0x285   : > { %3726 = vmatpush3.bf16.msra.mxu1 %v4160_v33  ;;  %v4140_v37 = vld [vmem:[#allocation13 + $0xb0] sm:$0xff]   ;;  %v4165_v40 = vld [vmem:[#allocation16 + $0x58] sm:$0xff]   ;;  %v4167_v44 = vld [vmem:[#allocation16 + $0x60] sm:$0xff]   ;;  %p4917_p10 = pnand %p4916_p7, %p4910_p8 }
 0x286   : > { %3710 = vmatpush3.bf16.msra.mxu0 %v4116_v7  ;;  %3727 = vmatprep.subr.bf16.mxu1 %v4161_v34  ;;  %v4142_v41 = vld [vmem:[#allocation13 + $0xb8] sm:$0xff]   ;;  %v4145_v46 = vld [vmem:[#allocation10 + $0x48] sm:$0xff]   ;;  %v4147_v52 = vld [vmem:[#allocation10 + $0x50] sm:$0xff]  }
 0x287   : > { %3711 = vmatprep.subr.bf16.mxu0 %v4117_v8  ;;  %v4143_v42 = vld [vmem:[#allocation10 + $0x40] sm:$0xff]   ;;  %v934_v48 = vld [vmem:[%s5741_s10] sm:$0xff]  ;;  %v4146_v51 = vld [vmem:[#allocation10 + $0x8] sm:$0xff]  }
 0x288   : > { %v4166_v43 = vld [vmem:[#allocation16 + $0x18] sm:$0xff]   ;;  %v4168_v47 = vld [vmem:[#allocation16 + $0x20] sm:$0xff]   ;;  %v4169_v49 = vld [vmem:[#allocation16 + $0x68] sm:$0xff]   ;;  %v3509_v50 = vcombine.high %v934_v48, %v934_v48  ;;  %v3508_v2 = vcombine.low %v934_v48, %v934_v48 }
 0x289   : > { %3728 = vmatpush3.bf16.msra.mxu1 %v4162_v35  ;;  %v4144_v45 = vld [vmem:[#allocation10] sm:$0xff]   ;;  %v4170_v53 = vld [vmem:[#allocation16 + $0x28] sm:$0xff]   ;;  %v4171_v54 = vld [vmem:[#allocation16 + $0x70] sm:$0xff]  }
 0x28a   : > { %3712 = vmatpush3.bf16.msra.mxu0 %v4118_v9  ;;  %3729 = vmatprep.subr.bf16.mxu1 %v4163_v36  ;;  %v4148_v55 = vld [vmem:[#allocation10 + $0x10] sm:$0xff]   ;;  %v4149_v56 = vld [vmem:[#allocation10 + $0x58] sm:$0xff]   ;;  %v4151_v60 = vld [vmem:[#allocation10 + $0x60] sm:$0xff]  }
 0x28b   : > { %3713 = vmatprep.subr.bf16.mxu0 %v4119_v10  ;;  %1293 = vmatprep.mubr.bf16.mxu1 %v3509_v50  ;;  %v4172_v57 = vld [vmem:[#allocation16 + $0x30] sm:$0xff]   ;;  %v4173_v59 = vld [vmem:[#allocation16 + $0x78] sm:$0xff]   ;;  %v4177_v62 = vld [vmem:[#allocation16 + $0xc0] sm:$0xff]  }
 0x28c   : > { %v4150_v58 = vld [vmem:[#allocation10 + $0x18] sm:$0xff]   ;;  %v4152_v63 = vld [vmem:[#allocation10 + $0x20] sm:$0xff]   ;;  %v4153_v0 = vld [vmem:[#allocation10 + $0x68] sm:$0xff]  }
 0x28d   : > { %3730 = vmatpush3.bf16.msra.mxu1 %v4164_v39  ;;  %v4174_v61 = vld [vmem:[#allocation16 + $0x38] sm:$0xff]   ;;  %v4178_v1 = vld [vmem:[#allocation16 + $0x80] sm:$0xff]   ;;  %v4179_v3 = vld [vmem:[#allocation16 + $0xc8] sm:$0xff]  }
 0x28e   : > { %3714 = vmatpush3.bf16.msra.mxu0 %v4120_v13  ;;  %3731 = vmatprep.subr.bf16.mxu1 %v4165_v40  ;;  %v4154_v4 = vld [vmem:[#allocation10 + $0x28] sm:$0xff]   ;;  %v4155_v5 = vld [vmem:[#allocation10 + $0x70] sm:$0xff]   ;;  %v4157_v9 = vld [vmem:[#allocation10 + $0x78] sm:$0xff]  }
 0x28f   : > { %3715 = vmatprep.subr.bf16.mxu0 %v4121_v14  ;;  %v4180_v6 = vld [vmem:[#allocation16 + $0x88] sm:$0xff]   ;;  %v4181_v7 = vld [vmem:[#allocation16 + $0xd0] sm:$0xff]   ;;  %v4183_v11 = vld [vmem:[#allocation16 + $0xd8] sm:$0xff]  }
 0x290   : > { %v4156_v8 = vld [vmem:[#allocation10 + $0x30] sm:$0xff]   ;;  %v4158_v13 = vld [vmem:[#allocation10 + $0x38] sm:$0xff]   ;;  %v3526_v35 = vld [vmem:[#allocation15 + $0x1] ss:$0 sm:$0xff] }
 0x291   : > { %3732 = vmatpush3.bf16.msra.mxu1 %v4166_v43  ;;  %v4182_v10 = vld [vmem:[#allocation16 + $0x90] sm:$0xff]   ;;  %v4184_v14 = vld [vmem:[#allocation16 + $0x98] sm:$0xff]  }
 0x292   : > { %3716 = vmatpush3.bf16.msra.mxu0 %v4122_v15  ;;  %3733 = vmatprep.subr.bf16.mxu1 %v4167_v44  ;;  %v4185_v15 = vld [vmem:[#allocation16 + $0xe0] sm:$0xff]  }
 0x293   : > { %3717 = vmatprep.subr.bf16.mxu0 %v4123_v16  ;;  %v4186_v16 = vld [vmem:[#allocation16 + $0xa0] sm:$0xff]  }
 0x294   : > { %v3507_v44 = vld [vmem:[#allocation18] ss:$0 sm:$0xff] }
 0x295   : > { %3734 = vmatpush3.bf16.msra.mxu1 %v4168_v47 }
 0x296   : > { %3718 = vmatpush3.bf16.msra.mxu0 %v4124_v17  ;;  %3735 = vmatprep.subr.bf16.mxu1 %v4169_v49  ;;  %v4187_v17 = vld [vmem:[#allocation16 + $0xe8] sm:$0xff]  }
 0x297   : > { %3747 = vmatprep.subr.bf16.mxu0 %v4127_v18  ;;  %v4188_v18 = vld [vmem:[#allocation16 + $0xa8] sm:$0xff]  }
 0x299   : > { %1110 = vmatmul.mubr.bf16.vlgmr.msra.gmra.mrb[0].mxu0 %v5779_v19  ;;  %3736 = vmatpush3.bf16.msra.mxu1 %v4170_v53 }
 0x29a   : > { %3748 = vmatpush3.bf16.msra.mxu0 %v4128_v20  ;;  %1472 = vmatprep.mubr.bf16.mxu0 %v5776_v12  ;;  %v4189_v20 = vld [vmem:[#allocation16 + $0xf0] sm:$0xff]  }
 0x29b   : > { %3749 = vmatprep.subr.bf16.mxu0 %v4129_v21  ;;  %3737 = vmatprep.subr.bf16.mxu1 %v4171_v54  ;;  %v4190_v21 = vld [vmem:[#allocation16 + $0xb0] sm:$0xff]  }
 0x29d   : > { %3738 = vmatpush3.bf16.msra.mxu1 %v4172_v57 }
 0x29e   : > { %3750 = vmatpush3.bf16.msra.mxu0 %v4130_v22  ;;  %3739 = vmatprep.subr.bf16.mxu1 %v4173_v59  ;;  %v4191_v22 = vld [vmem:[#allocation16 + $0xf8] sm:$0xff]  }
 0x29f   : > { %3751 = vmatprep.subr.bf16.mxu0 %v4131_v23  ;;  %v4192_v23 = vld [vmem:[#allocation16 + $0xb8] sm:$0xff]  }
 0x2a1   : > { %3740 = vmatpush3.bf16.msra.mxu1 %v4174_v61 }
 0x2a2   : > { %3752 = vmatpush3.bf16.msra.mxu0 %v4132_v24  ;;  %3769 = vmatprep.subr.bf16.mxu1 %v4177_v62  ;;  %v5052_v24 = vmov 0.0  }
 0x2a3   : > { %3753 = vmatprep.subr.bf16.mxu0 %v4133_v25 }
 0x2a4   : > { %1294 = vmatmul.mubr.bf16.vlgmr.msra.gmra.mrb[0].mxu1 %v3508_v2 }
 0x2a5   : > { %3770 = vmatpush3.bf16.msra.mxu1 %v4178_v1  ;;  %1652 = vmatprep.mubr.bf16.mxu1 %v3509_v50 }
 0x2a6   : > { %3754 = vmatpush3.bf16.msra.mxu0 %v4134_v26  ;;  %3771 = vmatprep.subr.bf16.mxu1 %v4179_v3  ;;  %v3488_v26 = vld [vmem:[#allocation15] ss:$0 sm:$0xff] }
 0x2a7   : > { %3755 = vmatprep.subr.bf16.mxu0 %v4135_v27 }
 0x2a9   : > { %3772 = vmatpush3.bf16.msra.mxu1 %v4180_v6 }
 0x2aa   : > { %3756 = vmatpush3.bf16.msra.mxu0 %v4136_v28  ;;  %3773 = vmatprep.subr.bf16.mxu1 %v4181_v7 }
 0x2ab   : > { %3757 = vmatprep.subr.bf16.mxu0 %v4137_v29 }
 0x2ad   : > { %3774 = vmatpush3.bf16.msra.mxu1 %v4182_v10 }
 0x2ae   : > { %3758 = vmatpush3.bf16.msra.mxu0 %v4138_v30  ;;  %3775 = vmatprep.subr.bf16.mxu1 %v4183_v11  ;;  %v4193_v11 = vld [vmem:[#allocation10 + $0xc0] sm:$0xff]  }
 0x2af   : > { %3759 = vmatprep.subr.bf16.mxu0 %v4139_v32 }
 0x2b1   : > { %3776 = vmatpush3.bf16.msra.mxu1 %v4184_v14 }
 0x2b2   : > { %3760 = vmatpush3.bf16.msra.mxu0 %v4140_v37  ;;  %3777 = vmatprep.subr.bf16.mxu1 %v4185_v15 }
 0x2b3   : > { %3761 = vmatprep.subr.bf16.mxu0 %v4141_v38 }
 0x2b5   : > { %3778 = vmatpush3.bf16.msra.mxu1 %v4186_v16 }
 0x2b6   : > { %3762 = vmatpush3.bf16.msra.mxu0 %v4142_v41  ;;  %3779 = vmatprep.subr.bf16.mxu1 %v4187_v17  ;;  %v4194_v17 = vld [vmem:[#allocation10 + $0x80] sm:$0xff]  }
 0x2b7   : > { %3791 = vmatprep.subr.bf16.mxu0 %v4143_v42 }
 0x2b9   : > { %1473 = vmatmul.mubr.bf16.vlgmr.msra.gmra.mrb[4].mxu0 %v5779_v19  ;;  %3780 = vmatpush3.bf16.msra.mxu1 %v4188_v18 }
 0x2ba   : > { %3792 = vmatpush3.bf16.msra.mxu0 %v4144_v45  ;;  %1846 = vmatprep.mubr.bf16.mxu0 %v5776_v12 }
 0x2bb   : > { %3793 = vmatprep.subr.bf16.mxu0 %v4145_v46  ;;  %3781 = vmatprep.subr.bf16.mxu1 %v4189_v20 }
 0x2bd   : > { %3782 = vmatpush3.bf16.msra.mxu1 %v4190_v21  ;;  %v4195_v21 = vld [vmem:[#allocation10 + $0xc8] sm:$0xff]  }
 0x2be   : > { %3794 = vmatpush3.bf16.msra.mxu0 %v4146_v51  ;;  %3783 = vmatprep.subr.bf16.mxu1 %v4191_v22  ;;  %v4196_v22 = vld [vmem:[#allocation10 + $0x88] sm:$0xff]  }
 0x2bf   : > { %3795 = vmatprep.subr.bf16.mxu0 %v4147_v52  ;;  %v3560_v52 = vld [vmem:[#allocation12] ss:$0 sm:$0xff] }
 0x2c1   : > { %3784 = vmatpush3.bf16.msra.mxu1 %v4192_v23  ;;  %v4197_v23 = vld [vmem:[#allocation10 + $0xd0] sm:$0xff]  }
 0x2c2   : > { %3796 = vmatpush3.bf16.msra.mxu0 %v4148_v55  ;;  %3843 = vmatprep.subr.bf16.mxu1 %v5052_v24 }
 0x2c3   : > { %3797 = vmatprep.subr.bf16.mxu0 %v4149_v56 }
 0x2c4   : > { %1653 = vmatmul.mubr.bf16.vlgmr.msra.gmra.mrb[4].mxu1 %v3508_v2 }
 0x2c5   : > { %3845 = vmatprep.mubr.msk.bf16.mxu1 %vm5053_vm0, %v5052_v24 }
 0x2c6   : > { %3798 = vmatpush3.bf16.msra.mxu0 %v4150_v58 }
 0x2c7   : > { %3799 = vmatprep.subr.bf16.mxu0 %v4151_v60 }
 0x2ca   : > { %3800 = vmatpush3.bf16.msra.mxu0 %v4152_v63  ;;  %v3543_v63 = vld [vmem:[#allocation18 + $0x1] ss:$0 sm:$0xff] }
 0x2cb   : > { %3801 = vmatprep.subr.bf16.mxu0 %v4153_v0 }
 0x2ce   : > { %3802 = vmatpush3.bf16.msra.mxu0 %v4154_v4 }
 0x2cf   : > { %3803 = vmatprep.subr.bf16.mxu0 %v4155_v5 }
 0x2d2   : > { %3804 = vmatpush3.bf16.msra.mxu0 %v4156_v8 }
 0x2d3   : > { %3805 = vmatprep.subr.bf16.mxu0 %v4157_v9 }
 0x2d6   : > { %3806 = vmatpush3.bf16.msra.mxu0 %v4158_v13 }
 0x2d7   : > { %3855 = vmatprep.subr.bf16.mxu0 %v5052_v24 }
 0x2d9   : > { %1847 = vmatmul.mubr.bf16.vlgmr.msra.gmra.mrb[8].mxu0 %v5779_v19 }
 0x2da   : > { %3857 = vmatprep.mubr.msk.bf16.mxu0 %vm5053_vm0, %v5052_v24 }
 0x36c   : > { %v3719_v25 = vpop.f32.mrb[0].mxu0 }
 0x36d   : > { %v3720_v27 = vpop.f32.mrb[1].mxu0 }
 0x36e   : > { %v3721_v28 = vadd.f32 %v3720_v27, %v3719_v25  ;;  %v3722_v29 = vpop.f32.mrb[2].mxu0  ;;  %v4198_v25 = vld [vmem:[#allocation10 + $0x90] sm:$0xff]   ;;  %v4200_v27 = vld [vmem:[#allocation10 + $0x98] sm:$0xff]  }
 0x36f   : > { %v3723_v30 = vpop.f32.mrb[3].mxu0  ;;  %v4202_v29 = vld [vmem:[#allocation10 + $0xa0] sm:$0xff]  }
 0x370   : > { %v1112_v31 = vadd.f32 %v3721_v28, %v3488_v26  ;;  %v4199_v26 = vld [vmem:[#allocation10 + $0xd8] sm:$0xff]   ;;  %v4201_v28 = vld [vmem:[#allocation10 + $0xe0] sm:$0xff]   ;;  %v4203_v30 = vld [vmem:[#allocation10 + $0xe8] sm:$0xff]  }
 0x372   : > { %v1117_v32 = vpack.c.bf16 %v1112_v31, %v1112_v31  ;;  %v4204_v31 = vld [vmem:[#allocation10 + $0xa8] sm:$0xff]  }
 0x374   : > { %1118 = vst [vmem:[#allocation2] sm:$0xf] %v1117_v32  ;;  %v4205_v32 = vld [vmem:[#allocation10 + $0xf0] sm:$0xff]  }
 0x377   : > { %v3741_v43 = vpop.f32.mrb[0].mxu1 }
 0x378   : > { %v3742_v45 = vpop.f32.mrb[1].mxu1 }
 0x379   : > { %v3743_v46 = vadd.f32 %v3742_v45, %v3741_v43  ;;  %v3744_v47 = vpop.f32.mrb[2].mxu1  ;;  %v4223_v43 = vld [vmem:[#allocation19 + $0x44] ss:$8 sps:$4 sm:$0xff]   ;;  %v4226_v45 = vld [vmem:[#allocation19 + $0x54] ss:$8 sps:$4 sm:$0xff]  }
 0x37a   : > { %v3745_v48 = vpop.f32.mrb[3].mxu1  ;;  %v4227_v47 = vld [vmem:[#allocation19 + $0x60] ss:$8 sps:$4 sm:$0xff]  }
 0x37b   : > { %v1856_v33 = vld [vmem:[#allocation2] sm:$0xf]  ;;  %v1296_v49 = vadd.f32 %v3743_v46, %v3507_v44  ;;  %v4224_v46 = vld [vmem:[#allocation19 + $0x50] ss:$8 sps:$4 sm:$0xff]   ;;  %v4232_v48 = vld [vmem:[#allocation19 + $0x74] ss:$8 sps:$4 sm:$0xff]  }
 0x37c   : > { %3844 = vmatpush3.bf16.xpose.msra.mxu1 %v1856_v33  ;;  %v4207_v33 = vld [vmem:[#allocation10 + $0xf8] sm:$0xff]   ;;  %v4221_v44 = vld [vmem:[#allocation19 + $0x40] ss:$8 sps:$4 sm:$0xff]  }
 0x37d   : > { %3849 = vmatprep.subr.bf16.mxu1 %v5052_v24  ;;  %v1301_v50 = vpack.c.bf16 %v1296_v49, %v1296_v49  ;;  %v4230_v49 = vld [vmem:[#allocation19 + $0x70] ss:$8 sps:$4 sm:$0xff]  }
 0x37f   : > { %1302 = vst [vmem:[#allocation3] sm:$0xf] %v1301_v50  ;;  %v5054_v50 = vmov 0  }
 0x386   : > { %v1857_v58 = vld [vmem:[#allocation3] sm:$0xf] }
 0x387   : > { %v1919_v61 = vsel %vm1917_vm1, %v1857_v58, 0 }
 0x38c   : > { %v3763_v34 = vpop.f32.mrb[4].mxu0 }
 0x38d   : > { %v3764_v36 = vpop.f32.mrb[5].mxu0 }
 0x38e   : > { %v3765_v37 = vadd.f32 %v3764_v36, %v3763_v34  ;;  %v3766_v38 = vpop.f32.mrb[6].mxu0  ;;  %v4208_v34 = vld [vmem:[#allocation10 + $0xb8] sm:$0xff]   ;;  %v4209_v36 = vld [vmem:[#allocation19] ss:$8 sps:$4 sm:$0xff]  }
 0x38f   : > { %v3767_v39 = vpop.f32.mrb[7].mxu0  ;;  %v4212_v38 = vld [vmem:[#allocation19 + $0x10] ss:$8 sps:$4 sm:$0xff]  }
 0x390   : > { %v1475_v40 = vadd.f32 %v3765_v37, %v3526_v35  ;;  %v4211_v35 = vld [vmem:[#allocation19 + $0x4] ss:$8 sps:$4 sm:$0xff]   ;;  %v4214_v37 = vld [vmem:[#allocation19 + $0x14] ss:$8 sps:$4 sm:$0xff]  }
 0x391   : > { %v4217_v39 = vld [vmem:[#allocation19 + $0x24] ss:$8 sps:$4 sm:$0xff]  }
 0x392   : > { %v1480_v41 = vpack.c.bf16 %v1475_v40, %v1475_v40  ;;  %v4215_v40 = vld [vmem:[#allocation19 + $0x20] ss:$8 sps:$4 sm:$0xff]  }
 0x394   : > { %1482 = vst [vmem:[#allocation2 + $0x4] sm:$0xf] %v1480_v41  ;;  %v4220_v41 = vld [vmem:[#allocation19 + $0x34] ss:$8 sps:$4 sm:$0xff]  }
 0x397   : > { %v3785_v62 = vpop.f32.mrb[4].mxu1 }
 0x398   : > { %v3786_v0 = vpop.f32.mrb[5].mxu1 }
 0x399   : > { %v3787_v1 = vadd.f32 %v3786_v0, %v3785_v62  ;;  %v3788_v2 = vpop.f32.mrb[6].mxu1 }
 0x39a   : > { %v3789_v3 = vpop.f32.mrb[7].mxu1  ;;  %v3580_v2 = vld [vmem:[#allocation12 + $0x1] ss:$0 sm:$0xff] }
 0x39b   : > { %v2164_v42 = vld [vmem:[#allocation2 + $0x4] sm:$0xf]  ;;  %v1655_v4 = vadd.f32 %v3787_v1, %v3543_v63 }
 0x39c   : > { %3856 = vmatpush3.bf16.xpose.msra.mxu0 %v2164_v42  ;;  %v4218_v42 = vld [vmem:[#allocation19 + $0x30] ss:$8 sps:$4 sm:$0xff]  }
 0x39d   : > { %3861 = vmatprep.subr.bf16.mxu0 %v5052_v24  ;;  %v1660_v5 = vpack.c.bf16 %v1655_v4, %v1655_v4 }
 0x39f   : > { %1662 = vst [vmem:[#allocation3 + $0x4] sm:$0xf] %v1660_v5 }
 0x3ac   : > { %v3807_v51 = vpop.f32.mrb[8].mxu0 }
 0x3ad   : > { %v3808_v53 = vpop.f32.mrb[9].mxu0 }
 0x3ae   : > { %v3809_v54 = vadd.f32 %v3808_v53, %v3807_v51  ;;  %v3810_v55 = vpop.f32.mrb[10].mxu0 }
 0x3af   : > { %v3811_v56 = vpop.f32.mrb[11].mxu0 }
 0x3b0   : > { %v1849_v57 = vadd.f32 %v3809_v54, %v3560_v52 }
 0x3b2   : > { %v1854_v59 = vmul.f32 0.088388346, %v1849_v57 }
 0x3b4   : > { %v1855_v60 = vpack.c.bf16 %v1854_v59, %v1854_v59 }
 0x3b6   : > { %3846 = vmatmul.mubr.bf16.vlgmr.msra.gmra.mrb[8].mxu1 %v1855_v60 }
 0x3b7   : > { %3850 = vmatpush3.bf16.msra.mxu1 %v1919_v61  ;;  %3851 = vmatprep.mubr.msk.bf16.mxu1 %vm5053_vm0, %v5052_v24 }
 0x3b8   : > { %3817 = vmatprep.subr.bf16.mxu1 %v4193_v11 }
 0x489   : > { %v1892_v6 = vpop.f32.mrb[8].mxu1 }
 0x48a   : > { %v3847_v7 = vpop.f32.mrb[9].mxu1  ;;  %v1899_v8 = vsel %vm1898_vm2, %v1892_v6, -inf }
 0x48b   : > { %1900 = vmax.xlane.f32.xlu0 %v1899_v8  ;;  %v1895_v9 = vpop.f32.mrb[10].mxu1 }
 0x48c   : > { %v3848_v10 = vpop.f32.mrb[11].mxu1  ;;  %v2167_v9 = vld [vmem:[#allocation3 + $0x4] sm:$0xf] }
 0x48d   : > { %v2227_v11 = vsel %vm1917_vm1, %v2167_v9, 0 }
 0x518   : > { %v5799_v13 = vpop.xlane.xlu0 %1900 }
 0x519   : > { %v1905_v14 = vsub.f32 %v1892_v6, %v5799_v13  ;;  %v1902_v51 = vsub.f32 -inf, %v5799_v13 }
 0x51b   : > { %v1906_v15 = vmul.f32 1.442695, %v1905_v14  ;;  %v1903_v52 = vmul.f32 1.442695, %v1902_v51 }
 0x51d   : > { %4353 = vpow2.f32 %v1906_v15 }
 0x51e   : > { %4355 = vpow2.f32 %v1903_v52 }
 0x527   : > { %v4354_v16 = vpop.eup %4353 }
 0x528   : > { %v1909_v18 = vsel %vm1898_vm2, %v4354_v16, 0.0  ;;  %v1913_v20 = vpack.c.bf16 %v4354_v16, %v4354_v16  ;;  %v4356_v53 = vpop.eup %4355 }
 0x529   : > { %1910 = vadd.xlane.f32.xlu1 %v1909_v18  ;;  %v1908_v55 = vmul.f32 0.0, %v4356_v53 }
 0x52a   : > { %3852 = vmatmul.mubr.msk.bf16.vlgmr.msra.gmra.mrb[12].mxu1 %vm1898_vm2, %v1913_v20 }
 0x52b   : > { %3818 = vmatpush3.bf16.msra.mxu1 %v4194_v17  ;;  %2151 = vmatprep.mubr.bf16.mxu1 %v5776_v12  ;;  %v4206_v12 = vld [vmem:[#allocation10 + $0xb0] sm:$0xff]  }
 0x52c   : > { %3819 = vmatprep.subr.bf16.mxu1 %v4195_v21 }
 0x52f   : > { %3820 = vmatpush3.bf16.msra.mxu1 %v4196_v22 }
 0x530   : > { %3821 = vmatprep.subr.bf16.mxu1 %v4197_v23 }
 0x533   : > { %3822 = vmatpush3.bf16.msra.mxu1 %v4198_v25 }
 0x534   : > { %3823 = vmatprep.subr.bf16.mxu1 %v4199_v26 }
 0x537   : > { %3824 = vmatpush3.bf16.msra.mxu1 %v4200_v27 }
 0x538   : > { %3825 = vmatprep.subr.bf16.mxu1 %v4201_v28 }
 0x53b   : > { %3826 = vmatpush3.bf16.msra.mxu1 %v4202_v29  ;;  %v4233_v29 = vld [vmem:[#allocation19 + $0x80] ss:$8 sps:$4 sm:$0xff]  }
 0x53c   : > { %3827 = vmatprep.subr.bf16.mxu1 %v4203_v30  ;;  %v4235_v30 = vld [vmem:[#allocation19 + $0x84] ss:$8 sps:$4 sm:$0xff]  }
 0x53f   : > { %3828 = vmatpush3.bf16.msra.mxu1 %v4204_v31  ;;  %v4238_v31 = vld [vmem:[#allocation19 + $0x94] ss:$8 sps:$4 sm:$0xff]  }
 0x540   : > { %3829 = vmatprep.subr.bf16.mxu1 %v4205_v32  ;;  %v4236_v32 = vld [vmem:[#allocation19 + $0x90] ss:$8 sps:$4 sm:$0xff]  }
 0x543   : > { %3830 = vmatpush3.bf16.msra.mxu1 %v4206_v12  ;;  %v4241_v12 = vld [vmem:[#allocation19 + $0xa4] ss:$8 sps:$4 sm:$0xff]  }
 0x544   : > { %3831 = vmatprep.subr.bf16.mxu1 %v4207_v33  ;;  %v4239_v33 = vld [vmem:[#allocation19 + $0xa0] ss:$8 sps:$4 sm:$0xff]  }
 0x547   : > { %3832 = vmatpush3.bf16.msra.mxu1 %v4208_v34  ;;  %v4244_v34 = vld [vmem:[#allocation19 + $0xb4] ss:$8 sps:$4 sm:$0xff]  }
 0x548   : > { %2492 = vmatprep.subr.bf16.mxu1 %v4211_v35  ;;  %v4242_v35 = vld [vmem:[#allocation19 + $0xb0] ss:$8 sps:$4 sm:$0xff]  }
 0x54a   : > { %2152 = vmatmul.mubr.bf16.vlgmr.msra.gmra.mrb[16].mxu1 %v5779_v19  ;;  %v4229_v19 = vld [vmem:[#allocation19 + $0x64] ss:$8 sps:$4 sm:$0xff]  }
 0x54b   : > { %2493 = vmatpush1.bf16.msra.mxu1 %v4209_v36  ;;  %2524 = vmatprep.mubr.bf16.mxu1 %v5054_v50  ;;  %v4247_v36 = vld [vmem:[#allocation19 + $0xc4] ss:$8 sps:$4 sm:$0xff]  }
 0x54c   : > { %2494 = vmatprep.subr.bf16.mxu1 %v4214_v37  ;;  %v4245_v37 = vld [vmem:[#allocation19 + $0xc0] ss:$8 sps:$4 sm:$0xff]  }
 0x54f   : > { %2495 = vmatpush1.bf16.msra.mxu1 %v4212_v38  ;;  %v4250_v38 = vld [vmem:[#allocation19 + $0xd4] ss:$8 sps:$4 sm:$0xff]  }
 0x550   : > { %2496 = vmatprep.subr.bf16.mxu1 %v4217_v39  ;;  %v4248_v39 = vld [vmem:[#allocation19 + $0xd0] ss:$8 sps:$4 sm:$0xff]  }
 0x553   : > { %2497 = vmatpush1.bf16.msra.mxu1 %v4215_v40  ;;  %v4253_v40 = vld [vmem:[#allocation19 + $0xe4] ss:$8 sps:$4 sm:$0xff]  }
 0x554   : > { %2498 = vmatprep.subr.bf16.mxu1 %v4220_v41  ;;  %v4251_v41 = vld [vmem:[#allocation19 + $0xe0] ss:$8 sps:$4 sm:$0xff]  }
 0x557   : > { %2499 = vmatpush1.bf16.msra.mxu1 %v4218_v42  ;;  %v4256_v42 = vld [vmem:[#allocation19 + $0xf4] ss:$8 sps:$4 sm:$0xff]  }
 0x558   : > { %2500 = vmatprep.subr.bf16.mxu1 %v4223_v43  ;;  %v4254_v43 = vld [vmem:[#allocation19 + $0xf0] ss:$8 sps:$4 sm:$0xff]  }
 0x55b   : > { %2501 = vmatpush1.bf16.msra.mxu1 %v4221_v44 }
 0x55c   : > { %2502 = vmatprep.subr.bf16.mxu1 %v4226_v45 }
 0x55f   : > { %2503 = vmatpush1.bf16.msra.mxu1 %v4224_v46 }
 0x560   : > { %2504 = vmatprep.subr.bf16.mxu1 %v4229_v19 }
 0x563   : > { %2505 = vmatpush1.bf16.msra.mxu1 %v4227_v47 }
 0x564   : > { %2506 = vmatprep.subr.bf16.mxu1 %v4232_v48 }
 0x567   : > { %2507 = vmatpush1.bf16.msra.mxu1 %v4230_v49 }
 0x5b6   : > { %v1911_v54 = vpop.xlane.xlu1 %1910 }
 0x5b7   : > { %v1912_v56 = vadd.f32 %v1911_v54, %v1908_v55 }
 0x5b9   : > { %4357 = vrcp.f32 %v1912_v56 }
 0x5c3   : > { %v4358_v60 = vpop.eup %4357 }
 0x5fd   : > { %v1955_v57 = vpop.f32.mrb[12].mxu1 }
 0x5fe   : > { %v1961_v58 = vadd.f32 %v1955_v57, %v1908_v55  ;;  %v3853_v59 = vpop.f32.mrb[13].mxu1  ;;  %v2535_v57 = vlaneseq }
 0x5ff   : > { %v1958_v61 = vpop.f32.mrb[14].mxu1 }
 0x600   : > { %v1964_v62 = vmul.f32 %v4358_v60, %v1961_v58  ;;  %v3854_v63 = vpop.f32.mrb[15].mxu1  ;;  %v2536_v58 = vshrl.u32 %v2535_v57, 7  ;;  %v2533_v60 = vld [vmem:[#allocation21] sm:$0x3]  ;;  %v4311_v57 = vld [vmem:[#allocation28 + $0x20] ss:$8 sps:$4 sm:$0xff]  }
 0x602   : > { %v1965_v0 = vpack.c.bf16 %v1964_v62, %v1964_v62  ;;  %v5817_v59 = vsub.s32 0, %v2536_v58  ;;  %v5819_v61 = vsub.s32 1, %v2536_v58  ;;  %v4316_v58 = vld [vmem:[#allocation28 + $0x34] ss:$8 sps:$4 sm:$0xff]  }
 0x604   : > { %2525 = vmatmul.mubr.bf16.vlgmr.msra.gmra.mrb[20].mxu1 %v1965_v0  ;;  %v2538_v62 = vrot.slane %v2533_v60, %v5817_v59  ;;  %v2542_v0 = vrot.slane %v2533_v60, %v5819_v61  ;;  %v4314_v60 = vld [vmem:[#allocation28 + $0x30] ss:$8 sps:$4 sm:$0xff]  }
 0x61d   : > { %v3833_v1 = vpop.f32.mrb[16].mxu1 }
 0x61e   : > { %v3834_v3 = vpop.f32.mrb[17].mxu1 }
 0x61f   : > { %v3835_v4 = vadd.f32 %v3834_v3, %v3833_v1  ;;  %v3836_v5 = vpop.f32.mrb[18].mxu1 }
 0x620   : > { %v3837_v6 = vpop.f32.mrb[19].mxu1  ;;  %v1663_v5 = vld [vmem:[%s5727_s20] sm:$0xff] }
 0x621   : > { %v2154_v7 = vadd.f32 %v3835_v4, %v3580_v2 }
 0x623   : > { %v2159_v8 = vmul.f32 0.088388346, %v2154_v7 }
 0x625   : > { %v2160_v10 = vpack.c.bf16 %v2159_v8, %v2159_v8  ;;  %v1664_v8 = vld [vmem:[%s5727_s20 + $0x8] sm:$0xff] }
 0x627   : > { %3858 = vmatmul.mubr.bf16.vlgmr.msra.gmra.mrb[12].mxu0 %v2160_v10 }
 0x628   : > { %3862 = vmatpush3.bf16.msra.mxu0 %v2227_v11  ;;  %3863 = vmatprep.mubr.msk.bf16.mxu0 %vm5053_vm0, %v5052_v24 }
 0x629   : > { %2371 = vmatprep.subr.bf16.mxu0 %v4235_v30  ;;  %v4278_v30 = vld [vmem:[#allocation25 + $0x70] ss:$8 sps:$4 sm:$0xff]  }
 0x6d7   : > { %v5810_v13 = vpop.f32.mrb[20].mxu1 }
 0x6d8   : > { %v5812_v14 = vpop.f32.mrb[21].mxu1 }
 0x6d9   : > { %v2530_v15 = vpop.f32.mrb[22].mxu1 }
 0x6da   : > { %v2531_v16 = vpop.f32.mrb[23].mxu1 }
 0x6db   : > { %v4257_v16 = vld [vmem:[#allocation25] ss:$8 sps:$4 sm:$0xff]  }
 0x6fa   : > { %v2202_v17 = vpop.f32.mrb[12].mxu0 }
 0x6fb   : > { %v3859_v18 = vpop.f32.mrb[13].mxu0  ;;  %v2208_v20 = vsel %vm1898_vm2, %v2202_v17, -inf }
 0x6fc   : > { %2209 = vmax.xlane.f32.xlu0 %v2208_v20  ;;  %v2205_v21 = vpop.f32.mrb[14].mxu0  ;;  %v4262_v18 = vld [vmem:[#allocation25 + $0x14] ss:$8 sps:$4 sm:$0xff]   ;;  %v4260_v20 = vld [vmem:[#allocation25 + $0x10] ss:$8 sps:$4 sm:$0xff]  }
 0x6fd   : > { %v3860_v22 = vpop.f32.mrb[15].mxu0  ;;  %v4268_v21 = vld [vmem:[#allocation25 + $0x34] ss:$8 sps:$4 sm:$0xff]  }
 0x6fe   : > { %v4266_v22 = vld [vmem:[#allocation25 + $0x30] ss:$8 sps:$4 sm:$0xff]  }
 0x789   : > { %v2210_v23 = vpop.xlane.xlu0 %2209 }
 0x78a   : > { %v2214_v25 = vsub.f32 %v2202_v17, %v2210_v23  ;;  %v2211_v44 = vsub.f32 -inf, %v2210_v23  ;;  %v4259_v17 = vld [vmem:[#allocation25 + $0x4] ss:$8 sps:$4 sm:$0xff]  }
 0x78b   : > { %v4271_v23 = vld [vmem:[#allocation25 + $0x44] ss:$8 sps:$4 sm:$0xff]  }
 0x78c   : > { %v2215_v26 = vmul.f32 1.442695, %v2214_v25  ;;  %v2212_v45 = vmul.f32 1.442695, %v2211_v44  ;;  %v4269_v25 = vld [vmem:[#allocation25 + $0x40] ss:$8 sps:$4 sm:$0xff]  }
 0x78d   : > { %v4290_v44 = vld [vmem:[#allocation25 + $0xb0] ss:$8 sps:$4 sm:$0xff]  }
 0x78e   : > { %4359 = vpow2.f32 %v2215_v26  ;;  %v4274_v26 = vld [vmem:[#allocation25 + $0x54] ss:$8 sps:$4 sm:$0xff]  }
 0x78f   : > { %4361 = vpow2.f32 %v2212_v45  ;;  %v4295_v45 = vld [vmem:[#allocation25 + $0xc4] ss:$8 sps:$4 sm:$0xff]  }
 0x798   : > { %v4360_v27 = vpop.eup %4359 }
 0x799   : > { %v2218_v24 = vsel %vm1898_vm2, %v4360_v27, 0.0  ;;  %v2222_v28 = vpack.c.bf16 %v4360_v27, %v4360_v27  ;;  %v4362_v46 = vpop.eup %4361  ;;  %v4272_v27 = vld [vmem:[#allocation25 + $0x50] ss:$8 sps:$4 sm:$0xff]  }
 0x79a   : > { %2219 = vadd.xlane.f32.xlu1 %v2218_v24  ;;  %v2217_v47 = vmul.f32 0.0, %v4362_v46  ;;  %v4277_v24 = vld [vmem:[#allocation25 + $0x64] ss:$8 sps:$4 sm:$0xff]   ;;  %v4293_v46 = vld [vmem:[#allocation25 + $0xc0] ss:$8 sps:$4 sm:$0xff]  }
 0x79b   : > { %3864 = vmatmul.mubr.msk.bf16.vlgmr.msra.gmra.mrb[16].mxu0 %vm1898_vm2, %v2222_v28  ;;  %v4275_v28 = vld [vmem:[#allocation25 + $0x60] ss:$8 sps:$4 sm:$0xff]  }
 0x79c   : > { %2403 = vmatprep.mubr.bf16.mxu0 %v5054_v50  ;;  %2372 = vmatpush1.bf16.msra.mxu0 %v4233_v29  ;;  %v4280_v29 = vld [vmem:[#allocation25 + $0x74] ss:$8 sps:$4 sm:$0xff]  }
 0x79d   : > { %2373 = vmatprep.subr.bf16.mxu0 %v4238_v31  ;;  %v4283_v31 = vld [vmem:[#allocation25 + $0x84] ss:$8 sps:$4 sm:$0xff]  }
 0x7a0   : > { %2374 = vmatpush1.bf16.msra.mxu0 %v4236_v32  ;;  %v4281_v32 = vld [vmem:[#allocation25 + $0x80] ss:$8 sps:$4 sm:$0xff]  }
 0x7a1   : > { %2375 = vmatprep.subr.bf16.mxu0 %v4241_v12  ;;  %v4286_v12 = vld [vmem:[#allocation25 + $0x94] ss:$8 sps:$4 sm:$0xff]  }
 0x7a4   : > { %2376 = vmatpush1.bf16.msra.mxu0 %v4239_v33  ;;  %v4284_v33 = vld [vmem:[#allocation25 + $0x90] ss:$8 sps:$4 sm:$0xff]  }
 0x7a5   : > { %2377 = vmatprep.subr.bf16.mxu0 %v4244_v34 }
 0x7a8   : > { %2378 = vmatpush1.bf16.msra.mxu0 %v4242_v35 }
 0x7a9   : > { %2379 = vmatprep.subr.bf16.mxu0 %v4247_v36 }
 0x7ac   : > { %2380 = vmatpush1.bf16.msra.mxu0 %v4245_v37 }
 0x7ad   : > { %2381 = vmatprep.subr.bf16.mxu0 %v4250_v38 }
 0x7b0   : > { %2382 = vmatpush1.bf16.msra.mxu0 %v4248_v39 }
 0x7b1   : > { %2383 = vmatprep.subr.bf16.mxu0 %v4253_v40 }
 0x7b4   : > { %2384 = vmatpush1.bf16.msra.mxu0 %v4251_v41  ;;  %v4289_v41 = vld [vmem:[#allocation25 + $0xa4] ss:$8 sps:$4 sm:$0xff]  }
 0x7b5   : > { %2385 = vmatprep.subr.bf16.mxu0 %v4256_v42  ;;  %v4287_v42 = vld [vmem:[#allocation25 + $0xa0] ss:$8 sps:$4 sm:$0xff]  }
 0x7b8   : > { %2386 = vmatpush1.bf16.msra.mxu0 %v4254_v43  ;;  %v4292_v43 = vld [vmem:[#allocation25 + $0xb4] ss:$8 sps:$4 sm:$0xff]  }
 0x7b9   : > { %2800 = vmatprep.subr.bf16.mxu0 %v4259_v17  ;;  %v4343_v17 = vld [vmem:[#allocation28 + $0xc4] ss:$8 sps:$4 sm:$0xff]  }
 0x827   : > { %v2220_v19 = vpop.xlane.xlu1 %2219 }
 0x828   : > { %v2221_v48 = vadd.f32 %v2220_v19, %v2217_v47  ;;  %v4298_v19 = vld [vmem:[#allocation25 + $0xd4] ss:$8 sps:$4 sm:$0xff]  }
 0x82a   : > { %4363 = vrcp.f32 %v2221_v48  ;;  %v4301_v48 = vld [vmem:[#allocation25 + $0xe4] ss:$8 sps:$4 sm:$0xff]  }
 0x834   : > { %v4364_v52 = vpop.eup %4363 }
 0x86e   : > { %v2263_v49 = vpop.f32.mrb[16].mxu0 }
 0x86f   : > { %v2269_v50 = vadd.f32 %v2263_v49, %v2217_v47  ;;  %v3865_v51 = vpop.f32.mrb[17].mxu0  ;;  %v4296_v47 = vld [vmem:[#allocation25 + $0xd0] ss:$8 sps:$4 sm:$0xff]   ;;  %v4299_v49 = vld [vmem:[#allocation25 + $0xe0] ss:$8 sps:$4 sm:$0xff]  }
 0x870   : > { %v2266_v53 = vpop.f32.mrb[18].mxu0  ;;  %v4302_v51 = vld [vmem:[#allocation25 + $0xf0] ss:$8 sps:$4 sm:$0xff]  }
 0x871   : > { %v2272_v54 = vmul.f32 %v4364_v52, %v2269_v50  ;;  %v3866_v55 = vpop.f32.mrb[19].mxu0  ;;  %v4304_v50 = vld [vmem:[#allocation25 + $0xf4] ss:$8 sps:$4 sm:$0xff]   ;;  %v4305_v52 = vld [vmem:[#allocation28] ss:$8 sps:$4 sm:$0xff]  }
 0x872   : > { %v4307_v53 = vld [vmem:[#allocation28 + $0x4] ss:$8 sps:$4 sm:$0xff]   ;;  %v4308_v55 = vld [vmem:[#allocation28 + $0x10] ss:$8 sps:$4 sm:$0xff]  }
 0x873   : > { %v2273_v56 = vpack.c.bf16 %v2272_v54, %v2272_v54  ;;  %v4310_v54 = vld [vmem:[#allocation28 + $0x14] ss:$8 sps:$4 sm:$0xff]   ;;  %3049 = vmatprep.subr.bf16.mxu1 %v4307_v53  ;;  %v2877_v53 = vld [vmem:[#allocation30] sm:$0x3] }
 0x874   : > { %3050 = vmatpush1.bf16.msra.mxu1 %v4305_v52 }
 0x875   : > { %2404 = vmatmul.mubr.bf16.vlgmr.msra.gmra.mrb[20].mxu0 %v2273_v56  ;;  %3051 = vmatprep.subr.bf16.mxu1 %v4310_v54  ;;  %v4313_v56 = vld [vmem:[#allocation28 + $0x24] ss:$8 sps:$4 sm:$0xff]   ;;  %v2882_v54 = vrot.slane %v2877_v53, %v5817_v59 }
 0x876   : > { %2801 = vmatpush1.bf16.msra.mxu0 %v4257_v16  ;;  %v4338_v16 = vld [vmem:[#allocation28 + $0xb0] ss:$8 sps:$4 sm:$0xff]  }
 0x877   : > { %2802 = vmatprep.subr.bf16.mxu0 %v4262_v18  ;;  %v4341_v18 = vld [vmem:[#allocation28 + $0xc0] ss:$8 sps:$4 sm:$0xff]  }
 0x878   : > { %3052 = vmatpush1.bf16.msra.mxu1 %v4308_v55  ;;  %v2886_v55 = vrot.slane %v2877_v53, %v5819_v61 }
 0x879   : > { %3053 = vmatprep.subr.bf16.mxu1 %v4313_v56 }
 0x87a   : > { %2803 = vmatpush1.bf16.msra.mxu0 %v4260_v20  ;;  %v4346_v20 = vld [vmem:[#allocation28 + $0xd4] ss:$8 sps:$4 sm:$0xff]  }
 0x87c   : > { %3054 = vmatpush1.bf16.msra.mxu1 %v4311_v57 }
 0x87d   : > { %3055 = vmatprep.subr.bf16.mxu1 %v4316_v58 }
 0x880   : > { %3056 = vmatpush1.bf16.msra.mxu1 %v4314_v60 }
 0x948   : > { %v2405_v63 = vpop.f32.mrb[20].mxu0 }
 0x949   : > { %v2527_v1 = vadd.f32 %v5810_v13, %v2405_v63  ;;  %v2407_v2 = vpop.f32.mrb[21].mxu0  ;;  %v4265_v13 = vld [vmem:[#allocation25 + $0x24] ss:$8 sps:$4 sm:$0xff]  }
 0x94a   : > { %v2529_v3 = vadd.f32 %v5812_v14, %v2407_v2  ;;  %v2409_v4 = vpop.f32.mrb[22].mxu0  ;;  %v4263_v14 = vld [vmem:[#allocation25 + $0x20] ss:$8 sps:$4 sm:$0xff]   ;;  %2804 = vmatprep.subr.bf16.mxu0 %v4265_v13  ;;  %v4344_v13 = vld [vmem:[#allocation28 + $0xd0] ss:$8 sps:$4 sm:$0xff]  }
 0x94b   : > { %v2545_v6 = vadd.f32 %v2538_v62, %v2527_v1  ;;  %v2410_v7 = vpop.f32.mrb[23].mxu0  ;;  %2805 = vmatpush1.bf16.msra.mxu0 %v4263_v14  ;;  %v4319_v62 = vld [vmem:[#allocation28 + $0x44] ss:$8 sps:$4 sm:$0xff]   ;;  %v4317_v63 = vld [vmem:[#allocation28 + $0x40] ss:$8 sps:$4 sm:$0xff]  }
 0x94c   : > { %v2546_v9 = vadd.f32 %v2542_v0, %v2529_v3  ;;  %2806 = vmatprep.subr.bf16.mxu0 %v4268_v21  ;;  %3057 = vmatprep.subr.bf16.mxu1 %v4319_v62  ;;  %v4322_v0 = vld [vmem:[#allocation28 + $0x54] ss:$8 sps:$4 sm:$0xff]   ;;  %v4320_v1 = vld [vmem:[#allocation28 + $0x50] ss:$8 sps:$4 sm:$0xff]   ;;  %v4325_v2 = vld [vmem:[#allocation28 + $0x64] ss:$8 sps:$4 sm:$0xff]  }
 0x94d   : > { %v2547_v10 = vadd.f32 %v2545_v6, %v1663_v5  ;;  %3058 = vmatpush1.bf16.msra.mxu1 %v4317_v63  ;;  %v4323_v3 = vld [vmem:[#allocation28 + $0x60] ss:$8 sps:$4 sm:$0xff]   ;;  %v4328_v4 = vld [vmem:[#allocation28 + $0x74] ss:$8 sps:$4 sm:$0xff]   ;;  %v4326_v5 = vld [vmem:[#allocation28 + $0x70] ss:$8 sps:$4 sm:$0xff]  }
 0x94e   : > { %v2548_v11 = vadd.f32 %v2546_v9, %v1664_v8  ;;  %3059 = vmatprep.subr.bf16.mxu1 %v4322_v0  ;;  %v4331_v6 = vld [vmem:[#allocation28 + $0x84] ss:$8 sps:$4 sm:$0xff]   ;;  %v4329_v7 = vld [vmem:[#allocation28 + $0x80] ss:$8 sps:$4 sm:$0xff]   ;;  %v4334_v8 = vld [vmem:[#allocation28 + $0x94] ss:$8 sps:$4 sm:$0xff]  }
 0x94f   : > { %2807 = vmatpush1.bf16.msra.mxu0 %v4266_v22  ;;  %v4332_v9 = vld [vmem:[#allocation28 + $0x90] ss:$8 sps:$4 sm:$0xff]  }
 0x950   : > { %v2551_v15 = vadd.f32 %v2548_v11, %v2547_v10  ;;  %2808 = vmatprep.subr.bf16.mxu0 %v4271_v23  ;;  %v2549_v23 = vld [vmem:[#allocation22] sm:$0x3] }
 0x951   : > { %3060 = vmatpush1.bf16.msra.mxu1 %v4320_v1 }
 0x952   : > { %2552 = vadd.xlane.f32.xlu0 %v2551_v15  ;;  %3061 = vmatprep.subr.bf16.mxu1 %v4325_v2  ;;  %v4340_v15 = vld [vmem:[#allocation28 + $0xb4] ss:$8 sps:$4 sm:$0xff]  }
 0x953   : > { %2809 = vmatpush1.bf16.msra.mxu0 %v4269_v25  ;;  %v2550_v25 = vld [vmem:[#allocation24] sm:$0x3] }
 0x954   : > { %2810 = vmatprep.subr.bf16.mxu0 %v4274_v26  ;;  %v2572_v26 = vrot.slane %v2549_v23, %v5817_v59 }
 0x955   : > { %3062 = vmatpush1.bf16.msra.mxu1 %v4323_v3 }
 0x956   : > { %3063 = vmatprep.subr.bf16.mxu1 %v4328_v4 }
 0x957   : > { %2811 = vmatpush1.bf16.msra.mxu0 %v4272_v27  ;;  %v2576_v27 = vrot.slane %v2549_v23, %v5819_v61 }
 0x958   : > { %2812 = vmatprep.subr.bf16.mxu0 %v4277_v24 }
 0x959   : > { %3064 = vmatpush1.bf16.msra.mxu1 %v4326_v5 }
 0x95a   : > { %3065 = vmatprep.subr.bf16.mxu1 %v4331_v6 }
 0x95b   : > { %2813 = vmatpush1.bf16.msra.mxu0 %v4275_v28 }
 0x95c   : > { %2814 = vmatprep.subr.bf16.mxu0 %v4280_v29 }
 0x95d   : > { %3066 = vmatpush1.bf16.msra.mxu1 %v4329_v7 }
 0x95e   : > { %3067 = vmatprep.subr.bf16.mxu1 %v4334_v8 }
 0x95f   : > { %2815 = vmatpush1.bf16.msra.mxu0 %v4278_v30  ;;  %v2585_v30 = vrot.slane %v2550_v25, %v5817_v59 }
 0x960   : > { %2816 = vmatprep.subr.bf16.mxu0 %v4283_v31  ;;  %v2589_v31 = vrot.slane %v2550_v25, %v5819_v61 }
 0x961   : > { %3068 = vmatpush1.bf16.msra.mxu1 %v4332_v9 }
 0x963   : > { %2817 = vmatpush1.bf16.msra.mxu0 %v4281_v32 }
 0x964   : > { %2818 = vmatprep.subr.bf16.mxu0 %v4286_v12 }
 0x967   : > { %2819 = vmatpush1.bf16.msra.mxu0 %v4284_v33 }
 0x968   : > { %2820 = vmatprep.subr.bf16.mxu0 %v4289_v41  ;;  %v4352_v41 = vld [vmem:[#allocation28 + $0xf4] ss:$8 sps:$4 sm:$0xff]  }
 0x96b   : > { %2821 = vmatpush1.bf16.msra.mxu0 %v4287_v42 }
 0x96c   : > { %2822 = vmatprep.subr.bf16.mxu0 %v4292_v43 }
 0x96f   : > { %2823 = vmatpush1.bf16.msra.mxu0 %v4290_v44 }
 0x970   : > { %2824 = vmatprep.subr.bf16.mxu0 %v4295_v45 }
 0x973   : > { %2825 = vmatpush1.bf16.msra.mxu0 %v4293_v46 }
 0x974   : > { %2826 = vmatprep.subr.bf16.mxu0 %v4298_v19 }
 0x977   : > { %2827 = vmatpush1.bf16.msra.mxu0 %v4296_v47 }
 0x978   : > { %2828 = vmatprep.subr.bf16.mxu0 %v4301_v48 }
 0x97b   : > { %2829 = vmatpush1.bf16.msra.mxu0 %v4299_v49 }
 0x97c   : > { %2830 = vmatprep.subr.bf16.mxu0 %v4304_v50 }
 0x97f   : > { %2831 = vmatpush1.bf16.msra.mxu0 %v4302_v51 }
 0x9df   : > { %v2553_v34 = vpop.xlane.xlu0 %2552 }
 0x9e0   : > { %v2555_v35 = vmul.f32 0.00390625, %v2553_v34 }
 0x9e2   : > { %v5827_v36 = vsub.f32 %v2547_v10, %v2555_v35  ;;  %v5829_v37 = vsub.f32 %v2548_v11, %v2555_v35  ;;  %v4337_v10 = vld [vmem:[#allocation28 + $0xa4] ss:$8 sps:$4 sm:$0xff]   ;;  %v4335_v11 = vld [vmem:[#allocation28 + $0xa0] ss:$8 sps:$4 sm:$0xff]  }
 0x9e3   : > { %3069 = vmatprep.subr.bf16.mxu1 %v4337_v10 }
 0x9e4   : > { %v2558_v38 = vmul.f32 %v5827_v36, %v5827_v36  ;;  %v2559_v39 = vmul.f32 %v5829_v37, %v5829_v37  ;;  %3070 = vmatpush1.bf16.msra.mxu1 %v4335_v11 }
 0x9e5   : > { %3071 = vmatprep.subr.bf16.mxu1 %v4340_v15 }
 0x9e6   : > { %v2560_v40 = vadd.f32 %v2559_v39, %v2558_v38  ;;  %v4349_v39 = vld [vmem:[#allocation28 + $0xe4] ss:$8 sps:$4 sm:$0xff]  }
 0x9e8   : > { %2561 = vadd.xlane.f32.xlu1 %v2560_v40  ;;  %3072 = vmatpush1.bf16.msra.mxu1 %v4338_v16  ;;  %v4347_v40 = vld [vmem:[#allocation28 + $0xe0] ss:$8 sps:$4 sm:$0xff]  }
 0x9e9   : > { %3073 = vmatprep.subr.bf16.mxu1 %v4343_v17  ;;  %v3092_v16 = vld [vmem:[#allocation31] sm:$0x3]  ;;  %v3093_v17 = vld [vmem:[#allocation33] sm:$0x3] }
 0x9ea   : > { %v3131_v23 = vrot.slane %v3093_v17, %v5819_v61 }
 0x9ec   : > { %3074 = vmatpush1.bf16.msra.mxu1 %v4341_v18  ;;  %v3114_v18 = vrot.slane %v3092_v16, %v5817_v59 }
 0x9ed   : > { %3075 = vmatprep.subr.bf16.mxu1 %v4346_v20  ;;  %v3118_v20 = vrot.slane %v3092_v16, %v5819_v61 }
 0x9f0   : > { %3076 = vmatpush1.bf16.msra.mxu1 %v4344_v13 }
 0x9f1   : > { %3077 = vmatprep.subr.bf16.mxu1 %v4349_v39 }
 0x9f4   : > { %3078 = vmatpush1.bf16.msra.mxu1 %v4347_v40 }
 0x9f5   : > { %3079 = vmatprep.subr.bf16.mxu1 %v4352_v41 }
 0xa75   : > { %v2562_v14 = vpop.xlane.xlu1 %2561 }
 0xa76   : > { %v2563_v21 = vmul.f32 0.00390625, %v2562_v14 }
 0xa78   : > { %v2564_v22 = vadd.f32 1e-05, %v2563_v21 }
 0xa7a   : > { %4365 = vrsqrt.f32 %v2564_v22  ;;  %v3127_v22 = vrot.slane %v3093_v17, %v5817_v59 }
 0xa84   : > { %v4366_v24 = vpop.eup %4365 }
 0xa85   : > { %v2566_v28 = vmul.f32 %v4366_v24, %v5827_v36  ;;  %v2567_v29 = vmul.f32 %v4366_v24, %v5829_v37  ;;  %v4350_v36 = vld [vmem:[#allocation28 + $0xf0] ss:$8 sps:$4 sm:$0xff]   ;;  %v2628_v37 = vld [vmem:[#allocation27] sm:$0x3] }
 0xa86   : > { %3080 = vmatpush1.bf16.msra.mxu1 %v4350_v36  ;;  %v2633_v42 = vrot.slane %v2628_v37, %v5817_v59  ;;  %v2637_v43 = vrot.slane %v2628_v37, %v5819_v61 }
 0xa87   : > { %v2580_v32 = vmul.f32 %v2576_v27, %v2567_v29  ;;  %v2579_v12 = vmul.f32 %v2572_v26, %v2566_v28 }
 0xa89   : > { %v2593_v33 = vadd.f32 %v2589_v31, %v2580_v32  ;;  %v2592_v34 = vadd.f32 %v2585_v30, %v2579_v12 }
 0xa8b   : > { %v2595_v35 = vpack.c.bf16 %v2593_v33, %v2593_v33  ;;  %v2594_v38 = vpack.c.bf16 %v2592_v34, %v2592_v34 }
 0xa8d   : > { %2832 = vmatprep.mubr.bf16.mxu0 %v2595_v35 }
 0xa8e   : > { %2833 = vmatmul.mubr.bf16.vlgmr.msra.gmra.mrb[24].mxu0 %v2594_v38 }
 0xb61   : > { %v2834_v44 = vpop.f32.mrb[24].mxu0 }
 0xb62   : > { %v2835_v45 = vadd.f32 %v2834_v44, %v2633_v42  ;;  %v2836_v46 = vpop.f32.mrb[25].mxu0 }
 0xb63   : > { %v2837_v19 = vadd.f32 %v2836_v46, %v2637_v43  ;;  %v2838_v47 = vpop.f32.mrb[26].mxu0 }
 0xb64   : > { %v2841_v48 = vmax.f32 %v2835_v45, 0.0  ;;  %v2839_v49 = vpop.f32.mrb[27].mxu0 }
 0xb65   : > { %v2842_v50 = vmax.f32 %v2837_v19, 0.0 }
 0xb66   : > { %v2843_v52 = vpack.c.bf16 %v2841_v48, %v2841_v48 }
 0xb67   : > { %v2844_v51 = vpack.c.bf16 %v2842_v50, %v2842_v50 }
 0xb69   : > { %3081 = vmatprep.mubr.bf16.mxu1 %v2844_v51 }
 0xb6a   : > { %3082 = vmatmul.mubr.bf16.vlgmr.msra.gmra.mrb[24].mxu1 %v2843_v52 }
 0xc3d   : > { %v3083_v56 = vpop.f32.mrb[24].mxu1 }
 0xc3e   : > { %v3084_v57 = vadd.f32 %v3083_v56, %v2882_v54  ;;  %v3085_v58 = vpop.f32.mrb[25].mxu1 }
 0xc3f   : > { %v3086_v60 = vadd.f32 %v3085_v58, %v2886_v55  ;;  %v3087_v62 = vpop.f32.mrb[26].mxu1 }
 0xc40   : > { %v3090_v63 = vadd.f32 %v3084_v57, %v2592_v34  ;;  %v3088_v0 = vpop.f32.mrb[27].mxu1 }
 0xc41   : > { %v3091_v1 = vadd.f32 %v3086_v60, %v2593_v33 }
 0xc43   : > { %v3094_v2 = vadd.f32 %v3091_v1, %v3090_v63 }
 0xc45   : > { %3095 = vadd.xlane.f32.xlu0 %v3094_v2 }
 0xcd2   : > { %v3096_v3 = vpop.xlane.xlu0 %3095 }
 0xcd3   : > { %v3097_v4 = vmul.f32 0.00390625, %v3096_v3 }
 0xcd5   : > { %v3098_v5 = vsub.f32 %v3090_v63, %v3097_v4  ;;  %v3099_v6 = vsub.f32 %v3091_v1, %v3097_v4 }
 0xcd7   : > { %v3100_v7 = vmul.f32 %v3098_v5, %v3098_v5  ;;  %v3101_v8 = vmul.f32 %v3099_v6, %v3099_v6 }
 0xcd9   : > { %v3102_v9 = vadd.f32 %v3101_v8, %v3100_v7 }
 0xcdb   : > { %3103 = vadd.xlane.f32.xlu1 %v3102_v9 }
 0xd68   : > { %v3104_v10 = vpop.xlane.xlu1 %3103 }
 0xd69   : > { %v3105_v11 = vmul.f32 0.00390625, %v3104_v10 }
 0xd6b   : > { %v3106_v15 = vadd.f32 1e-05, %v3105_v11 }
 0xd6d   : > { %4367 = vrsqrt.f32 %v3106_v15 }
 0xd77   : > { %v4368_v13 = vpop.eup %4367 }
 0xd78   : > { %v3108_v14 = vmul.f32 %v4368_v13, %v3098_v5  ;;  %v3109_v21 = vmul.f32 %v4368_v13, %v3099_v6 }
 0xd7a   : > { %v3121_v25 = vmul.f32 %v3114_v18, %v3108_v14  ;;  %v3122_v26 = vmul.f32 %v3118_v20, %v3109_v21 }
 0xd7c   : > { %v3134_v27 = vadd.f32 %v3127_v22, %v3121_v25  ;;  %v3135_v24 = vadd.f32 %v3131_v23, %v3122_v26 }
 0xd7e   : > { %3136 = vst [vmem:[%s927_s11] sm:$0xff] %v3134_v27  ;;  %3137 = vst [vmem:[%s927_s11 + $0x8] sm:$0xff] %v3135_v24 }
 0xd7f   : > { %4920 = shalt.err (!%p4917_p10)
}
 0xd80   : > { %s4921_s13 = scalar_lea.hbm %s5855_s16, 256  ;;  %s4925_s19 = scalar_lea.hbm %s6043_s6, 512 }
 0xd81   : > { %p4922_p1 = scmp.ne.s32.totalorder %s5855_s16, %s4921_s13  ;;  %p4926_p11 = scmp.lt.u32.totalorder %s5855_s16, %s6043_s6 }
 0xd82   : > { %p4927_p9 = scmp.lt.u32.totalorder %s4925_s19, %s4921_s13  ;;  %p4929_p13 = scmp.lt.u32.totalorder %s4921_s13, %s5855_s16 }
 0xd83   : > { %p4923_p5 = pnand %p4922_p1, %p6044_p2 }
 0xd84   : > { %p4928_p3 = por %p4927_p9, %p4926_p11 }
 0xd85   : > { %p4924_p0 = pneg %p4923_p5 }
 0xd86   : > { %p4930_p4 = por %p4929_p13, %p4928_p3 }
 0xd88   : > { %p4931_p8 = pnand %p4930_p4, %p4924_p0 }
 0xd8a   : > { %4934 = shalt.err (!%p4931_p8)
}
 0xd8b   : > { %3937 = dma.vmem_to_hbm [thread:$0]  (%p6044_p2), %s5857_s23, 256, %s5855_s16, %s3139_s26  }
 0xd8c PF: > { %s6045_s10 = sld [smem:[#allocation48_spill]]  ;;  %s3167_s2 = sand.u32 1, %s5005_s0  }
 0xd8d   : > { %p6046_p12 = scmp.ne.s32.totalorder %s6002_s21, 0  ;;  %s3168_s29 = scalar_lea.sflag [#allocation6], %s3167_s2 }
 0xd92   : > { %p6047_p6 = scmp.ge.s32.totalorder %s6045_s10, 2 }
 0xd94   : > { %p3999_p7 = pnand %p6047_p6, %p6046_p12 }
 0xd96   : > { %5000 = dma.done.wait (!%p3999_p7), %s3168_s29, 256  }
 0xd97   : > { %5002 = vsyncadd (!%p3999_p7), %s3168_s29, 4294967040  ;;  %s46_s22 = sadd.s32 1, %s6045_s10   ;;  %s6048_s11 = sld [smem:[#allocation46_spill]] }
 0xd98   : > { %p43_p10 = scmp.ge.s32.totalorder %s46_s22, 4   ;;  %s6049_s20 = sld [smem:[#allocation51_spill]] }
 0xd99   : > { %s6050_s27 = sld [smem:[#allocation50_spill]]  ;;  %s6051_s0 = smov %s5009_s30 }
 0xd9a   : > { %s6053_s21 = smov %s5021_s1  ;;  %45 = sbr.rel (!%p43_p10) target bundleno = 37 (0x25), region = 245 }
 0xd9d   : > { %s6052_s30 = smov %s6048_s11 }
 0xd9f   : > { %s6054_s1 = smov %s6050_s27 }
 0xda1   :  { %3173 = vsyncpa [#allocation5], 1 }
 0xda2   :  { %3175 = vsyncpa [#allocation5 + $0x1], 1 }
 0xda3   :  { %3176 = vsyncpa [#allocation8], 1 }
 0xda4   :  { %3178 = vsyncpa [#allocation8 + $0x1], 1 }
 0xda5   :  { %3179 = vsyncpa [#allocation11], 1 }
 0xda6   :  { %3180 = vsyncpa [#allocation14], 1 }
 0xda7   :  { %3181 = vsyncpa [#allocation17], 1 }
 0xda8   :  { %3182 = vsyncpa [#allocation20], 1 }
 0xda9   :  { %3183 = vsyncpa [#allocation23], 1 }
 0xdaa   :  { %3184 = vsyncpa [#allocation26], 1 }
 0xdab   :  { %3185 = vsyncpa [#allocation29], 1 }
 0xdac   :  { %3186 = vsyncpa [#allocation32], 1 }
 0xdad   :  { %3187 = vsyncpa [#allocation6], 1 }
 0xdae   :  { %3189 = vsyncpa [#allocation6 + $0x1], 1 }

</bundles_post_ra>
